<compile_context>
chip_gen: v7x
topology: tpu7x:2x2x1
jax: 0.10.0
libtpu: 0.0.40
codegen_flags: <defaults>
</compile_context>

<pallas_src>
import functools
import math

import jax
import jax.numpy as jnp
from jax.experimental import pallas as pl
from jax.experimental.pallas import tpu as pltpu

# ----------------------------- model config (small synthetic) -----------------------------
VOCAB = 101
HIDDEN = 32
NUM_HEADS = 2
HEAD_DIM = HIDDEN // NUM_HEADS
FFN = 64
NUM_LAYERS = 2
MAX_POS = 16
LN_EPS = 1e-12


# ----------------------------- in-kernel helpers -----------------------------
def _mxu_dot(a, b):
    # bf16 operands for the MXU, f32 accumulation (keeps LN/softmax math in f32 elsewhere).
    return jnp.dot(a.astype(jnp.bfloat16), b.astype(jnp.bfloat16),
                   preferred_element_type=jnp.float32)


def _layernorm(x, g, b):
    mu = jnp.mean(x, axis=-1, keepdims=True)
    xc = x - mu
    var = jnp.mean(xc * xc, axis=-1, keepdims=True)
    return xc * jax.lax.rsqrt(var + LN_EPS) * g + b


# ----------------------------- fused encoder kernel -----------------------------
def _encoder_kernel(emb_ref, mask_k_ref, mask_q_ref, eg_ref, eb_ref,
                    wqkv_ref, bqkv_ref, wo_ref, bo_ref,
                    w1_ref, b1_ref, w2_ref, b2_ref,
                    ln1g_ref, ln1b_ref, ln2g_ref, ln2b_ref,
                    out_ref):
    bb, S, H = emb_ref.shape                      # (rows-per-step, seq, hidden)
    T = bb * S
    scale = 1.0 / math.sqrt(HEAD_DIM)

    # embedding LayerNorm (no zero residual)
    x = _layernorm(emb_ref[...].reshape(T, H), eg_ref[...], eb_ref[...])

    mask_k = mask_k_ref[...]                      # (bb, 1, S)  key mask
    mask_q = mask_q_ref[...]                      # (bb, S, 1)  pooling mask
    bias = (1.0 - mask_k) * (-1e9)                # additive attention mask

    for l in range(NUM_LAYERS):
        # --- multi-head self attention (per-head weights, everything VMEM resident) ---
        acc = jnp.zeros((T, H), jnp.float32)
        for h in range(NUM_HEADS):
            q = _mxu_dot(x, wqkv_ref[l, h]) + bqkv_ref[l, h]
            k = _mxu_dot(x, wqkv_ref[l, NUM_HEADS + h]) + bqkv_ref[l, NUM_HEADS + h]
            v = _mxu_dot(x, wqkv_ref[l, 2 * NUM_HEADS + h]) + bqkv_ref[l, 2 * NUM_HEADS + h]
            q = q.reshape(bb, S, HEAD_DIM)
            k = k.reshape(bb, S, HEAD_DIM)
            v = v.reshape(bb, S, HEAD_DIM)
            s = jnp.einsum("bqd,bkd->bqk", q, k,
                           preferred_element_type=jnp.float32) * scale + bias
            s = s - jnp.max(s, axis=-1, keepdims=True)
            p = jnp.exp(s)
            p = p * pl.reciprocal(jnp.sum(p, axis=-1, keepdims=True), approx=True)
            ctx = jnp.einsum("bqk,bkd->bqd", p, v,
                             preferred_element_type=jnp.float32)
            acc = acc + _mxu_dot(ctx.reshape(T, HEAD_DIM), wo_ref[l, h])
        attn_out = acc + bo_ref[l]
        x1 = _layernorm(attn_out + x, ln1g_ref[l], ln1b_ref[l])

        # --- feed-forward ---
        ff = _mxu_dot(x1, w1_ref[l]) + b1_ref[l]
        # TODO(synk): HF BERT/E5 uses exact (erf) GELU; tanh approximation is used here.
        ff = jax.nn.gelu(ff, approximate=True)
        ff = _mxu_dot(ff, w2_ref[l]) + b2_ref[l]
        x = _layernorm(ff + x1, ln2g_ref[l], ln2b_ref[l])

    # --- masked mean pool over seq + L2 normalize (F.normalize p=2, dim=1) ---
    h3 = x.reshape(bb, S, H)
    summed = jnp.sum(h3 * mask_q, axis=1, keepdims=True)          # (bb, 1, H)
    counts = jnp.sum(mask_q, axis=1, keepdims=True)               # (bb, 1, 1)
    pooled = summed / jnp.maximum(counts, 1e-9)                   # guard all-padded rows
    sq = jnp.sum(pooled * pooled, axis=-1, keepdims=True)
    out_ref[...] = pooled * jax.lax.rsqrt(jnp.maximum(sq, 1e-24))


def encoder_pallas(emb, att_mask_f, params):
    """emb: (B, S, H) f32, att_mask_f: (B, S) f32 -> pooled+normalized (B, H)."""
    B, S, H = emb.shape
    if B % 4 == 0:
        bblk = 4
    elif B % 2 == 0:
        bblk = 2
    else:
        bblk = B
    grid = (B // bblk,)

    mask_k = att_mask_f.reshape(B, 1, S)
    mask_q = att_mask_f.reshape(B, S, 1)

    def batched(shape):
        nzeros = len(shape) - 1
        return pl.BlockSpec((bblk,) + tuple(shape[1:]),
                            lambda b: (b,) + (0,) * nzeros)

    def full(arr):
        rank = arr.ndim
        return pl.BlockSpec(arr.shape, lambda b: (0,) * rank)

    p = params
    operands = (emb, mask_k, mask_q, p["emb_ln_g"], p["emb_ln_b"],
                p["wqkv"], p["bqkv"], p["wo"], p["bo"],
                p["w1"], p["b1"], p["w2"], p["b2"],
                p["ln1_g"], p["ln1_b"], p["ln2_g"], p["ln2_b"])
    in_specs = ([batched(emb.shape), batched(mask_k.shape), batched(mask_q.shape)]
                + [full(a) for a in operands[3:]])

    out = pl.pallas_call(
        _encoder_kernel,
        out_shape=jax.ShapeDtypeStruct((B, 1, H), jnp.float32),
        grid=grid,
        in_specs=in_specs,
        out_specs=pl.BlockSpec((bblk, 1, H), lambda b: (b, 0, 0)),
        compiler_params=pltpu.CompilerParams(dimension_semantics=("parallel",)),
    )(*operands)
    return out[:, 0, :]


# ----------------------------- link-prediction head kernel -----------------------------
def _link_kernel(xi_ref, xj_ref, o_ref):
    # inputs are (H, N): reduce over sublanes -> lane-dense (1, N) output
    s = jnp.sum(xi_ref[...] * xj_ref[...], axis=0, keepdims=True)
    prob = 1.0 / (1.0 + jnp.exp(-s))
    o_ref[...] = jnp.clip(prob, 1e-8, 1.0 - 1e-8)


def link_predict_batch(src, dst):
    """src, dst: (N, H) -> sigmoid(sum(src*dst, -1)) clamped, shape (N,)."""
    N, H = src.shape
    out = pl.pallas_call(
        _link_kernel,
        out_shape=jax.ShapeDtypeStruct((1, N), jnp.float32),
        grid=(1,),
        in_specs=[pl.BlockSpec((H, N), lambda i: (0, 0)),
                  pl.BlockSpec((H, N), lambda i: (0, 0))],
        out_specs=pl.BlockSpec((1, N), lambda i: (0, 0)),
        compiler_params=pltpu.CompilerParams(dimension_semantics=("arbitrary",)),
    )(src.T, dst.T)
    return out[0]


# ----------------------------- parameters (deterministic, synthetic) -----------------------------
def init_params(key):
    def normal(k, shape, scale=0.02):
        return scale * jax.random.normal(k, shape, dtype=jnp.float32)

    ks = jax.random.split(key, 8)
    return {
        "word_emb": normal(ks[0], (VOCAB, HIDDEN)),
        "pos_emb": normal(ks[1], (MAX_POS, HIDDEN)),
        "type_emb": normal(ks[2], (2, HIDDEN)),
        "emb_ln_g": jnp.ones((1, HIDDEN), jnp.float32),
        "emb_ln_b": jnp.zeros((1, HIDDEN), jnp.float32),
        # per-head stacked attention weights (slot order: Q heads, K heads, V heads)
        "wqkv": normal(ks[3], (NUM_LAYERS, 3 * NUM_HEADS, HIDDEN, HEAD_DIM)),
        "bqkv": jnp.zeros((NUM_LAYERS, 3 * NUM_HEADS, 1, HEAD_DIM), jnp.float32),
        "wo": normal(ks[4], (NUM_LAYERS, NUM_HEADS, HEAD_DIM, HIDDEN)),
        "bo": jnp.zeros((NUM_LAYERS, 1, HIDDEN), jnp.float32),
        "w1": normal(ks[5], (NUM_LAYERS, HIDDEN, FFN)),
        "b1": jnp.zeros((NUM_LAYERS, 1, FFN), jnp.float32),
        "w2": normal(ks[6], (NUM_LAYERS, FFN, HIDDEN)),
        "b2": jnp.zeros((NUM_LAYERS, 1, HIDDEN), jnp.float32),
        "ln1_g": jnp.ones((NUM_LAYERS, 1, HIDDEN), jnp.float32),
        "ln1_b": jnp.zeros((NUM_LAYERS, 1, HIDDEN), jnp.float32),
        "ln2_g": jnp.ones((NUM_LAYERS, 1, HIDDEN), jnp.float32),
        "ln2_b": jnp.zeros((NUM_LAYERS, 1, HIDDEN), jnp.float32),
    }


# ----------------------------- model (glue in plain JAX, hot path in Pallas) -----------------------------
def infer_h(input_ids, att_mask, params):
    B, S = input_ids.shape
    att_f = att_mask.astype(jnp.float32)
    we = params["word_emb"][input_ids]                    # gather = glue
    pe = params["pos_emb"][:S][None, :, :]
    te = params["type_emb"][0][None, None, :]
    emb = we + pe + te
    return encoder_pallas(emb, att_f, params)             # pooled + L2-normalized (B, H)


def forward(input_ids, att_mask, params):
    if input_ids.ndim == 2:
        return infer_h(input_ids, att_mask, params)
    batch_size, num_samples, input_size = input_ids.shape
    num_neg_samples = num_samples - 2
    ids = input_ids.reshape(-1, input_size)
    am = att_mask.reshape(-1, input_size)
    h = infer_h(ids, am, params)
    hidden_size = h.shape[-1]
    h = h.reshape(batch_size, num_samples, hidden_size)
    # one lane-dense link-head call for positive + negative pairs
    src_all = jnp.concatenate(
        [h[:, 0, :], jnp.repeat(h[:, 0, :], num_neg_samples, axis=0)], axis=0)
    dst_all = jnp.concatenate(
        [h[:, 1, :], h[:, 2:, :].reshape(-1, hidden_size)], axis=0)
    probs = link_predict_batch(src_all, dst_all)
    pos_out = probs[:batch_size]
    neg_out = probs[batch_size:].reshape(batch_size, num_neg_samples)
    return pos_out, neg_out


# ----------------------------- demo -----------------------------
if __name__ == "__main__":
    key = jax.random.PRNGKey(0)
    k_param, k_ids = jax.random.split(key)
    params = init_params(k_param)

    BATCH, NUM_SAMPLES, SEQ = 2, 4, 8          # 1 pos pair + 2 negatives per example
    input_ids = jax.random.randint(k_ids, (BATCH, NUM_SAMPLES, SEQ), 0, VOCAB, dtype=jnp.int32)
    lengths = jnp.array([8, 7, 6, 8, 5, 8, 7, 6], dtype=jnp.int32)       # deterministic padding
    att_mask = (jnp.arange(SEQ)[None, :] < lengths[:, None]).astype(jnp.int32)
    att_mask = att_mask.reshape(BATCH, NUM_SAMPLES, SEQ)

    fwd = jax.jit(forward)
    pos_out, neg_out = fwd(input_ids, att_mask, params)
    jax.block_until_ready((pos_out, neg_out))
    assert pos_out.shape == (BATCH,)
    assert neg_out.shape == (BATCH, NUM_SAMPLES - 2)
    assert bool(jnp.all(jnp.isfinite(pos_out))) and bool(jnp.all(jnp.isfinite(neg_out)))
    print("KERNEL_OK")
</pallas_src>

<mosaic_0001>
module attributes {stable_mosaic.version = 11 : i64} {
  func.func @_link_kernel(%arg0: i32, %arg1: memref<32x6xf32, #tpu.memory_space<vmem>>, %arg2: memref<32x6xf32, #tpu.memory_space<vmem>>, %arg3: memref<1x6xf32, #tpu.memory_space<vmem>>) attributes {dimension_semantics = [#tpu.dimension_semantics<arbitrary>], iteration_bounds = array<i64: 1>, scalar_prefetch = 0 : i64, scratch_operands = 0 : i64, tpu.core_type = #tpu.core_type<tc>, window_params = [{pipeline_mode = #tpu.pipeline_mode<synchronous>, transform_indices = @transform_0, window_bounds = array<i64: 32, 6>}, {pipeline_mode = #tpu.pipeline_mode<synchronous>, transform_indices = @transform_1, window_bounds = array<i64: 32, 6>}, {pipeline_mode = #tpu.pipeline_mode<synchronous>, transform_indices = @transform_2, window_bounds = array<i64: 1, 6>}]} {
    %c0 = arith.constant 0 : index
    %c0_0 = arith.constant 0 : index
    %0 = vector.load %arg1[%c0, %c0_0] : memref<32x6xf32, #tpu.memory_space<vmem>>, vector<32x6xf32>
    %c0_1 = arith.constant 0 : index
    %c0_2 = arith.constant 0 : index
    %1 = vector.load %arg2[%c0_1, %c0_2] : memref<32x6xf32, #tpu.memory_space<vmem>>, vector<32x6xf32>
    %2 = arith.mulf %0, %1 : vector<32x6xf32>
    %cst = arith.constant dense<0.000000e+00> : vector<6xf32>
    %3 = vector.multi_reduction <add>, %2, %cst [0] : vector<32x6xf32> to vector<6xf32>
    %4 = vector.shape_cast %3 : vector<6xf32> to vector<1x6xf32>
    %cst_3 = arith.constant 0.000000e+00 : f32
    %5 = vector.broadcast %cst_3 : f32 to vector<1x6xf32>
    %6 = arith.subf %5, %4 : vector<1x6xf32>
    %7 = math.exp %6 : vector<1x6xf32>
    %cst_4 = arith.constant 1.000000e+00 : f32
    %8 = vector.broadcast %cst_4 : f32 to vector<1x6xf32>
    %9 = arith.addf %8, %7 : vector<1x6xf32>
    %cst_5 = arith.constant 1.000000e+00 : f32
    %10 = vector.broadcast %cst_5 : f32 to vector<1x6xf32>
    %11 = arith.divf %10, %9 : vector<1x6xf32>
    %cst_6 = arith.constant 9.99999993E-9 : f32
    %cst_7 = arith.constant 1.000000e+00 : f32
    %12 = vector.broadcast %cst_6 : f32 to vector<1x6xf32>
    %13 = arith.maximumf %12, %11 : vector<1x6xf32>
    %14 = vector.broadcast %cst_7 : f32 to vector<1x6xf32>
    %15 = arith.minimumf %14, %13 : vector<1x6xf32>
    %c0_8 = arith.constant 0 : index
    %c0_9 = arith.constant 0 : index
    %16 = vector.load %arg3[%c0_8, %c0_9] : memref<1x6xf32, #tpu.memory_space<vmem>>, vector<1x6xf32>
    tpu.vector_store %arg3[%c0_8, %c0_9], %15 {strides = array<i32>} : memref<1x6xf32, #tpu.memory_space<vmem>>, vector<1x6xf32>,
    return
  }
  func.func @transform_0(%arg0: i32) -> (i32, i32) {
    %c0_i32 = arith.constant 0 : i32
    %c0_i32_0 = arith.constant 0 : i32
    %c0_i32_1 = arith.constant 0 : i32
    return %c0_i32, %c0_i32_0 : i32, i32
  }
  func.func @transform_1(%arg0: i32) -> (i32, i32) {
    %c0_i32 = arith.constant 0 : i32
    %c0_i32_0 = arith.constant 0 : i32
    %c0_i32_1 = arith.constant 0 : i32
    return %c0_i32, %c0_i32_0 : i32, i32
  }
  func.func @transform_2(%arg0: i32) -> (i32, i32) {
    %c0_i32 = arith.constant 0 : i32
    %c0_i32_0 = arith.constant 0 : i32
    %c0_i32_1 = arith.constant 0 : i32
    return %c0_i32, %c0_i32_0 : i32, i32
  }
}

module attributes {stable_mosaic.version = 11 : i64} {
  func.func @_encoder_kernel(%arg0: i32, %arg1: memref<4x8x32xf32, #tpu.memory_space<vmem>>, %arg2: memref<4x1x8xf32, #tpu.memory_space<vmem>>, %arg3: memref<4x8x1xf32, #tpu.memory_space<vmem>>, %arg4: memref<1x32xf32, #tpu.memory_space<vmem>>, %arg5: memref<1x32xf32, #tpu.memory_space<vmem>>, %arg6: memref<2x6x32x16xf32, #tpu.memory_space<vmem>>, %arg7: memref<2x6x1x16xf32, #tpu.memory_space<vmem>>, %arg8: memref<2x2x16x32xf32, #tpu.memory_space<vmem>>, %arg9: memref<2x1x32xf32, #tpu.memory_space<vmem>>, %arg10: memref<2x32x64xf32, #tpu.memory_space<vmem>>, %arg11: memref<2x1x64xf32, #tpu.memory_space<vmem>>, %arg12: memref<2x64x32xf32, #tpu.memory_space<vmem>>, %arg13: memref<2x1x32xf32, #tpu.memory_space<vmem>>, %arg14: memref<2x1x32xf32, #tpu.memory_space<vmem>>, %arg15: memref<2x1x32xf32, #tpu.memory_space<vmem>>, %arg16: memref<2x1x32xf32, #tpu.memory_space<vmem>>, %arg17: memref<2x1x32xf32, #tpu.memory_space<vmem>>, %arg18: memref<4x1x32xf32, #tpu.memory_space<vmem>>) attributes {dimension_semantics = [#tpu.dimension_semantics<parallel>], iteration_bounds = array<i64: 2>, scalar_prefetch = 0 : i64, scratch_operands = 0 : i64, tpu.core_type = #tpu.core_type<tc>, window_params = [{transform_indices = @transform_0, window_bounds = array<i64: 4, 8, 32>}, {transform_indices = @transform_1, window_bounds = array<i64: 4, 1, 8>}, {transform_indices = @transform_2, window_bounds = array<i64: 4, 8, 1>}, {pipeline_mode = #tpu.pipeline_mode<synchronous>, transform_indices = @transform_3, window_bounds = array<i64: 1, 32>}, {pipeline_mode = #tpu.pipeline_mode<synchronous>, transform_indices = @transform_4, window_bounds = array<i64: 1, 32>}, {pipeline_mode = #tpu.pipeline_mode<synchronous>, transform_indices = @transform_5, window_bounds = array<i64: 2, 6, 32, 16>}, {pipeline_mode = #tpu.pipeline_mode<synchronous>, transform_indices = @transform_6, window_bounds = array<i64: 2, 6, 1, 16>}, {pipeline_mode = #tpu.pipeline_mode<synchronous>, transform_indices = @transform_7, window_bounds = array<i64: 2, 2, 16, 32>}, {pipeline_mode = #tpu.pipeline_mode<synchronous>, transform_indices = @transform_8, window_bounds = array<i64: 2, 1, 32>}, {pipeline_mode = #tpu.pipeline_mode<synchronous>, transform_indices = @transform_9, window_bounds = array<i64: 2, 32, 64>}, {pipeline_mode = #tpu.pipeline_mode<synchronous>, transform_indices = @transform_10, window_bounds = array<i64: 2, 1, 64>}, {pipeline_mode = #tpu.pipeline_mode<synchronous>, transform_indices = @transform_11, window_bounds = array<i64: 2, 64, 32>}, {pipeline_mode = #tpu.pipeline_mode<synchronous>, transform_indices = @transform_12, window_bounds = array<i64: 2, 1, 32>}, {pipeline_mode = #tpu.pipeline_mode<synchronous>, transform_indices = @transform_13, window_bounds = array<i64: 2, 1, 32>}, {pipeline_mode = #tpu.pipeline_mode<synchronous>, transform_indices = @transform_14, window_bounds = array<i64: 2, 1, 32>}, {pipeline_mode = #tpu.pipeline_mode<synchronous>, transform_indices = @transform_15, window_bounds = array<i64: 2, 1, 32>}, {pipeline_mode = #tpu.pipeline_mode<synchronous>, transform_indices = @transform_16, window_bounds = array<i64: 2, 1, 32>}, {transform_indices = @transform_17, window_bounds = array<i64: 4, 1, 32>}]} {
    %c0 = arith.constant 0 : index
    %c0_0 = arith.constant 0 : index
    %c0_1 = arith.constant 0 : index
    %0 = vector.load %arg1[%c0, %c0_0, %c0_1] : memref<4x8x32xf32, #tpu.memory_space<vmem>>, vector<4x8x32xf32>
    %1 = vector.shape_cast %0 : vector<4x8x32xf32> to vector<32x32xf32>
    %c0_2 = arith.constant 0 : index
    %c0_3 = arith.constant 0 : index
    %2 = vector.load %arg4[%c0_2, %c0_3] : memref<1x32xf32, #tpu.memory_space<vmem>>, vector<1x32xf32>
    %c0_4 = arith.constant 0 : index
    %c0_5 = arith.constant 0 : index
    %3 = vector.load %arg5[%c0_4, %c0_5] : memref<1x32xf32, #tpu.memory_space<vmem>>, vector<1x32xf32>
    %cst = arith.constant dense<0.000000e+00> : vector<32xf32>
    %4 = vector.multi_reduction <add>, %1, %cst [1] : vector<32x32xf32> to vector<32xf32>
    %5 = vector.shape_cast %4 : vector<32xf32> to vector<32x1xf32>
    %cst_6 = arith.constant 3.200000e+01 : f32
    %6 = vector.broadcast %cst_6 : f32 to vector<32x1xf32>
    %7 = arith.divf %5, %6 : vector<32x1xf32>
    %8 = vector.broadcast %7 : vector<32x1xf32> to vector<32x32xf32>
    %9 = arith.subf %1, %8 : vector<32x32xf32>
    %10 = arith.mulf %9, %9 : vector<32x32xf32>
    %cst_7 = arith.constant dense<0.000000e+00> : vector<32xf32>
    %11 = vector.multi_reduction <add>, %10, %cst_7 [1] : vector<32x32xf32> to vector<32xf32>
    %12 = vector.shape_cast %11 : vector<32xf32> to vector<32x1xf32>
    %cst_8 = arith.constant 3.200000e+01 : f32
    %13 = vector.broadcast %cst_8 : f32 to vector<32x1xf32>
    %14 = arith.divf %12, %13 : vector<32x1xf32>
    %cst_9 = arith.constant 9.99999996E-13 : f32
    %15 = vector.broadcast %cst_9 : f32 to vector<32x1xf32>
    %16 = arith.addf %14, %15 : vector<32x1xf32>
    %17 = math.rsqrt %16 : vector<32x1xf32>
    %18 = vector.broadcast %17 : vector<32x1xf32> to vector<32x32xf32>
    %19 = arith.mulf %9, %18 : vector<32x32xf32>
    %20 = vector.broadcast %2 : vector<1x32xf32> to vector<32x32xf32>
    %21 = arith.mulf %19, %20 : vector<32x32xf32>
    %22 = vector.broadcast %3 : vector<1x32xf32> to vector<32x32xf32>
    %23 = arith.addf %21, %22 : vector<32x32xf32>
    %c0_10 = arith.constant 0 : index
    %c0_11 = arith.constant 0 : index
    %c0_12 = arith.constant 0 : index
    %24 = vector.load %arg2[%c0_10, %c0_11, %c0_12] : memref<4x1x8xf32, #tpu.memory_space<vmem>>, vector<4x1x8xf32>
    %c0_13 = arith.constant 0 : index
    %c0_14 = arith.constant 0 : index
    %c0_15 = arith.constant 0 : index
    %25 = vector.load %arg3[%c0_13, %c0_14, %c0_15] : memref<4x8x1xf32, #tpu.memory_space<vmem>>, vector<4x8x1xf32>
    %cst_16 = arith.constant 1.000000e+00 : f32
    %26 = vector.broadcast %cst_16 : f32 to vector<4x1x8xf32>
    %27 = arith.subf %26, %24 : vector<4x1x8xf32>
    %cst_17 = arith.constant -1.000000e+09 : f32
    %28 = vector.broadcast %cst_17 : f32 to vector<4x1x8xf32>
    %29 = arith.mulf %27, %28 : vector<4x1x8xf32>
    %cst_18 = arith.constant 0.000000e+00 : f32
    %30 = vector.broadcast %cst_18 : f32 to vector<32x32xf32>
    %c0_19 = arith.constant 0 : index
    %c0_20 = arith.constant 0 : index
    %c0_21 = arith.constant 0 : index
    %c0_22 = arith.constant 0 : index
    %31 = vector.load %arg6[%c0_19, %c0_20, %c0_21, %c0_22] : memref<2x6x32x16xf32, #tpu.memory_space<vmem>>, vector<1x1x32x16xf32>
    %32 = vector.shape_cast %31 : vector<1x1x32x16xf32> to vector<32x16xf32>
    %33 = arith.truncf %23 : vector<32x32xf32> to vector<32x32xbf16>
    %34 = arith.truncf %32 : vector<32x16xf32> to vector<32x16xbf16>
    %cst_23 = arith.constant dense<0.000000e+00> : vector<32x16xf32>
    %35 = tpu.matmul %33, %34, %cst_23 {dimension_numbers = #tpu.dot_dimension_numbers<[1], [0], [0], [1], [0, 0, 1, 1], [], []>} : vector<32x32xbf16>, vector<32x16xbf16>, vector<32x16xf32> -> vector<32x16xf32>
    %c0_24 = arith.constant 0 : index
    %c0_25 = arith.constant 0 : index
    %c0_26 = arith.constant 0 : index
    %c0_27 = arith.constant 0 : index
    %36 = vector.load %arg7[%c0_24, %c0_25, %c0_26, %c0_27] : memref<2x6x1x16xf32, #tpu.memory_space<vmem>>, vector<1x1x1x16xf32>
    %37 = vector.shape_cast %36 : vector<1x1x1x16xf32> to vector<1x16xf32>
    %38 = vector.broadcast %37 : vector<1x16xf32> to vector<32x16xf32>
    %39 = arith.addf %35, %38 : vector<32x16xf32>
    %c0_28 = arith.constant 0 : index
    %c2 = arith.constant 2 : index
    %c0_29 = arith.constant 0 : index
    %c0_30 = arith.constant 0 : index
    %40 = vector.load %arg6[%c0_28, %c2, %c0_29, %c0_30] : memref<2x6x32x16xf32, #tpu.memory_space<vmem>>, vector<1x1x32x16xf32>
    %41 = vector.shape_cast %40 : vector<1x1x32x16xf32> to vector<32x16xf32>
    %42 = arith.truncf %23 : vector<32x32xf32> to vector<32x32xbf16>
    %43 = arith.truncf %41 : vector<32x16xf32> to vector<32x16xbf16>
    %cst_31 = arith.constant dense<0.000000e+00> : vector<32x16xf32>
    %44 = tpu.matmul %42, %43, %cst_31 {dimension_numbers = #tpu.dot_dimension_numbers<[1], [0], [0], [1], [0, 0, 1, 1], [], []>} : vector<32x32xbf16>, vector<32x16xbf16>, vector<32x16xf32> -> vector<32x16xf32>
    %c0_32 = arith.constant 0 : index
    %c2_33 = arith.constant 2 : index
    %c0_34 = arith.constant 0 : index
    %c0_35 = arith.constant 0 : index
    %45 = vector.load %arg7[%c0_32, %c2_33, %c0_34, %c0_35] : memref<2x6x1x16xf32, #tpu.memory_space<vmem>>, vector<1x1x1x16xf32>
    %46 = vector.shape_cast %45 : vector<1x1x1x16xf32> to vector<1x16xf32>
    %47 = vector.broadcast %46 : vector<1x16xf32> to vector<32x16xf32>
    %48 = arith.addf %44, %47 : vector<32x16xf32>
    %c0_36 = arith.constant 0 : index
    %c4 = arith.constant 4 : index
    %c0_37 = arith.constant 0 : index
    %c0_38 = arith.constant 0 : index
    %49 = vector.load %arg6[%c0_36, %c4, %c0_37, %c0_38] : memref<2x6x32x16xf32, #tpu.memory_space<vmem>>, vector<1x1x32x16xf32>
    %50 = vector.shape_cast %49 : vector<1x1x32x16xf32> to vector<32x16xf32>
    %51 = arith.truncf %23 : vector<32x32xf32> to vector<32x32xbf16>
    %52 = arith.truncf %50 : vector<32x16xf32> to vector<32x16xbf16>
    %cst_39 = arith.constant dense<0.000000e+00> : vector<32x16xf32>
    %53 = tpu.matmul %51, %52, %cst_39 {dimension_numbers = #tpu.dot_dimension_numbers<[1], [0], [0], [1], [0, 0, 1, 1], [], []>} : vector<32x32xbf16>, vector<32x16xbf16>, vector<32x16xf32> -> vector<32x16xf32>
    %c0_40 = arith.constant 0 : index
    %c4_41 = arith.constant 4 : index
    %c0_42 = arith.constant 0 : index
    %c0_43 = arith.constant 0 : index
    %54 = vector.load %arg7[%c0_40, %c4_41, %c0_42, %c0_43] : memref<2x6x1x16xf32, #tpu.memory_space<vmem>>, vector<1x1x1x16xf32>
    %55 = vector.shape_cast %54 : vector<1x1x1x16xf32> to vector<1x16xf32>
    %56 = vector.broadcast %55 : vector<1x16xf32> to vector<32x16xf32>
    %57 = arith.addf %53, %56 : vector<32x16xf32>
    %58 = vector.shape_cast %39 : vector<32x16xf32> to vector<4x8x16xf32>
    %59 = vector.shape_cast %48 : vector<32x16xf32> to vector<4x8x16xf32>
    %60 = vector.shape_cast %57 : vector<32x16xf32> to vector<4x8x16xf32>
    "tpu.trace_start"() <{level = 10 : i32, message = "bqd,bkd->bqk"}> : () -> ()
    %cst_44 = arith.constant dense<0.000000e+00> : vector<4x8x8xf32>
    %61 = tpu.matmul %58, %59, %cst_44 {dimension_numbers = #tpu.dot_dimension_numbers<[2], [2], [1], [1], [0, 0, 0, 1, 1, 1], [0], [0]>} : vector<4x8x16xf32>, vector<4x8x16xf32>, vector<4x8x8xf32> -> vector<4x8x8xf32>
    "tpu.trace_stop"() : () -> ()
    %cst_45 = arith.constant 2.500000e-01 : f32
    %62 = vector.broadcast %cst_45 : f32 to vector<4x8x8xf32>
    %63 = arith.mulf %61, %62 : vector<4x8x8xf32>
    %64 = vector.broadcast %29 : vector<4x1x8xf32> to vector<4x8x8xf32>
    %65 = arith.addf %63, %64 : vector<4x8x8xf32>
    %cst_46 = arith.constant dense<0xFF800000> : vector<4x8xf32>
    %66 = vector.multi_reduction <maximumf>, %65, %cst_46 [2] : vector<4x8x8xf32> to vector<4x8xf32>
    %67 = vector.shape_cast %66 : vector<4x8xf32> to vector<4x8x1xf32>
    %68 = vector.broadcast %67 : vector<4x8x1xf32> to vector<4x8x8xf32>
    %69 = arith.subf %65, %68 : vector<4x8x8xf32>
    %70 = math.exp %69 : vector<4x8x8xf32>
    %cst_47 = arith.constant dense<0.000000e+00> : vector<4x8xf32>
    %71 = vector.multi_reduction <add>, %70, %cst_47 [2] : vector<4x8x8xf32> to vector<4x8xf32>
    %72 = vector.shape_cast %71 : vector<4x8xf32> to vector<4x8x1xf32>
    %73 = tpu.reciprocal %72 {approx = true} : vector<4x8x1xf32> -> vector<4x8x1xf32>
    %74 = vector.broadcast %73 : vector<4x8x1xf32> to vector<4x8x8xf32>
    %75 = arith.mulf %70, %74 : vector<4x8x8xf32>
    "tpu.trace_start"() <{level = 10 : i32, message = "bqk,bkd->bqd"}> : () -> ()
    %cst_48 = arith.constant dense<0.000000e+00> : vector<4x8x16xf32>
    %76 = tpu.matmul %75, %60, %cst_48 {dimension_numbers = #tpu.dot_dimension_numbers<[2], [1], [1], [2], [0, 0, 0, 1, 1, 2], [0], [0]>} : vector<4x8x8xf32>, vector<4x8x16xf32>, vector<4x8x16xf32> -> vector<4x8x16xf32>
    "tpu.trace_stop"() : () -> ()
    %77 = vector.shape_cast %76 : vector<4x8x16xf32> to vector<32x16xf32>
    %c0_49 = arith.constant 0 : index
    %c0_50 = arith.constant 0 : index
    %c0_51 = arith.constant 0 : index
    %c0_52 = arith.constant 0 : index
    %78 = vector.load %arg8[%c0_49, %c0_50, %c0_51, %c0_52] : memref<2x2x16x32xf32, #tpu.memory_space<vmem>>, vector<1x1x16x32xf32>
    %79 = vector.shape_cast %78 : vector<1x1x16x32xf32> to vector<16x32xf32>
    %80 = arith.truncf %77 : vector<32x16xf32> to vector<32x16xbf16>
    %81 = arith.truncf %79 : vector<16x32xf32> to vector<16x32xbf16>
    %cst_53 = arith.constant dense<0.000000e+00> : vector<32x32xf32>
    %82 = tpu.matmul %80, %81, %cst_53 {dimension_numbers = #tpu.dot_dimension_numbers<[1], [0], [0], [1], [0, 0, 1, 1], [], []>} : vector<32x16xbf16>, vector<16x32xbf16>, vector<32x32xf32> -> vector<32x32xf32>
    %83 = arith.addf %30, %82 : vector<32x32xf32>
    %c0_54 = arith.constant 0 : index
    %c1 = arith.constant 1 : index
    %c0_55 = arith.constant 0 : index
    %c0_56 = arith.constant 0 : index
    %84 = vector.load %arg6[%c0_54, %c1, %c0_55, %c0_56] : memref<2x6x32x16xf32, #tpu.memory_space<vmem>>, vector<1x1x32x16xf32>
    %85 = vector.shape_cast %84 : vector<1x1x32x16xf32> to vector<32x16xf32>
    %86 = arith.truncf %23 : vector<32x32xf32> to vector<32x32xbf16>
    %87 = arith.truncf %85 : vector<32x16xf32> to vector<32x16xbf16>
    %cst_57 = arith.constant dense<0.000000e+00> : vector<32x16xf32>
    %88 = tpu.matmul %86, %87, %cst_57 {dimension_numbers = #tpu.dot_dimension_numbers<[1], [0], [0], [1], [0, 0, 1, 1], [], []>} : vector<32x32xbf16>, vector<32x16xbf16>, vector<32x16xf32> -> vector<32x16xf32>
    %c0_58 = arith.constant 0 : index
    %c1_59 = arith.constant 1 : index
    %c0_60 = arith.constant 0 : index
    %c0_61 = arith.constant 0 : index
    %89 = vector.load %arg7[%c0_58, %c1_59, %c0_60, %c0_61] : memref<2x6x1x16xf32, #tpu.memory_space<vmem>>, vector<1x1x1x16xf32>
    %90 = vector.shape_cast %89 : vector<1x1x1x16xf32> to vector<1x16xf32>
    %91 = vector.broadcast %90 : vector<1x16xf32> to vector<32x16xf32>
    %92 = arith.addf %88, %91 : vector<32x16xf32>
    %c0_62 = arith.constant 0 : index
    %c3 = arith.constant 3 : index
    %c0_63 = arith.constant 0 : index
    %c0_64 = arith.constant 0 : index
    %93 = vector.load %arg6[%c0_62, %c3, %c0_63, %c0_64] : memref<2x6x32x16xf32, #tpu.memory_space<vmem>>, vector<1x1x32x16xf32>
    %94 = vector.shape_cast %93 : vector<1x1x32x16xf32> to vector<32x16xf32>
    %95 = arith.truncf %23 : vector<32x32xf32> to vector<32x32xbf16>
    %96 = arith.truncf %94 : vector<32x16xf32> to vector<32x16xbf16>
    %cst_65 = arith.constant dense<0.000000e+00> : vector<32x16xf32>
    %97 = tpu.matmul %95, %96, %cst_65 {dimension_numbers = #tpu.dot_dimension_numbers<[1], [0], [0], [1], [0, 0, 1, 1], [], []>} : vector<32x32xbf16>, vector<32x16xbf16>, vector<32x16xf32> -> vector<32x16xf32>
    %c0_66 = arith.constant 0 : index
    %c3_67 = arith.constant 3 : index
    %c0_68 = arith.constant 0 : index
    %c0_69 = arith.constant 0 : index
    %98 = vector.load %arg7[%c0_66, %c3_67, %c0_68, %c0_69] : memref<2x6x1x16xf32, #tpu.memory_space<vmem>>, vector<1x1x1x16xf32>
    %99 = vector.shape_cast %98 : vector<1x1x1x16xf32> to vector<1x16xf32>
    %100 = vector.broadcast %99 : vector<1x16xf32> to vector<32x16xf32>
    %101 = arith.addf %97, %100 : vector<32x16xf32>
    %c0_70 = arith.constant 0 : index
    %c5 = arith.constant 5 : index
    %c0_71 = arith.constant 0 : index
    %c0_72 = arith.constant 0 : index
    %102 = vector.load %arg6[%c0_70, %c5, %c0_71, %c0_72] : memref<2x6x32x16xf32, #tpu.memory_space<vmem>>, vector<1x1x32x16xf32>
    %103 = vector.shape_cast %102 : vector<1x1x32x16xf32> to vector<32x16xf32>
    %104 = arith.truncf %23 : vector<32x32xf32> to vector<32x32xbf16>
    %105 = arith.truncf %103 : vector<32x16xf32> to vector<32x16xbf16>
    %cst_73 = arith.constant dense<0.000000e+00> : vector<32x16xf32>
    %106 = tpu.matmul %104, %105, %cst_73 {dimension_numbers = #tpu.dot_dimension_numbers<[1], [0], [0], [1], [0, 0, 1, 1], [], []>} : vector<32x32xbf16>, vector<32x16xbf16>, vector<32x16xf32> -> vector<32x16xf32>
    %c0_74 = arith.constant 0 : index
    %c5_75 = arith.constant 5 : index
    %c0_76 = arith.constant 0 : index
    %c0_77 = arith.constant 0 : index
    %107 = vector.load %arg7[%c0_74, %c5_75, %c0_76, %c0_77] : memref<2x6x1x16xf32, #tpu.memory_space<vmem>>, vector<1x1x1x16xf32>
    %108 = vector.shape_cast %107 : vector<1x1x1x16xf32> to vector<1x16xf32>
    %109 = vector.broadcast %108 : vector<1x16xf32> to vector<32x16xf32>
    %110 = arith.addf %106, %109 : vector<32x16xf32>
    %111 = vector.shape_cast %92 : vector<32x16xf32> to vector<4x8x16xf32>
    %112 = vector.shape_cast %101 : vector<32x16xf32> to vector<4x8x16xf32>
    %113 = vector.shape_cast %110 : vector<32x16xf32> to vector<4x8x16xf32>
    "tpu.trace_start"() <{level = 10 : i32, message = "bqd,bkd->bqk"}> : () -> ()
    %cst_78 = arith.constant dense<0.000000e+00> : vector<4x8x8xf32>
    %114 = tpu.matmul %111, %112, %cst_78 {dimension_numbers = #tpu.dot_dimension_numbers<[2], [2], [1], [1], [0, 0, 0, 1, 1, 1], [0], [0]>} : vector<4x8x16xf32>, vector<4x8x16xf32>, vector<4x8x8xf32> -> vector<4x8x8xf32>
    "tpu.trace_stop"() : () -> ()
    %cst_79 = arith.constant 2.500000e-01 : f32
    %115 = vector.broadcast %cst_79 : f32 to vector<4x8x8xf32>
    %116 = arith.mulf %114, %115 : vector<4x8x8xf32>
    %117 = vector.broadcast %29 : vector<4x1x8xf32> to vector<4x8x8xf32>
    %118 = arith.addf %116, %117 : vector<4x8x8xf32>
    %cst_80 = arith.constant dense<0xFF800000> : vector<4x8xf32>
    %119 = vector.multi_reduction <maximumf>, %118, %cst_80 [2] : vector<4x8x8xf32> to vector<4x8xf32>
    %120 = vector.shape_cast %119 : vector<4x8xf32> to vector<4x8x1xf32>
    %121 = vector.broadcast %120 : vector<4x8x1xf32> to vector<4x8x8xf32>
    %122 = arith.subf %118, %121 : vector<4x8x8xf32>
    %123 = math.exp %122 : vector<4x8x8xf32>
    %cst_81 = arith.constant dense<0.000000e+00> : vector<4x8xf32>
    %124 = vector.multi_reduction <add>, %123, %cst_81 [2] : vector<4x8x8xf32> to vector<4x8xf32>
    %125 = vector.shape_cast %124 : vector<4x8xf32> to vector<4x8x1xf32>
    %126 = tpu.reciprocal %125 {approx = true} : vector<4x8x1xf32> -> vector<4x8x1xf32>
    %127 = vector.broadcast %126 : vector<4x8x1xf32> to vector<4x8x8xf32>
    %128 = arith.mulf %123, %127 : vector<4x8x8xf32>
    "tpu.trace_start"() <{level = 10 : i32, message = "bqk,bkd->bqd"}> : () -> ()
    %cst_82 = arith.constant dense<0.000000e+00> : vector<4x8x16xf32>
    %129 = tpu.matmul %128, %113, %cst_82 {dimension_numbers = #tpu.dot_dimension_numbers<[2], [1], [1], [2], [0, 0, 0, 1, 1, 2], [0], [0]>} : vector<4x8x8xf32>, vector<4x8x16xf32>, vector<4x8x16xf32> -> vector<4x8x16xf32>
    "tpu.trace_stop"() : () -> ()
    %130 = vector.shape_cast %129 : vector<4x8x16xf32> to vector<32x16xf32>
    %c0_83 = arith.constant 0 : index
    %c1_84 = arith.constant 1 : index
    %c0_85 = arith.constant 0 : index
    %c0_86 = arith.constant 0 : index
    %131 = vector.load %arg8[%c0_83, %c1_84, %c0_85, %c0_86] : memref<2x2x16x32xf32, #tpu.memory_space<vmem>>, vector<1x1x16x32xf32>
    %132 = vector.shape_cast %131 : vector<1x1x16x32xf32> to vector<16x32xf32>
    %133 = arith.truncf %130 : vector<32x16xf32> to vector<32x16xbf16>
    %134 = arith.truncf %132 : vector<16x32xf32> to vector<16x32xbf16>
    %cst_87 = arith.constant dense<0.000000e+00> : vector<32x32xf32>
    %135 = tpu.matmul %133, %134, %cst_87 {dimension_numbers = #tpu.dot_dimension_numbers<[1], [0], [0], [1], [0, 0, 1, 1], [], []>} : vector<32x16xbf16>, vector<16x32xbf16>, vector<32x32xf32> -> vector<32x32xf32>
    %136 = arith.addf %83, %135 : vector<32x32xf32>
    %c0_88 = arith.constant 0 : index
    %c0_89 = arith.constant 0 : index
    %c0_90 = arith.constant 0 : index
    %137 = vector.load %arg9[%c0_88, %c0_89, %c0_90] : memref<2x1x32xf32, #tpu.memory_space<vmem>>, vector<1x1x32xf32>
    %138 = vector.shape_cast %137 : vector<1x1x32xf32> to vector<1x32xf32>
    %139 = vector.broadcast %138 : vector<1x32xf32> to vector<32x32xf32>
    %140 = arith.addf %136, %139 : vector<32x32xf32>
    %141 = arith.addf %140, %23 : vector<32x32xf32>
    %c0_91 = arith.constant 0 : index
    %c0_92 = arith.constant 0 : index
    %c0_93 = arith.constant 0 : index
    %142 = vector.load %arg14[%c0_91, %c0_92, %c0_93] : memref<2x1x32xf32, #tpu.memory_space<vmem>>, vector<1x1x32xf32>
    %143 = vector.shape_cast %142 : vector<1x1x32xf32> to vector<1x32xf32>
    %c0_94 = arith.constant 0 : index
    %c0_95 = arith.constant 0 : index
    %c0_96 = arith.constant 0 : index
    %144 = vector.load %arg15[%c0_94, %c0_95, %c0_96] : memref<2x1x32xf32, #tpu.memory_space<vmem>>, vector<1x1x32xf32>
    %145 = vector.shape_cast %144 : vector<1x1x32xf32> to vector<1x32xf32>
    %cst_97 = arith.constant dense<0.000000e+00> : vector<32xf32>
    %146 = vector.multi_reduction <add>, %141, %cst_97 [1] : vector<32x32xf32> to vector<32xf32>
    %147 = vector.shape_cast %146 : vector<32xf32> to vector<32x1xf32>
    %cst_98 = arith.constant 3.200000e+01 : f32
    %148 = vector.broadcast %cst_98 : f32 to vector<32x1xf32>
    %149 = arith.divf %147, %148 : vector<32x1xf32>
    %150 = vector.broadcast %149 : vector<32x1xf32> to vector<32x32xf32>
    %151 = arith.subf %141, %150 : vector<32x32xf32>
    %152 = arith.mulf %151, %151 : vector<32x32xf32>
    %cst_99 = arith.constant dense<0.000000e+00> : vector<32xf32>
    %153 = vector.multi_reduction <add>, %152, %cst_99 [1] : vector<32x32xf32> to vector<32xf32>
    %154 = vector.shape_cast %153 : vector<32xf32> to vector<32x1xf32>
    %cst_100 = arith.constant 3.200000e+01 : f32
    %155 = vector.broadcast %cst_100 : f32 to vector<32x1xf32>
    %156 = arith.divf %154, %155 : vector<32x1xf32>
    %cst_101 = arith.constant 9.99999996E-13 : f32
    %157 = vector.broadcast %cst_101 : f32 to vector<32x1xf32>
    %158 = arith.addf %156, %157 : vector<32x1xf32>
    %159 = math.rsqrt %158 : vector<32x1xf32>
    %160 = vector.broadcast %159 : vector<32x1xf32> to vector<32x32xf32>
    %161 = arith.mulf %151, %160 : vector<32x32xf32>
    %162 = vector.broadcast %143 : vector<1x32xf32> to vector<32x32xf32>
    %163 = arith.mulf %161, %162 : vector<32x32xf32>
    %164 = vector.broadcast %145 : vector<1x32xf32> to vector<32x32xf32>
    %165 = arith.addf %163, %164 : vector<32x32xf32>
    %c0_102 = arith.constant 0 : index
    %c0_103 = arith.constant 0 : index
    %c0_104 = arith.constant 0 : index
    %166 = vector.load %arg10[%c0_102, %c0_103, %c0_104] : memref<2x32x64xf32, #tpu.memory_space<vmem>>, vector<1x32x64xf32>
    %167 = vector.shape_cast %166 : vector<1x32x64xf32> to vector<32x64xf32>
    %168 = arith.truncf %165 : vector<32x32xf32> to vector<32x32xbf16>
    %169 = arith.truncf %167 : vector<32x64xf32> to vector<32x64xbf16>
    %cst_105 = arith.constant dense<0.000000e+00> : vector<32x64xf32>
    %170 = tpu.matmul %168, %169, %cst_105 {dimension_numbers = #tpu.dot_dimension_numbers<[1], [0], [0], [1], [0, 0, 1, 1], [], []>} : vector<32x32xbf16>, vector<32x64xbf16>, vector<32x64xf32> -> vector<32x64xf32>
    %c0_106 = arith.constant 0 : index
    %c0_107 = arith.constant 0 : index
    %c0_108 = arith.constant 0 : index
    %171 = vector.load %arg11[%c0_106, %c0_107, %c0_108] : memref<2x1x64xf32, #tpu.memory_space<vmem>>, vector<1x1x64xf32>
    %172 = vector.shape_cast %171 : vector<1x1x64xf32> to vector<1x64xf32>
    %173 = vector.broadcast %172 : vector<1x64xf32> to vector<32x64xf32>
    %174 = arith.addf %170, %173 : vector<32x64xf32>
    %175 = arith.mulf %174, %174 : vector<32x64xf32>
    %176 = arith.mulf %174, %175 : vector<32x64xf32>
    %cst_109 = arith.constant 4.471500e-02 : f32
    %177 = vector.broadcast %cst_109 : f32 to vector<32x64xf32>
    %178 = arith.mulf %177, %176 : vector<32x64xf32>
    %179 = arith.addf %174, %178 : vector<32x64xf32>
    %cst_110 = arith.constant 0.797884583 : f32
    %180 = vector.broadcast %cst_110 : f32 to vector<32x64xf32>
    %181 = arith.mulf %180, %179 : vector<32x64xf32>
    %182 = math.tanh %181 : vector<32x64xf32>
    %cst_111 = arith.constant 1.000000e+00 : f32
    %183 = vector.broadcast %cst_111 : f32 to vector<32x64xf32>
    %184 = arith.addf %183, %182 : vector<32x64xf32>
    %cst_112 = arith.constant 5.000000e-01 : f32
    %185 = vector.broadcast %cst_112 : f32 to vector<32x64xf32>
    %186 = arith.mulf %185, %184 : vector<32x64xf32>
    %187 = arith.mulf %174, %186 : vector<32x64xf32>
    %c0_113 = arith.constant 0 : index
    %c0_114 = arith.constant 0 : index
    %c0_115 = arith.constant 0 : index
    %188 = vector.load %arg12[%c0_113, %c0_114, %c0_115] : memref<2x64x32xf32, #tpu.memory_space<vmem>>, vector<1x64x32xf32>
    %189 = vector.shape_cast %188 : vector<1x64x32xf32> to vector<64x32xf32>
    %190 = arith.truncf %187 : vector<32x64xf32> to vector<32x64xbf16>
    %191 = arith.truncf %189 : vector<64x32xf32> to vector<64x32xbf16>
    %cst_116 = arith.constant dense<0.000000e+00> : vector<32x32xf32>
    %192 = tpu.matmul %190, %191, %cst_116 {dimension_numbers = #tpu.dot_dimension_numbers<[1], [0], [0], [1], [0, 0, 1, 1], [], []>} : vector<32x64xbf16>, vector<64x32xbf16>, vector<32x32xf32> -> vector<32x32xf32>
    %c0_117 = arith.constant 0 : index
    %c0_118 = arith.constant 0 : index
    %c0_119 = arith.constant 0 : index
    %193 = vector.load %arg13[%c0_117, %c0_118, %c0_119] : memref<2x1x32xf32, #tpu.memory_space<vmem>>, vector<1x1x32xf32>
    %194 = vector.shape_cast %193 : vector<1x1x32xf32> to vector<1x32xf32>
    %195 = vector.broadcast %194 : vector<1x32xf32> to vector<32x32xf32>
    %196 = arith.addf %192, %195 : vector<32x32xf32>
    %197 = arith.addf %196, %165 : vector<32x32xf32>
    %c0_120 = arith.constant 0 : index
    %c0_121 = arith.constant 0 : index
    %c0_122 = arith.constant 0 : index
    %198 = vector.load %arg16[%c0_120, %c0_121, %c0_122] : memref<2x1x32xf32, #tpu.memory_space<vmem>>, vector<1x1x32xf32>
    %199 = vector.shape_cast %198 : vector<1x1x32xf32> to vector<1x32xf32>
    %c0_123 = arith.constant 0 : index
    %c0_124 = arith.constant 0 : index
    %c0_125 = arith.constant 0 : index
    %200 = vector.load %arg17[%c0_123, %c0_124, %c0_125] : memref<2x1x32xf32, #tpu.memory_space<vmem>>, vector<1x1x32xf32>
    %201 = vector.shape_cast %200 : vector<1x1x32xf32> to vector<1x32xf32>
    %cst_126 = arith.constant dense<0.000000e+00> : vector<32xf32>
    %202 = vector.multi_reduction <add>, %197, %cst_126 [1] : vector<32x32xf32> to vector<32xf32>
    %203 = vector.shape_cast %202 : vector<32xf32> to vector<32x1xf32>
    %cst_127 = arith.constant 3.200000e+01 : f32
    %204 = vector.broadcast %cst_127 : f32 to vector<32x1xf32>
    %205 = arith.divf %203, %204 : vector<32x1xf32>
    %206 = vector.broadcast %205 : vector<32x1xf32> to vector<32x32xf32>
    %207 = arith.subf %197, %206 : vector<32x32xf32>
    %208 = arith.mulf %207, %207 : vector<32x32xf32>
    %cst_128 = arith.constant dense<0.000000e+00> : vector<32xf32>
    %209 = vector.multi_reduction <add>, %208, %cst_128 [1] : vector<32x32xf32> to vector<32xf32>
    %210 = vector.shape_cast %209 : vector<32xf32> to vector<32x1xf32>
    %cst_129 = arith.constant 3.200000e+01 : f32
    %211 = vector.broadcast %cst_129 : f32 to vector<32x1xf32>
    %212 = arith.divf %210, %211 : vector<32x1xf32>
    %cst_130 = arith.constant 9.99999996E-13 : f32
    %213 = vector.broadcast %cst_130 : f32 to vector<32x1xf32>
    %214 = arith.addf %212, %213 : vector<32x1xf32>
    %215 = math.rsqrt %214 : vector<32x1xf32>
    %216 = vector.broadcast %215 : vector<32x1xf32> to vector<32x32xf32>
    %217 = arith.mulf %207, %216 : vector<32x32xf32>
    %218 = vector.broadcast %199 : vector<1x32xf32> to vector<32x32xf32>
    %219 = arith.mulf %217, %218 : vector<32x32xf32>
    %220 = vector.broadcast %201 : vector<1x32xf32> to vector<32x32xf32>
    %221 = arith.addf %219, %220 : vector<32x32xf32>
    %cst_131 = arith.constant 0.000000e+00 : f32
    %222 = vector.broadcast %cst_131 : f32 to vector<32x32xf32>
    %c1_132 = arith.constant 1 : index
    %c0_133 = arith.constant 0 : index
    %c0_134 = arith.constant 0 : index
    %c0_135 = arith.constant 0 : index
    %223 = vector.load %arg6[%c1_132, %c0_133, %c0_134, %c0_135] : memref<2x6x32x16xf32, #tpu.memory_space<vmem>>, vector<1x1x32x16xf32>
    %224 = vector.shape_cast %223 : vector<1x1x32x16xf32> to vector<32x16xf32>
    %225 = arith.truncf %221 : vector<32x32xf32> to vector<32x32xbf16>
    %226 = arith.truncf %224 : vector<32x16xf32> to vector<32x16xbf16>
    %cst_136 = arith.constant dense<0.000000e+00> : vector<32x16xf32>
    %227 = tpu.matmul %225, %226, %cst_136 {dimension_numbers = #tpu.dot_dimension_numbers<[1], [0], [0], [1], [0, 0, 1, 1], [], []>} : vector<32x32xbf16>, vector<32x16xbf16>, vector<32x16xf32> -> vector<32x16xf32>
    %c1_137 = arith.constant 1 : index
    %c0_138 = arith.constant 0 : index
    %c0_139 = arith.constant 0 : index
    %c0_140 = arith.constant 0 : index
    %228 = vector.load %arg7[%c1_137, %c0_138, %c0_139, %c0_140] : memref<2x6x1x16xf32, #tpu.memory_space<vmem>>, vector<1x1x1x16xf32>
    %229 = vector.shape_cast %228 : vector<1x1x1x16xf32> to vector<1x16xf32>
    %230 = vector.broadcast %229 : vector<1x16xf32> to vector<32x16xf32>
    %231 = arith.addf %227, %230 : vector<32x16xf32>
    %c1_141 = arith.constant 1 : index
    %c2_142 = arith.constant 2 : index
    %c0_143 = arith.constant 0 : index
    %c0_144 = arith.constant 0 : index
    %232 = vector.load %arg6[%c1_141, %c2_142, %c0_143, %c0_144] : memref<2x6x32x16xf32, #tpu.memory_space<vmem>>, vector<1x1x32x16xf32>
    %233 = vector.shape_cast %232 : vector<1x1x32x16xf32> to vector<32x16xf32>
    %234 = arith.truncf %221 : vector<32x32xf32> to vector<32x32xbf16>
    %235 = arith.truncf %233 : vector<32x16xf32> to vector<32x16xbf16>
    %cst_145 = arith.constant dense<0.000000e+00> : vector<32x16xf32>
    %236 = tpu.matmul %234, %235, %cst_145 {dimension_numbers = #tpu.dot_dimension_numbers<[1], [0], [0], [1], [0, 0, 1, 1], [], []>} : vector<32x32xbf16>, vector<32x16xbf16>, vector<32x16xf32> -> vector<32x16xf32>
    %c1_146 = arith.constant 1 : index
    %c2_147 = arith.constant 2 : index
    %c0_148 = arith.constant 0 : index
    %c0_149 = arith.constant 0 : index
    %237 = vector.load %arg7[%c1_146, %c2_147, %c0_148, %c0_149] : memref<2x6x1x16xf32, #tpu.memory_space<vmem>>, vector<1x1x1x16xf32>
    %238 = vector.shape_cast %237 : vector<1x1x1x16xf32> to vector<1x16xf32>
    %239 = vector.broadcast %238 : vector<1x16xf32> to vector<32x16xf32>
    %240 = arith.addf %236, %239 : vector<32x16xf32>
    %c1_150 = arith.constant 1 : index
    %c4_151 = arith.constant 4 : index
    %c0_152 = arith.constant 0 : index
    %c0_153 = arith.constant 0 : index
    %241 = vector.load %arg6[%c1_150, %c4_151, %c0_152, %c0_153] : memref<2x6x32x16xf32, #tpu.memory_space<vmem>>, vector<1x1x32x16xf32>
    %242 = vector.shape_cast %241 : vector<1x1x32x16xf32> to vector<32x16xf32>
    %243 = arith.truncf %221 : vector<32x32xf32> to vector<32x32xbf16>
    %244 = arith.truncf %242 : vector<32x16xf32> to vector<32x16xbf16>
    %cst_154 = arith.constant dense<0.000000e+00> : vector<32x16xf32>
    %245 = tpu.matmul %243, %244, %cst_154 {dimension_numbers = #tpu.dot_dimension_numbers<[1], [0], [0], [1], [0, 0, 1, 1], [], []>} : vector<32x32xbf16>, vector<32x16xbf16>, vector<32x16xf32> -> vector<32x16xf32>
    %c1_155 = arith.constant 1 : index
    %c4_156 = arith.constant 4 : index
    %c0_157 = arith.constant 0 : index
    %c0_158 = arith.constant 0 : index
    %246 = vector.load %arg7[%c1_155, %c4_156, %c0_157, %c0_158] : memref<2x6x1x16xf32, #tpu.memory_space<vmem>>, vector<1x1x1x16xf32>
    %247 = vector.shape_cast %246 : vector<1x1x1x16xf32> to vector<1x16xf32>
    %248 = vector.broadcast %247 : vector<1x16xf32> to vector<32x16xf32>
    %249 = arith.addf %245, %248 : vector<32x16xf32>
    %250 = vector.shape_cast %231 : vector<32x16xf32> to vector<4x8x16xf32>
    %251 = vector.shape_cast %240 : vector<32x16xf32> to vector<4x8x16xf32>
    %252 = vector.shape_cast %249 : vector<32x16xf32> to vector<4x8x16xf32>
    "tpu.trace_start"() <{level = 10 : i32, message = "bqd,bkd->bqk"}> : () -> ()
    %cst_159 = arith.constant dense<0.000000e+00> : vector<4x8x8xf32>
    %253 = tpu.matmul %250, %251, %cst_159 {dimension_numbers = #tpu.dot_dimension_numbers<[2], [2], [1], [1], [0, 0, 0, 1, 1, 1], [0], [0]>} : vector<4x8x16xf32>, vector<4x8x16xf32>, vector<4x8x8xf32> -> vector<4x8x8xf32>
    "tpu.trace_stop"() : () -> ()
    %cst_160 = arith.constant 2.500000e-01 : f32
    %254 = vector.broadcast %cst_160 : f32 to vector<4x8x8xf32>
    %255 = arith.mulf %253, %254 : vector<4x8x8xf32>
    %256 = vector.broadcast %29 : vector<4x1x8xf32> to vector<4x8x8xf32>
    %257 = arith.addf %255, %256 : vector<4x8x8xf32>
    %cst_161 = arith.constant dense<0xFF800000> : vector<4x8xf32>
    %258 = vector.multi_reduction <maximumf>, %257, %cst_161 [2] : vector<4x8x8xf32> to vector<4x8xf32>
    %259 = vector.shape_cast %258 : vector<4x8xf32> to vector<4x8x1xf32>
    %260 = vector.broadcast %259 : vector<4x8x1xf32> to vector<4x8x8xf32>
    %261 = arith.subf %257, %260 : vector<4x8x8xf32>
    %262 = math.exp %261 : vector<4x8x8xf32>
    %cst_162 = arith.constant dense<0.000000e+00> : vector<4x8xf32>
    %263 = vector.multi_reduction <add>, %262, %cst_162 [2] : vector<4x8x8xf32> to vector<4x8xf32>
    %264 = vector.shape_cast %263 : vector<4x8xf32> to vector<4x8x1xf32>
    %265 = tpu.reciprocal %264 {approx = true} : vector<4x8x1xf32> -> vector<4x8x1xf32>
    %266 = vector.broadcast %265 : vector<4x8x1xf32> to vector<4x8x8xf32>
    %267 = arith.mulf %262, %266 : vector<4x8x8xf32>
    "tpu.trace_start"() <{level = 10 : i32, message = "bqk,bkd->bqd"}> : () -> ()
    %cst_163 = arith.constant dense<0.000000e+00> : vector<4x8x16xf32>
    %268 = tpu.matmul %267, %252, %cst_163 {dimension_numbers = #tpu.dot_dimension_numbers<[2], [1], [1], [2], [0, 0, 0, 1, 1, 2], [0], [0]>} : vector<4x8x8xf32>, vector<4x8x16xf32>, vector<4x8x16xf32> -> vector<4x8x16xf32>
    "tpu.trace_stop"() : () -> ()
    %269 = vector.shape_cast %268 : vector<4x8x16xf32> to vector<32x16xf32>
    %c1_164 = arith.constant 1 : index
    %c0_165 = arith.constant 0 : index
    %c0_166 = arith.constant 0 : index
    %c0_167 = arith.constant 0 : index
    %270 = vector.load %arg8[%c1_164, %c0_165, %c0_166, %c0_167] : memref<2x2x16x32xf32, #tpu.memory_space<vmem>>, vector<1x1x16x32xf32>
    %271 = vector.shape_cast %270 : vector<1x1x16x32xf32> to vector<16x32xf32>
    %272 = arith.truncf %269 : vector<32x16xf32> to vector<32x16xbf16>
    %273 = arith.truncf %271 : vector<16x32xf32> to vector<16x32xbf16>
    %cst_168 = arith.constant dense<0.000000e+00> : vector<32x32xf32>
    %274 = tpu.matmul %272, %273, %cst_168 {dimension_numbers = #tpu.dot_dimension_numbers<[1], [0], [0], [1], [0, 0, 1, 1], [], []>} : vector<32x16xbf16>, vector<16x32xbf16>, vector<32x32xf32> -> vector<32x32xf32>
    %275 = arith.addf %222, %274 : vector<32x32xf32>
    %c1_169 = arith.constant 1 : index
    %c1_170 = arith.constant 1 : index
    %c0_171 = arith.constant 0 : index
    %c0_172 = arith.constant 0 : index
    %276 = vector.load %arg6[%c1_169, %c1_170, %c0_171, %c0_172] : memref<2x6x32x16xf32, #tpu.memory_space<vmem>>, vector<1x1x32x16xf32>
    %277 = vector.shape_cast %276 : vector<1x1x32x16xf32> to vector<32x16xf32>
    %278 = arith.truncf %221 : vector<32x32xf32> to vector<32x32xbf16>
    %279 = arith.truncf %277 : vector<32x16xf32> to vector<32x16xbf16>
    %cst_173 = arith.constant dense<0.000000e+00> : vector<32x16xf32>
    %280 = tpu.matmul %278, %279, %cst_173 {dimension_numbers = #tpu.dot_dimension_numbers<[1], [0], [0], [1], [0, 0, 1, 1], [], []>} : vector<32x32xbf16>, vector<32x16xbf16>, vector<32x16xf32> -> vector<32x16xf32>
    %c1_174 = arith.constant 1 : index
    %c1_175 = arith.constant 1 : index
    %c0_176 = arith.constant 0 : index
    %c0_177 = arith.constant 0 : index
    %281 = vector.load %arg7[%c1_174, %c1_175, %c0_176, %c0_177] : memref<2x6x1x16xf32, #tpu.memory_space<vmem>>, vector<1x1x1x16xf32>
    %282 = vector.shape_cast %281 : vector<1x1x1x16xf32> to vector<1x16xf32>
    %283 = vector.broadcast %282 : vector<1x16xf32> to vector<32x16xf32>
    %284 = arith.addf %280, %283 : vector<32x16xf32>
    %c1_178 = arith.constant 1 : index
    %c3_179 = arith.constant 3 : index
    %c0_180 = arith.constant 0 : index
    %c0_181 = arith.constant 0 : index
    %285 = vector.load %arg6[%c1_178, %c3_179, %c0_180, %c0_181] : memref<2x6x32x16xf32, #tpu.memory_space<vmem>>, vector<1x1x32x16xf32>
    %286 = vector.shape_cast %285 : vector<1x1x32x16xf32> to vector<32x16xf32>
    %287 = arith.truncf %221 : vector<32x32xf32> to vector<32x32xbf16>
    %288 = arith.truncf %286 : vector<32x16xf32> to vector<32x16xbf16>
    %cst_182 = arith.constant dense<0.000000e+00> : vector<32x16xf32>
    %289 = tpu.matmul %287, %288, %cst_182 {dimension_numbers = #tpu.dot_dimension_numbers<[1], [0], [0], [1], [0, 0, 1, 1], [], []>} : vector<32x32xbf16>, vector<32x16xbf16>, vector<32x16xf32> -> vector<32x16xf32>
    %c1_183 = arith.constant 1 : index
    %c3_184 = arith.constant 3 : index
    %c0_185 = arith.constant 0 : index
    %c0_186 = arith.constant 0 : index
    %290 = vector.load %arg7[%c1_183, %c3_184, %c0_185, %c0_186] : memref<2x6x1x16xf32, #tpu.memory_space<vmem>>, vector<1x1x1x16xf32>
    %291 = vector.shape_cast %290 : vector<1x1x1x16xf32> to vector<1x16xf32>
    %292 = vector.broadcast %291 : vector<1x16xf32> to vector<32x16xf32>
    %293 = arith.addf %289, %292 : vector<32x16xf32>
    %c1_187 = arith.constant 1 : index
    %c5_188 = arith.constant 5 : index
    %c0_189 = arith.constant 0 : index
    %c0_190 = arith.constant 0 : index
    %294 = vector.load %arg6[%c1_187, %c5_188, %c0_189, %c0_190] : memref<2x6x32x16xf32, #tpu.memory_space<vmem>>, vector<1x1x32x16xf32>
    %295 = vector.shape_cast %294 : vector<1x1x32x16xf32> to vector<32x16xf32>
    %296 = arith.truncf %221 : vector<32x32xf32> to vector<32x32xbf16>
    %297 = arith.truncf %295 : vector<32x16xf32> to vector<32x16xbf16>
    %cst_191 = arith.constant dense<0.000000e+00> : vector<32x16xf32>
    %298 = tpu.matmul %296, %297, %cst_191 {dimension_numbers = #tpu.dot_dimension_numbers<[1], [0], [0], [1], [0, 0, 1, 1], [], []>} : vector<32x32xbf16>, vector<32x16xbf16>, vector<32x16xf32> -> vector<32x16xf32>
    %c1_192 = arith.constant 1 : index
    %c5_193 = arith.constant 5 : index
    %c0_194 = arith.constant 0 : index
    %c0_195 = arith.constant 0 : index
    %299 = vector.load %arg7[%c1_192, %c5_193, %c0_194, %c0_195] : memref<2x6x1x16xf32, #tpu.memory_space<vmem>>, vector<1x1x1x16xf32>
    %300 = vector.shape_cast %299 : vector<1x1x1x16xf32> to vector<1x16xf32>
    %301 = vector.broadcast %300 : vector<1x16xf32> to vector<32x16xf32>
    %302 = arith.addf %298, %301 : vector<32x16xf32>
    %303 = vector.shape_cast %284 : vector<32x16xf32> to vector<4x8x16xf32>
    %304 = vector.shape_cast %293 : vector<32x16xf32> to vector<4x8x16xf32>
    %305 = vector.shape_cast %302 : vector<32x16xf32> to vector<4x8x16xf32>
    "tpu.trace_start"() <{level = 10 : i32, message = "bqd,bkd->bqk"}> : () -> ()
    %cst_196 = arith.constant dense<0.000000e+00> : vector<4x8x8xf32>
    %306 = tpu.matmul %303, %304, %cst_196 {dimension_numbers = #tpu.dot_dimension_numbers<[2], [2], [1], [1], [0, 0, 0, 1, 1, 1], [0], [0]>} : vector<4x8x16xf32>, vector<4x8x16xf32>, vector<4x8x8xf32> -> vector<4x8x8xf32>
    "tpu.trace_stop"() : () -> ()
    %cst_197 = arith.constant 2.500000e-01 : f32
    %307 = vector.broadcast %cst_197 : f32 to vector<4x8x8xf32>
    %308 = arith.mulf %306, %307 : vector<4x8x8xf32>
    %309 = vector.broadcast %29 : vector<4x1x8xf32> to vector<4x8x8xf32>
    %310 = arith.addf %308, %309 : vector<4x8x8xf32>
    %cst_198 = arith.constant dense<0xFF800000> : vector<4x8xf32>
    %311 = vector.multi_reduction <maximumf>, %310, %cst_198 [2] : vector<4x8x8xf32> to vector<4x8xf32>
    %312 = vector.shape_cast %311 : vector<4x8xf32> to vector<4x8x1xf32>
    %313 = vector.broadcast %312 : vector<4x8x1xf32> to vector<4x8x8xf32>
    %314 = arith.subf %310, %313 : vector<4x8x8xf32>
    %315 = math.exp %314 : vector<4x8x8xf32>
    %cst_199 = arith.constant dense<0.000000e+00> : vector<4x8xf32>
    %316 = vector.multi_reduction <add>, %315, %cst_199 [2] : vector<4x8x8xf32> to vector<4x8xf32>
    %317 = vector.shape_cast %316 : vector<4x8xf32> to vector<4x8x1xf32>
    %318 = tpu.reciprocal %317 {approx = true} : vector<4x8x1xf32> -> vector<4x8x1xf32>
    %319 = vector.broadcast %318 : vector<4x8x1xf32> to vector<4x8x8xf32>
    %320 = arith.mulf %315, %319 : vector<4x8x8xf32>
    "tpu.trace_start"() <{level = 10 : i32, message = "bqk,bkd->bqd"}> : () -> ()
    %cst_200 = arith.constant dense<0.000000e+00> : vector<4x8x16xf32>
    %321 = tpu.matmul %320, %305, %cst_200 {dimension_numbers = #tpu.dot_dimension_numbers<[2], [1], [1], [2], [0, 0, 0, 1, 1, 2], [0], [0]>} : vector<4x8x8xf32>, vector<4x8x16xf32>, vector<4x8x16xf32> -> vector<4x8x16xf32>
    "tpu.trace_stop"() : () -> ()
    %322 = vector.shape_cast %321 : vector<4x8x16xf32> to vector<32x16xf32>
    %c1_201 = arith.constant 1 : index
    %c1_202 = arith.constant 1 : index
    %c0_203 = arith.constant 0 : index
    %c0_204 = arith.constant 0 : index
    %323 = vector.load %arg8[%c1_201, %c1_202, %c0_203, %c0_204] : memref<2x2x16x32xf32, #tpu.memory_space<vmem>>, vector<1x1x16x32xf32>
    %324 = vector.shape_cast %323 : vector<1x1x16x32xf32> to vector<16x32xf32>
    %325 = arith.truncf %322 : vector<32x16xf32> to vector<32x16xbf16>
    %326 = arith.truncf %324 : vector<16x32xf32> to vector<16x32xbf16>
    %cst_205 = arith.constant dense<0.000000e+00> : vector<32x32xf32>
    %327 = tpu.matmul %325, %326, %cst_205 {dimension_numbers = #tpu.dot_dimension_numbers<[1], [0], [0], [1], [0, 0, 1, 1], [], []>} : vector<32x16xbf16>, vector<16x32xbf16>, vector<32x32xf32> -> vector<32x32xf32>
    %328 = arith.addf %275, %327 : vector<32x32xf32>
    %c1_206 = arith.constant 1 : index
    %c0_207 = arith.constant 0 : index
    %c0_208 = arith.constant 0 : index
    %329 = vector.load %arg9[%c1_206, %c0_207, %c0_208] : memref<2x1x32xf32, #tpu.memory_space<vmem>>, vector<1x1x32xf32>
    %330 = vector.shape_cast %329 : vector<1x1x32xf32> to vector<1x32xf32>
    %331 = vector.broadcast %330 : vector<1x32xf32> to vector<32x32xf32>
    %332 = arith.addf %328, %331 : vector<32x32xf32>
    %333 = arith.addf %332, %221 : vector<32x32xf32>
    %c1_209 = arith.constant 1 : index
    %c0_210 = arith.constant 0 : index
    %c0_211 = arith.constant 0 : index
    %334 = vector.load %arg14[%c1_209, %c0_210, %c0_211] : memref<2x1x32xf32, #tpu.memory_space<vmem>>, vector<1x1x32xf32>
    %335 = vector.shape_cast %334 : vector<1x1x32xf32> to vector<1x32xf32>
    %c1_212 = arith.constant 1 : index
    %c0_213 = arith.constant 0 : index
    %c0_214 = arith.constant 0 : index
    %336 = vector.load %arg15[%c1_212, %c0_213, %c0_214] : memref<2x1x32xf32, #tpu.memory_space<vmem>>, vector<1x1x32xf32>
    %337 = vector.shape_cast %336 : vector<1x1x32xf32> to vector<1x32xf32>
    %cst_215 = arith.constant dense<0.000000e+00> : vector<32xf32>
    %338 = vector.multi_reduction <add>, %333, %cst_215 [1] : vector<32x32xf32> to vector<32xf32>
    %339 = vector.shape_cast %338 : vector<32xf32> to vector<32x1xf32>
    %cst_216 = arith.constant 3.200000e+01 : f32
    %340 = vector.broadcast %cst_216 : f32 to vector<32x1xf32>
    %341 = arith.divf %339, %340 : vector<32x1xf32>
    %342 = vector.broadcast %341 : vector<32x1xf32> to vector<32x32xf32>
    %343 = arith.subf %333, %342 : vector<32x32xf32>
    %344 = arith.mulf %343, %343 : vector<32x32xf32>
    %cst_217 = arith.constant dense<0.000000e+00> : vector<32xf32>
    %345 = vector.multi_reduction <add>, %344, %cst_217 [1] : vector<32x32xf32> to vector<32xf32>
    %346 = vector.shape_cast %345 : vector<32xf32> to vector<32x1xf32>
    %cst_218 = arith.constant 3.200000e+01 : f32
    %347 = vector.broadcast %cst_218 : f32 to vector<32x1xf32>
    %348 = arith.divf %346, %347 : vector<32x1xf32>
    %cst_219 = arith.constant 9.99999996E-13 : f32
    %349 = vector.broadcast %cst_219 : f32 to vector<32x1xf32>
    %350 = arith.addf %348, %349 : vector<32x1xf32>
    %351 = math.rsqrt %350 : vector<32x1xf32>
    %352 = vector.broadcast %351 : vector<32x1xf32> to vector<32x32xf32>
    %353 = arith.mulf %343, %352 : vector<32x32xf32>
    %354 = vector.broadcast %335 : vector<1x32xf32> to vector<32x32xf32>
    %355 = arith.mulf %353, %354 : vector<32x32xf32>
    %356 = vector.broadcast %337 : vector<1x32xf32> to vector<32x32xf32>
    %357 = arith.addf %355, %356 : vector<32x32xf32>
    %c1_220 = arith.constant 1 : index
    %c0_221 = arith.constant 0 : index
    %c0_222 = arith.constant 0 : index
    %358 = vector.load %arg10[%c1_220, %c0_221, %c0_222] : memref<2x32x64xf32, #tpu.memory_space<vmem>>, vector<1x32x64xf32>
    %359 = vector.shape_cast %358 : vector<1x32x64xf32> to vector<32x64xf32>
    %360 = arith.truncf %357 : vector<32x32xf32> to vector<32x32xbf16>
    %361 = arith.truncf %359 : vector<32x64xf32> to vector<32x64xbf16>
    %cst_223 = arith.constant dense<0.000000e+00> : vector<32x64xf32>
    %362 = tpu.matmul %360, %361, %cst_223 {dimension_numbers = #tpu.dot_dimension_numbers<[1], [0], [0], [1], [0, 0, 1, 1], [], []>} : vector<32x32xbf16>, vector<32x64xbf16>, vector<32x64xf32> -> vector<32x64xf32>
    %c1_224 = arith.constant 1 : index
    %c0_225 = arith.constant 0 : index
    %c0_226 = arith.constant 0 : index
    %363 = vector.load %arg11[%c1_224, %c0_225, %c0_226] : memref<2x1x64xf32, #tpu.memory_space<vmem>>, vector<1x1x64xf32>
    %364 = vector.shape_cast %363 : vector<1x1x64xf32> to vector<1x64xf32>
    %365 = vector.broadcast %364 : vector<1x64xf32> to vector<32x64xf32>
    %366 = arith.addf %362, %365 : vector<32x64xf32>
    %367 = arith.mulf %366, %366 : vector<32x64xf32>
    %368 = arith.mulf %366, %367 : vector<32x64xf32>
    %cst_227 = arith.constant 4.471500e-02 : f32
    %369 = vector.broadcast %cst_227 : f32 to vector<32x64xf32>
    %370 = arith.mulf %369, %368 : vector<32x64xf32>
    %371 = arith.addf %366, %370 : vector<32x64xf32>
    %cst_228 = arith.constant 0.797884583 : f32
    %372 = vector.broadcast %cst_228 : f32 to vector<32x64xf32>
    %373 = arith.mulf %372, %371 : vector<32x64xf32>
    %374 = math.tanh %373 : vector<32x64xf32>
    %cst_229 = arith.constant 1.000000e+00 : f32
    %375 = vector.broadcast %cst_229 : f32 to vector<32x64xf32>
    %376 = arith.addf %375, %374 : vector<32x64xf32>
    %cst_230 = arith.constant 5.000000e-01 : f32
    %377 = vector.broadcast %cst_230 : f32 to vector<32x64xf32>
    %378 = arith.mulf %377, %376 : vector<32x64xf32>
    %379 = arith.mulf %366, %378 : vector<32x64xf32>
    %c1_231 = arith.constant 1 : index
    %c0_232 = arith.constant 0 : index
    %c0_233 = arith.constant 0 : index
    %380 = vector.load %arg12[%c1_231, %c0_232, %c0_233] : memref<2x64x32xf32, #tpu.memory_space<vmem>>, vector<1x64x32xf32>
    %381 = vector.shape_cast %380 : vector<1x64x32xf32> to vector<64x32xf32>
    %382 = arith.truncf %379 : vector<32x64xf32> to vector<32x64xbf16>
    %383 = arith.truncf %381 : vector<64x32xf32> to vector<64x32xbf16>
    %cst_234 = arith.constant dense<0.000000e+00> : vector<32x32xf32>
    %384 = tpu.matmul %382, %383, %cst_234 {dimension_numbers = #tpu.dot_dimension_numbers<[1], [0], [0], [1], [0, 0, 1, 1], [], []>} : vector<32x64xbf16>, vector<64x32xbf16>, vector<32x32xf32> -> vector<32x32xf32>
    %c1_235 = arith.constant 1 : index
    %c0_236 = arith.constant 0 : index
    %c0_237 = arith.constant 0 : index
    %385 = vector.load %arg13[%c1_235, %c0_236, %c0_237] : memref<2x1x32xf32, #tpu.memory_space<vmem>>, vector<1x1x32xf32>
    %386 = vector.shape_cast %385 : vector<1x1x32xf32> to vector<1x32xf32>
    %387 = vector.broadcast %386 : vector<1x32xf32> to vector<32x32xf32>
    %388 = arith.addf %384, %387 : vector<32x32xf32>
    %389 = arith.addf %388, %357 : vector<32x32xf32>
    %c1_238 = arith.constant 1 : index
    %c0_239 = arith.constant 0 : index
    %c0_240 = arith.constant 0 : index
    %390 = vector.load %arg16[%c1_238, %c0_239, %c0_240] : memref<2x1x32xf32, #tpu.memory_space<vmem>>, vector<1x1x32xf32>
    %391 = vector.shape_cast %390 : vector<1x1x32xf32> to vector<1x32xf32>
    %c1_241 = arith.constant 1 : index
    %c0_242 = arith.constant 0 : index
    %c0_243 = arith.constant 0 : index
    %392 = vector.load %arg17[%c1_241, %c0_242, %c0_243] : memref<2x1x32xf32, #tpu.memory_space<vmem>>, vector<1x1x32xf32>
    %393 = vector.shape_cast %392 : vector<1x1x32xf32> to vector<1x32xf32>
    %cst_244 = arith.constant dense<0.000000e+00> : vector<32xf32>
    %394 = vector.multi_reduction <add>, %389, %cst_244 [1] : vector<32x32xf32> to vector<32xf32>
    %395 = vector.shape_cast %394 : vector<32xf32> to vector<32x1xf32>
    %cst_245 = arith.constant 3.200000e+01 : f32
    %396 = vector.broadcast %cst_245 : f32 to vector<32x1xf32>
    %397 = arith.divf %395, %396 : vector<32x1xf32>
    %398 = vector.broadcast %397 : vector<32x1xf32> to vector<32x32xf32>
    %399 = arith.subf %389, %398 : vector<32x32xf32>
    %400 = arith.mulf %399, %399 : vector<32x32xf32>
    %cst_246 = arith.constant dense<0.000000e+00> : vector<32xf32>
    %401 = vector.multi_reduction <add>, %400, %cst_246 [1] : vector<32x32xf32> to vector<32xf32>
    %402 = vector.shape_cast %401 : vector<32xf32> to vector<32x1xf32>
    %cst_247 = arith.constant 3.200000e+01 : f32
    %403 = vector.broadcast %cst_247 : f32 to vector<32x1xf32>
    %404 = arith.divf %402, %403 : vector<32x1xf32>
    %cst_248 = arith.constant 9.99999996E-13 : f32
    %405 = vector.broadcast %cst_248 : f32 to vector<32x1xf32>
    %406 = arith.addf %404, %405 : vector<32x1xf32>
    %407 = math.rsqrt %406 : vector<32x1xf32>
    %408 = vector.broadcast %407 : vector<32x1xf32> to vector<32x32xf32>
    %409 = arith.mulf %399, %408 : vector<32x32xf32>
    %410 = vector.broadcast %391 : vector<1x32xf32> to vector<32x32xf32>
    %411 = arith.mulf %409, %410 : vector<32x32xf32>
    %412 = vector.broadcast %393 : vector<1x32xf32> to vector<32x32xf32>
    %413 = arith.addf %411, %412 : vector<32x32xf32>
    %414 = vector.shape_cast %413 : vector<32x32xf32> to vector<4x8x32xf32>
    %415 = vector.broadcast %25 : vector<4x8x1xf32> to vector<4x8x32xf32>
    %416 = arith.mulf %414, %415 : vector<4x8x32xf32>
    %cst_249 = arith.constant dense<0.000000e+00> : vector<4x32xf32>
    %417 = vector.multi_reduction <add>, %416, %cst_249 [1] : vector<4x8x32xf32> to vector<4x32xf32>
    %418 = vector.shape_cast %417 : vector<4x32xf32> to vector<4x1x32xf32>
    %cst_250 = arith.constant dense<0.000000e+00> : vector<4x1xf32>
    %419 = vector.multi_reduction <add>, %25, %cst_250 [1] : vector<4x8x1xf32> to vector<4x1xf32>
    %420 = vector.shape_cast %419 : vector<4x1xf32> to vector<4x1x1xf32>
    %cst_251 = arith.constant 9.99999971E-10 : f32
    %421 = vector.broadcast %cst_251 : f32 to vector<4x1x1xf32>
    %422 = arith.maximumf %420, %421 : vector<4x1x1xf32>
    %423 = vector.broadcast %422 : vector<4x1x1xf32> to vector<4x1x32xf32>
    %424 = arith.divf %418, %423 : vector<4x1x32xf32>
    %425 = arith.mulf %424, %424 : vector<4x1x32xf32>
    %cst_252 = arith.constant dense<0.000000e+00> : vector<4x1xf32>
    %426 = vector.multi_reduction <add>, %425, %cst_252 [2] : vector<4x1x32xf32> to vector<4x1xf32>
    %427 = vector.shape_cast %426 : vector<4x1xf32> to vector<4x1x1xf32>
    %cst_253 = arith.constant 1.000000e-24 : f32
    %428 = vector.broadcast %cst_253 : f32 to vector<4x1x1xf32>
    %429 = arith.maximumf %427, %428 : vector<4x1x1xf32>
    %430 = math.rsqrt %429 : vector<4x1x1xf32>
    %431 = vector.broadcast %430 : vector<4x1x1xf32> to vector<4x1x32xf32>
    %432 = arith.mulf %424, %431 : vector<4x1x32xf32>
    %c0_254 = arith.constant 0 : index
    %c0_255 = arith.constant 0 : index
    %c0_256 = arith.constant 0 : index
    %433 = vector.load %arg18[%c0_254, %c0_255, %c0_256] : memref<4x1x32xf32, #tpu.memory_space<vmem>>, vector<4x1x32xf32>
    tpu.vector_store %arg18[%c0_254, %c0_255, %c0_256], %432 {strides = array<i32>} : memref<4x1x32xf32, #tpu.memory_space<vmem>>, vector<4x1x32xf32>,
    return
  }
  func.func @transform_0(%arg0: i32) -> (i32, i32, i32) {
    %c0_i32 = arith.constant 0 : i32
    %c0_i32_0 = arith.constant 0 : i32
    %c0_i32_1 = arith.constant 0 : i32
    return %arg0, %c0_i32, %c0_i32_0 : i32, i32, i32
  }
  func.func @transform_1(%arg0: i32) -> (i32, i32, i32) {
    %c0_i32 = arith.constant 0 : i32
    %c0_i32_0 = arith.constant 0 : i32
    %c0_i32_1 = arith.constant 0 : i32
    return %arg0, %c0_i32, %c0_i32_0 : i32, i32, i32
  }
  func.func @transform_2(%arg0: i32) -> (i32, i32, i32) {
    %c0_i32 = arith.constant 0 : i32
    %c0_i32_0 = arith.constant 0 : i32
    %c0_i32_1 = arith.constant 0 : i32
    return %arg0, %c0_i32, %c0_i32_0 : i32, i32, i32
  }
  func.func @transform_3(%arg0: i32) -> (i32, i32) {
    %c0_i32 = arith.constant 0 : i32
    %c0_i32_0 = arith.constant 0 : i32
    %c0_i32_1 = arith.constant 0 : i32
    return %c0_i32, %c0_i32_0 : i32, i32
  }
  func.func @transform_4(%arg0: i32) -> (i32, i32) {
    %c0_i32 = arith.constant 0 : i32
    %c0_i32_0 = arith.constant 0 : i32
    %c0_i32_1 = arith.constant 0 : i32
    return %c0_i32, %c0_i32_0 : i32, i32
  }
  func.func @transform_5(%arg0: i32) -> (i32, i32, i32, i32) {
    %c0_i32 = arith.constant 0 : i32
    %c0_i32_0 = arith.constant 0 : i32
    %c0_i32_1 = arith.constant 0 : i32
    %c0_i32_2 = arith.constant 0 : i32
    %c0_i32_3 = arith.constant 0 : i32
    return %c0_i32, %c0_i32_0, %c0_i32_1, %c0_i32_2 : i32, i32, i32, i32
  }
  func.func @transform_6(%arg0: i32) -> (i32, i32, i32, i32) {
    %c0_i32 = arith.constant 0 : i32
    %c0_i32_0 = arith.constant 0 : i32
    %c0_i32_1 = arith.constant 0 : i32
    %c0_i32_2 = arith.constant 0 : i32
    %c0_i32_3 = arith.constant 0 : i32
    return %c0_i32, %c0_i32_0, %c0_i32_1, %c0_i32_2 : i32, i32, i32, i32
  }
  func.func @transform_7(%arg0: i32) -> (i32, i32, i32, i32) {
    %c0_i32 = arith.constant 0 : i32
    %c0_i32_0 = arith.constant 0 : i32
    %c0_i32_1 = arith.constant 0 : i32
    %c0_i32_2 = arith.constant 0 : i32
    %c0_i32_3 = arith.constant 0 : i32
    return %c0_i32, %c0_i32_0, %c0_i32_1, %c0_i32_2 : i32, i32, i32, i32
  }
  func.func @transform_8(%arg0: i32) -> (i32, i32, i32) {
    %c0_i32 = arith.constant 0 : i32
    %c0_i32_0 = arith.constant 0 : i32
    %c0_i32_1 = arith.constant 0 : i32
    %c0_i32_2 = arith.constant 0 : i32
    return %c0_i32, %c0_i32_0, %c0_i32_1 : i32, i32, i32
  }
  func.func @transform_9(%arg0: i32) -> (i32, i32, i32) {
    %c0_i32 = arith.constant 0 : i32
    %c0_i32_0 = arith.constant 0 : i32
    %c0_i32_1 = arith.constant 0 : i32
    %c0_i32_2 = arith.constant 0 : i32
    return %c0_i32, %c0_i32_0, %c0_i32_1 : i32, i32, i32
  }
  func.func @transform_10(%arg0: i32) -> (i32, i32, i32) {
    %c0_i32 = arith.constant 0 : i32
    %c0_i32_0 = arith.constant 0 : i32
    %c0_i32_1 = arith.constant 0 : i32
    %c0_i32_2 = arith.constant 0 : i32
    return %c0_i32, %c0_i32_0, %c0_i32_1 : i32, i32, i32
  }
  func.func @transform_11(%arg0: i32) -> (i32, i32, i32) {
    %c0_i32 = arith.constant 0 : i32
    %c0_i32_0 = arith.constant 0 : i32
    %c0_i32_1 = arith.constant 0 : i32
    %c0_i32_2 = arith.constant 0 : i32
    return %c0_i32, %c0_i32_0, %c0_i32_1 : i32, i32, i32
  }
  func.func @transform_12(%arg0: i32) -> (i32, i32, i32) {
    %c0_i32 = arith.constant 0 : i32
    %c0_i32_0 = arith.constant 0 : i32
    %c0_i32_1 = arith.constant 0 : i32
    %c0_i32_2 = arith.constant 0 : i32
    return %c0_i32, %c0_i32_0, %c0_i32_1 : i32, i32, i32
  }
  func.func @transform_13(%arg0: i32) -> (i32, i32, i32) {
    %c0_i32 = arith.constant 0 : i32
    %c0_i32_0 = arith.constant 0 : i32
    %c0_i32_1 = arith.constant 0 : i32
    %c0_i32_2 = arith.constant 0 : i32
    return %c0_i32, %c0_i32_0, %c0_i32_1 : i32, i32, i32
  }
  func.func @transform_14(%arg0: i32) -> (i32, i32, i32) {
    %c0_i32 = arith.constant 0 : i32
    %c0_i32_0 = arith.constant 0 : i32
    %c0_i32_1 = arith.constant 0 : i32
    %c0_i32_2 = arith.constant 0 : i32
    return %c0_i32, %c0_i32_0, %c0_i32_1 : i32, i32, i32
  }
  func.func @transform_15(%arg0: i32) -> (i32, i32, i32) {
    %c0_i32 = arith.constant 0 : i32
    %c0_i32_0 = arith.constant 0 : i32
    %c0_i32_1 = arith.constant 0 : i32
    %c0_i32_2 = arith.constant 0 : i32
    return %c0_i32, %c0_i32_0, %c0_i32_1 : i32, i32, i32
  }
  func.func @transform_16(%arg0: i32) -> (i32, i32, i32) {
    %c0_i32 = arith.constant 0 : i32
    %c0_i32_0 = arith.constant 0 : i32
    %c0_i32_1 = arith.constant 0 : i32
    %c0_i32_2 = arith.constant 0 : i32
    return %c0_i32, %c0_i32_0, %c0_i32_1 : i32, i32, i32
  }
  func.func @transform_17(%arg0: i32) -> (i32, i32, i32) {
    %c0_i32 = arith.constant 0 : i32
    %c0_i32_0 = arith.constant 0 : i32
    %c0_i32_1 = arith.constant 0 : i32
    return %arg0, %c0_i32, %c0_i32_0 : i32, i32, i32
  }
}

</mosaic_0001>

<bundles_post_ra>
// kernel: forward.3
= control target key start
LH: loop header
LB: loop body
LE: loop exit
PB: predicated region body
PF: predicated region fallthrough
CT: control target
= control target key end

     0   :  { %vm23_vm0 = vcmask 48128   ;;  %vm45_vm1 = vcmask 40960   ;;  %s97_s0 = inlined_call_operand.vmem [shape: f32[32,6], index: 0, kind: input, shape index: {}]   ;;  %s98_s1 = inlined_call_operand.vmem [shape: f32[32,6], index: 1, kind: input, shape index: {}]   ;;  %s99_s2 = inlined_call_operand.vmem [shape: f32[1,6], index: 2, kind: output, shape index: {}]  }
   0x1   :  { %v11_v0 = vld [vmem:[%s97_s0] sm:$0xff]  ;;  %v12_v1 = vld [vmem:[%s97_s0 + $0x8] sm:$0xff]  ;;  %v13_v2 = vld [vmem:[%s97_s0 + $0x10] sm:$0xff] }
   0x2   :  { %v14_v3 = vld [vmem:[%s97_s0 + $0x18] sm:$0xff]  ;;  %v15_v4 = vld [vmem:[%s98_s1] sm:$0xff]  ;;  %v16_v5 = vld [vmem:[%s98_s1 + $0x8] sm:$0xff] }
   0x3   :  { %v17_v6 = vld [vmem:[%s98_s1 + $0x10] sm:$0xff]  ;;  %v18_v7 = vld [vmem:[%s98_s1 + $0x18] sm:$0xff]  ;;  %v19_v8 = vmul.f32 %v15_v4, %v11_v0  ;;  %v20_v9 = vmul.f32 %v16_v5, %v12_v1 }
   0x4   :  { %v21_v10 = vmul.f32 %v17_v6, %v13_v2  ;;  %v22_v11 = vmul.f32 %v18_v7, %v14_v3 }
   0x5   :  { %v24_v12 = vsel %vm23_vm0, %v19_v8, 0.0  ;;  %v25_v13 = vsel %vm23_vm0, %v20_v9, 0.0 }
   0x6   :  { %v26_v14 = vadd.f32 %v25_v13, %v24_v12  ;;  %v27_v15 = vsel %vm23_vm0, %v21_v10, 0.0  ;;  %v29_v16 = vsel %vm23_vm0, %v22_v11, 0.0 }
   0x8   :  { %v28_v17 = vadd.f32 %v27_v15, %v26_v14 }
   0xa   :  { %v30_v18 = vadd.f32 %v29_v16, %v28_v17 }
   0xc   :  { %v31_v19 = vrot.slane %v30_v18, 4 }
   0xe   :  { %v32_v20 = vadd.f32 %v31_v19, %v30_v18 }
  0x10   :  { %v33_v21 = vrot.slane %v32_v20, 2 }
  0x12   :  { %v34_v22 = vadd.f32 %v33_v21, %v32_v20 }
  0x14   :  { %v35_v23 = vrot.slane %v34_v22, 1 }
  0x16   :  { %v36_v24 = vadd.f32 %v35_v23, %v34_v22 }
  0x18   :  { %v37_v25 = vsub.f32 0.0, %v36_v24 }
  0x1a   :  { %v38_v26 = vmul.f32 1.442695, %v37_v25 }
  0x1c   :  { %51 = vpow2.f32 %v38_v26 }
  0x26   :  { %v52_v27 = vpop.eup %51 }
  0x27   :  { %v40_v28 = vadd.f32 1.0, %v52_v27 }
  0x29   :  { %53 = vrcp.f32 %v40_v28 }
  0x33   :  { %v54_v29 = vpop.eup %53 }
  0x34   :  { %v43_v30 = vmax.f32 %v54_v29, 1e-08 }
  0x36   :  { %v44_v31 = vmin.f32 %v43_v30, 1.0 }
  0x38   :  { %46 = vst.msk [vmem:[%s99_s2] sm:$0x1] %vm45_vm1, %v44_v31 }

// kernel: forward.2
= control target key start
LH: loop header
LB: loop body
LE: loop exit
PB: predicated region body
PF: predicated region fallthrough
CT: control target
= control target key end

     0   :  { %s6187_s24 = smov 0   ;;  %s7031_s0 = inlined_call_operand.vmem [shape: f32[8,8,32], index: 0, kind: input, shape index: {}]   ;;  %s7032_s1 = inlined_call_operand.vmem [shape: f32[8,1,8], index: 1, kind: input, shape index: {}]   ;;  %s7033_s2 = inlined_call_operand.vmem [shape: f32[8,8,1], index: 2, kind: input, shape index: {}]   ;;  %s7034_s3 = inlined_call_operand.vmem [shape: f32[1,32], index: 3, kind: input, shape index: {}]   ;;  %s7035_s4 = inlined_call_operand.vmem [shape: f32[1,32], index: 4, kind: input, shape index: {}]   ;;  %s7036_s5 = inlined_call_operand.vmem [shape: f32[2,6,32,16], index: 5, kind: input, shape index: {}]   ;;  %s7037_s6 = inlined_call_operand.vmem [shape: f32[2,6,1,16], index: 6, kind: input, shape index: {}]   ;;  %s7038_s7 = inlined_call_operand.vmem [shape: f32[2,2,16,32], index: 7, kind: input, shape index: {}]   ;;  %s7039_s8 = inlined_call_operand.vmem [shape: f32[2,1,32], index: 8, kind: input, shape index: {}]   ;;  %s7040_s9 = inlined_call_operand.vmem [shape: f32[2,32,64], index: 9, kind: input, shape index: {}]   ;;  %s7041_s10 = inlined_call_operand.vmem [shape: f32[2,1,64], index: 10, kind: input, shape index: {}]   ;;  %s7042_s11 = inlined_call_operand.vmem [shape: f32[2,64,32], index: 11, kind: input, shape index: {}]   ;;  %s7043_s12 = inlined_call_operand.vmem [shape: f32[2,1,32], index: 12, kind: input, shape index: {}]   ;;  %s7044_s13 = inlined_call_operand.vmem [shape: f32[2,1,32], index: 13, kind: input, shape index: {}]   ;;  %s7045_s14 = inlined_call_operand.vmem [shape: f32[2,1,32], index: 14, kind: input, shape index: {}]   ;;  %s7046_s15 = inlined_call_operand.vmem [shape: f32[2,1,32], index: 15, kind: input, shape index: {}]   ;;  %s7047_s16 = inlined_call_operand.vmem [shape: f32[2,1,32], index: 16, kind: input, shape index: {}]   ;;  %s7048_s17 = inlined_call_operand.vmem [shape: f32[8,1,32], index: 17, kind: output, shape index: {}]  }
   0x1   :  { %7049 = sst [smem:[#allocation2_spill]] %s7031_s0 }
   0x2   :  { %7050 = sst [smem:[#allocation3_spill]] %s7032_s1 }
   0x3 LB: > { %s5256_s25 = sadd.s32 4294967295, %s6092_s24   ;;  %p5260_p0 = scmp.ge.s32.totalorder %s6092_s24, 1  ;;  %s6092_s24 = sphi %s6187_s24, %s27_s24  }
   0x4   : > { %p509_p1 = scmp.lt.s32.totalorder %s6092_s24, 3 }
   0x6   : > { %p510_p2 = pnand %p5260_p0, %p509_p1 }
   0x7   : > { %s5261_s26 = sshll.u32 (!%p510_p2), %s5256_s25, 2  ;;  %vm598_vm0 = vcmask (!%p510_p2), 261120   ;;  %s7051_s0 = sld [smem:[#allocation2_spill]] (!%p510_p2)  ;;  %v688_v28 = vld [vmem:[%s7036_s5] sm:$0xff] (!%p510_p2)  ;;  %v689_v29 = vld [vmem:[%s7036_s5 + $0x8] sm:$0xff] (!%p510_p2)  ;;  %v690_v34 = vld [vmem:[%s7036_s5 + $0x10] sm:$0xff] (!%p510_p2) }
   0x8   : > { %513 = sbr.rel (%p510_p2) target bundleno = 6682 (0x1a1a), region = 88  ;;  %p570_p3 = scmp.lt.s32.totalorder (!%p510_p2), %s5261_s26, 7  ;;  %v5280_v30 = vld [vmem:[%s7036_s5 + $0x80] sm:$0xff] (!%p510_p2)  ;;  %v694_v31 = vpack.c.bf16 (!%p510_p2), %v689_v29, %v688_v28  ;;  %v5281_v32 = vld [vmem:[%s7036_s5 + $0x88] sm:$0xff] (!%p510_p2)  ;;  %v691_v35 = vld [vmem:[%s7036_s5 + $0x18] sm:$0xff] (!%p510_p2)  ;;  %vm6095_vm1 = vmmov (!%p510_p2), 0  }
   0x9   : > { %v827_v33 = vpack.c.bf16 (!%p510_p2), %v5281_v32, %v5280_v30  ;;  %v5282_v36 = vld [vmem:[%s7036_s5 + $0x90] sm:$0xff] (!%p510_p2)  ;;  %v695_v37 = vpack.c.bf16 (!%p510_p2), %v691_v35, %v690_v34  ;;  %v5283_v38 = vld [vmem:[%s7036_s5 + $0x98] sm:$0xff] (!%p510_p2)  ;;  %v5272_v40 = vld [vmem:[%s7036_s5 + $0x40] sm:$0xff] (!%p510_p2)  ;;  %vm886_vm2 = vcmask (!%p510_p2), 130048   ;;  %s7052_s18 = sld [smem:[#allocation3_spill]] (!%p510_p2)  ;;  %vm1223_vm3 = vcmask (!%p510_p2), 64512  }
   0xa   : > { %5609 = vmatprep.subr.bf16.mxu1 (!%p510_p2), %v694_v31  ;;  %v828_v39 = vpack.c.bf16 (!%p510_p2), %v5283_v38, %v5282_v36  ;;  %v5273_v41 = vld [vmem:[%s7036_s5 + $0x48] sm:$0xff] (!%p510_p2)  ;;  %v5267_v57 = vld [vmem:[%s7034_s3] ss:$0 sm:$0xff] (!%p510_p2)  ;;  %vm2737_vm4 = vcmask (!%p510_p2), 523264   ;;  %vm5091_vm5 = vcmask (!%p510_p2), 7168   ;;  %vm5180_vm6 = vcmask (!%p510_p2), 253952  }
   0xb   : > { %5625 = vmatprep.subr.bf16.mxu0 (!%p510_p2), %v827_v33  ;;  %5610 = vmatpush3.bf16.msra.mxu1 (!%p510_p2), %v694_v31  ;;  %v763_v42 = vpack.c.bf16 (!%p510_p2), %v5273_v41, %v5272_v40  ;;  %v5268_v62 = vld [vmem:[%s7035_s4] ss:$0 sm:$0xff] (!%p510_p2) }
   0xc   : > { %5626 = vmatpush3.bf16.msra.mxu0 (!%p510_p2), %v827_v33  ;;  %5611 = vmatprep.subr.bf16.mxu1 (!%p510_p2), %v695_v37  ;;  %v5269_v28 = vld [vmem:[%s7037_s6] ss:$0 sm:$0xff] (!%p510_p2) }
   0xd   : > { %5627 = vmatprep.subr.bf16.mxu0 (!%p510_p2), %v828_v39 }
   0xf   : > { %s7054_s26 = smov (!%p570_p3, %s5261_s26), 7  ;;  %5612 = vmatpush3.bf16.msra.mxu1 %v695_v37 }
  0x10   : > { %s5262_s27 = sshll.u32 %s7054_s26, 3  ;;  %5628 = vmatpush3.bf16.msra.mxu0 %v828_v39  ;;  %5617 = vmatprep.subr.bf16.mxu1 %v763_v42  ;;  %s578_s19 = scalar_lea.vmem %s7052_s18, %s7054_s26 }
  0x11   : > { %s573_s30 = scalar_lea.vmem %s7051_s0, %s5262_s27  ;;  %s6985_s1 = scalar_lea.vmem %s7033_s2, %s5262_s27 }
  0x12   : > { %v592_v0 = vld [vmem:[%s573_s30] sm:$0xff]  ;;  %v594_v1 = vld [vmem:[%s573_s30 + $0x10] sm:$0xff]  ;;  %v593_v2 = vld [vmem:[%s573_s30 + $0x8] sm:$0xff]  ;;  %s589_s28 = scalar_lea.vmem %s7048_s17, %s7054_s26 }
  0x13   : > { %v599_v3 = vsel %vm598_vm0, %v592_v0, 0.0  ;;  %v605_v4 = vsel %vm598_vm0, %v594_v1, 0.0  ;;  %v595_v5 = vld [vmem:[%s573_s30 + $0x18] sm:$0xff]  ;;  %v602_v6 = vsel %vm598_vm0, %v593_v2, 0.0 }
  0x14   : > { %600 = vadd.xlane.f32.xlu0 %v599_v3  ;;  %606 = vadd.xlane.f32.xlu1 %v605_v4  ;;  %v608_v7 = vsel %vm598_vm0, %v595_v5, 0.0 }
  0x18   : > { %603 = vadd.xlane.f32.xlu0 %v602_v6  ;;  %609 = vadd.xlane.f32.xlu1 %v608_v7 }
  0xa1   : > { %v601_v8 = vpop.xlane.xlu0 %600  ;;  %v607_v9 = vpop.xlane.xlu1 %606 }
  0xa2   : > { %v612_v10 = vmul.f32 0.03125, %v601_v8  ;;  %v614_v11 = vmul.f32 0.03125, %v607_v9  ;;  %v5274_v8 = vld [vmem:[%s7036_s5 + $0x50] sm:$0xff]  ;;  %v5275_v9 = vld [vmem:[%s7036_s5 + $0x58] sm:$0xff] }
  0xa4   : > { %v616_v12 = vsub.f32 %v592_v0, %v612_v10  ;;  %v6207_v13 = vsub.f32 %v594_v1, %v614_v11 }
  0xa5   : > { %v604_v14 = vpop.xlane.xlu0 %603  ;;  %v610_v15 = vpop.xlane.xlu1 %609 }
  0xa6   : > { %v613_v16 = vmul.f32 0.03125, %v604_v14  ;;  %v615_v17 = vmul.f32 0.03125, %v610_v15  ;;  %v620_v18 = vmul.f32 %v616_v12, %v616_v12  ;;  %v622_v19 = vmul.f32 %v6207_v13, %v6207_v13  ;;  %v5285_v15 = vld [vmem:[%s7037_s6 + $0x4] ss:$0 sm:$0xff] }
  0xa7   : > { %v6094_v14 = vmov 0.0  }
  0xa8   : > { %v617_v20 = vsub.f32 %v593_v2, %v613_v16  ;;  %v6211_v21 = vsub.f32 %v595_v5, %v615_v17  ;;  %v624_v22 = vsel %vm598_vm0, %v620_v18, 0.0  ;;  %v630_v23 = vsel %vm598_vm0, %v622_v19, 0.0  ;;  %5643 = vmatprep.subr.mxu0 %v6094_v14 }
  0xa9   : > { %625 = vadd.xlane.f32.xlu0 %v624_v22 }
  0xaa   : > { %v621_v24 = vmul.f32 %v617_v20, %v617_v20  ;;  %v623_v25 = vmul.f32 %v6211_v21, %v6211_v21 }
  0xac   : > { %v627_v26 = vsel %vm598_vm0, %v621_v24, 0.0  ;;  %v633_v27 = vsel %vm598_vm0, %v623_v25, 0.0 }
  0xad   : > { %631 = vadd.xlane.f32.xlu0 %v630_v23  ;;  %628 = vadd.xlane.f32.xlu1 %v627_v26  ;;  %v5277_v26 = vld [vmem:[%s7037_s6 + $0x2] ss:$0 sm:$0xff] }
  0xb1   : > { %634 = vadd.xlane.f32.xlu1 %v633_v27 }
 0x136   : > { %v626_v43 = vpop.xlane.xlu0 %625 }
 0x137   : > { %v636_v44 = vmul.f32 0.03125, %v626_v43  ;;  %v672_v43 = vld [vmem:[%s578_s19] sm:$0x1] }
 0x139   : > { %v640_v45 = vadd.f32 1e-12, %v636_v44  ;;  %v674_v44 = vld [vmem:[%s578_s19 + $0x2] sm:$0x1] }
 0x13a   : > { %v629_v46 = vpop.xlane.xlu1 %628  ;;  %v632_v47 = vpop.xlane.xlu0 %631 }
 0x13b   : > { %5950 = vrsqrt.f32 %v640_v45  ;;  %v637_v48 = vmul.f32 0.03125, %v629_v46  ;;  %v638_v49 = vmul.f32 0.03125, %v632_v47  ;;  %v680_v45 = vsub.f32 1.0, %v672_v43  ;;  %v673_v47 = vld [vmem:[%s578_s19 + $0x1] sm:$0x1] }
 0x13d   : > { %v641_v50 = vadd.f32 1e-12, %v637_v48  ;;  %v642_v51 = vadd.f32 1e-12, %v638_v49  ;;  %v682_v48 = vsub.f32 1.0, %v674_v44 }
 0x13e   : > { %v635_v52 = vpop.xlane.xlu1 %634  ;;  %v684_v49 = vmul.f32 -1e+09, %v680_v45 }
 0x13f   : > { %5952 = vrsqrt.f32 %v641_v50  ;;  %v639_v53 = vmul.f32 0.03125, %v635_v52  ;;  %v675_v52 = vld [vmem:[%s578_s19 + $0x3] sm:$0x1] }
 0x140   : > { %5954 = vrsqrt.f32 %v642_v51  ;;  %v681_v51 = vsub.f32 1.0, %v673_v47 }
 0x141   : > { %v643_v54 = vadd.f32 1e-12, %v639_v53  ;;  %v686_v53 = vmul.f32 -1e+09, %v682_v48 }
 0x143   : > { %5956 = vrsqrt.f32 %v643_v54 }
 0x145   : > { %v5951_v55 = vpop.eup %5950 }
 0x146   : > { %v648_v56 = vmul.f32 %v5951_v55, %v616_v12 }
 0x148   : > { %v658_v60 = vmul.f32 %v5267_v57, %v648_v56  ;;  %v685_v56 = vmul.f32 -1e+09, %v681_v51  ;;  %v5301_v51 = vld [vmem:[%s7036_s5 + $0x28] sm:$0xff] }
 0x149   : > { %v5953_v58 = vpop.eup %5952 }
 0x14a   : > { %v5955_v59 = vpop.eup %5954  ;;  %v649_v61 = vmul.f32 %v5953_v58, %v617_v20  ;;  %v6256_v2 = vadd.f32 %v5268_v62, %v658_v60 }
 0x14b   : > { %v650_v63 = vmul.f32 %v5955_v59, %v6207_v13  ;;  %v764_v13 = vpack.c.bf16 %v5275_v9, %v5274_v8 }
 0x14c   : > { %v659_v0 = vmul.f32 %v5267_v57, %v649_v61 }
 0x14d   : > { %v5957_v1 = vpop.eup %5956  ;;  %v660_v4 = vmul.f32 %v5267_v57, %v650_v63 }
 0x14e   : > { %v6258_v3 = vadd.f32 %v5268_v62, %v659_v0  ;;  %v651_v5 = vmul.f32 %v5957_v1, %v6211_v21 }
 0x14f   : > { %v6271_v10 = vadd.f32 %v5268_v62, %v660_v4 }
 0x150   : > { %v661_v6 = vmul.f32 %v5267_v57, %v651_v5  ;;  %v6263_v7 = vpack.c.bf16 %v6258_v3, %v6256_v2  ;;  %v683_v57 = vsub.f32 1.0, %v675_v52 }
 0x152   : > { %v6273_v11 = vadd.f32 %v5268_v62, %v661_v6  ;;  %5613 = vmatprep.mubr.msk.bf16.mxu1 %vm598_vm0, %v6263_v7  ;;  %5629 = vmatprep.mubr.msk.bf16.mxu0 %vm598_vm0, %v6263_v7  ;;  %v687_v4 = vmul.f32 -1e+09, %v683_v57  ;;  %v5303_v57 = vld [vmem:[%s7036_s5 + $0x38] sm:$0xff] }
 0x154   : > { %v6281_v12 = vpack.c.bf16 %v6273_v11, %v6271_v10 }
 0x156   : > { %5614 = vmatmul.mubr.msk.bf16.vlgmr.msra.gmra.mrb[0].mxu1 %vm598_vm0, %v6281_v12  ;;  %5630 = vmatmul.mubr.msk.bf16.vlgmr.msra.gmra.mrb[0].mxu0 %vm598_vm0, %v6281_v12 }
 0x157   : > { %5618 = vmatpush3.bf16.msra.mxu1 %v763_v42  ;;  %5621 = vmatprep.mubr.msk.bf16.mxu1 %vm598_vm0, %v6263_v7  ;;  %v1199_v42 = vlaneseq }
 0x158   : > { %5619 = vmatprep.subr.bf16.mxu1 %v764_v13  ;;  %5645 = vmatprep.mubr.msk.f32.mxu0 %vm6095_vm1, %v6094_v14 }
 0x159   : > { %v1200_v46 = vshrl.u32 %v1199_v42, 7 }
 0x15b   : > { %5620 = vmatpush3.bf16.msra.mxu1 %v764_v13  ;;  %v1201_v50 = vsub.s32 0, %v1200_v46 }
 0x15c   : > { %5633 = vmatprep.subr.mxu1 %v6094_v14 }
 0x15d   : > { %v6336_v55 = vrot.slane %v684_v49, %v1201_v50  ;;  %v6338_v63 = vrot.slane %v686_v53, %v1201_v50  ;;  %v6341_v1 = vrot.slane %v685_v56, %v1201_v50  ;;  %v5302_v56 = vld [vmem:[%s7036_s5 + $0x30] sm:$0xff] }
 0x15e   : > { %5622 = vmatmul.mubr.msk.bf16.vlgmr.msra.gmra.mrb[4].mxu1 %vm598_vm0, %v6281_v12 }
 0x15f   : > { %5635 = vmatprep.mubr.msk.f32.mxu1 %vm6095_vm1, %v6094_v14 }
 0x229   : > { %v5615_v16 = vpop.f32.mrb[0].mxu1  ;;  %v5631_v17 = vpop.f32.mrb[0].mxu0 }
 0x22a   : > { %v6300_v18 = vadd.f32 %v5631_v17, %v5285_v15  ;;  %v743_v19 = vpop.f32.mrb[1].mxu1  ;;  %v871_v20 = vpop.f32.mrb[1].mxu0  ;;  %v752_v34 = vadd.f32 %v5615_v16, %v5269_v28  ;;  %v6346_v16 = vrot.slane %v687_v4, %v1201_v50  ;;  %v5300_v50 = vld [vmem:[%s7036_s5 + $0x20] sm:$0xff]  ;;  %v1571_v4 = vpack.c.bf16 %v5303_v57, %v5302_v56 }
 0x22b   : > { %v5616_v21 = vpop.f32.mrb[2].mxu1  ;;  %v5632_v22 = vpop.f32.mrb[2].mxu0  ;;  %v744_v35 = vadd.f32 %v5269_v28, %v743_v19  ;;  %v872_v36 = vadd.f32 %v5285_v15, %v871_v20 }
 0x22c   : > { %v6302_v23 = vadd.f32 %v5632_v22, %v5285_v15  ;;  %v746_v24 = vpop.f32.mrb[3].mxu1  ;;  %v874_v25 = vpop.f32.mrb[3].mxu0  ;;  %v755_v40 = vadd.f32 %v5616_v21, %v5269_v28 }
 0x22d   : > { %v747_v38 = vadd.f32 %v5269_v28, %v746_v24  ;;  %v875_v41 = vadd.f32 %v5285_v15, %v874_v25 }
 0x231   : > { %v5623_v27 = vpop.f32.mrb[4].mxu1 }
 0x232   : > { %v816_v29 = vadd.f32 %v5623_v27, %v5277_v26  ;;  %v807_v30 = vpop.f32.mrb[5].mxu1 }
 0x233   : > { %v808_v31 = vadd.f32 %v5277_v26, %v807_v30  ;;  %v5624_v32 = vpop.f32.mrb[6].mxu1 }
 0x234   : > { %v810_v33 = vpop.f32.mrb[7].mxu1  ;;  %5644 = vmatpush3.xpose.msk.msra.mxu0 %vm886_vm2, %v816_v29  ;;  %v819_v39 = vadd.f32 %v5624_v32, %v5277_v26 }
 0x235   : > { %5634 = vmatpush3.xpose.msk.msra.mxu1 %vm886_vm2, %v808_v31  ;;  %5653 = vmatprep.subr.mxu0 %v6094_v14  ;;  %v811_v37 = vadd.f32 %v5277_v26, %v810_v33 }
 0x236   : > { %5638 = vmatprep.subr.mxu1 %v6094_v14 }
 0x237   : > { %5646 = vmatmul.mubr.msk.f32.vlgmr.msra.gmra.mrb[4].mxu0 %vm886_vm2, %v752_v34 }
 0x238   : > { %5636 = vmatmul.mubr.msk.f32.vlgmr.msra.gmra.mrb[8].mxu1 %vm886_vm2, %v744_v35  ;;  %5654 = vmatpush3.msra.mxu0 %v872_v36 }
 0x239   : > { %5639 = vmatpush3.xpose.msk.msra.mxu1 %vm886_vm2, %v811_v37  ;;  %5640 = vmatprep.mubr.msk.f32.mxu1 %vm6095_vm1, %v6094_v14 }
 0x23a   : > { %5648 = vmatprep.subr.mxu1 %v6094_v14  ;;  %5655 = vmatprep.mubr.msk.f32.mxu0 %vm6095_vm1, %v6094_v14 }
 0x23b   : > { %5663 = vmatprep.subr.mxu0 %v6094_v14 }
 0x23c   : > { %5641 = vmatmul.mubr.msk.f32.vlgmr.msra.gmra.mrb[10].mxu1 %vm886_vm2, %v747_v38 }
 0x23d   : > { %5649 = vmatpush3.xpose.msk.msra.mxu1 %vm886_vm2, %v819_v39  ;;  %5650 = vmatprep.mubr.msk.f32.mxu1 %vm6095_vm1, %v6094_v14 }
 0x23e   : > { %5658 = vmatprep.subr.mxu1 %v6094_v14 }
 0x240   : > { %5651 = vmatmul.mubr.msk.f32.vlgmr.msra.gmra.mrb[12].mxu1 %vm886_vm2, %v755_v40 }
 0x241   : > { %5659 = vmatpush3.msra.mxu1 %v875_v41  ;;  %5660 = vmatprep.mubr.msk.f32.mxu1 %vm6095_vm1, %v6094_v14 }
 0x242   : > { %5668 = vmatprep.subr.mxu1 %v6094_v14 }
 0x30a   : > { %v1111_v54 = vpop.f32.mrb[4].mxu0 }
 0x30b   : > { %v959_v58 = vpop.f32.mrb[8].mxu1  ;;  %v5647_v59 = vpop.f32.mrb[5].mxu0  ;;  %v1193_v60 = vmul.f32 0.25, %v1111_v54  ;;  %v1570_v54 = vpack.c.bf16 %v5301_v51, %v5300_v50 }
 0x30c   : > { %v1191_v61 = vmul.f32 0.25, %v959_v58  ;;  %v5637_v62 = vpop.f32.mrb[9].mxu1  ;;  %v5308_v59 = vld [vmem:[%s7036_s5 + $0x60] sm:$0xff] }
 0x30d   : > { %v1221_v13 = vadd.f32 %v6338_v63, %v1193_v60  ;;  %v5309_v60 = vld [vmem:[%s7036_s5 + $0x68] sm:$0xff] }
 0x30e   : > { %v1219_v0 = vadd.f32 %v6336_v55, %v1191_v61 }
 0x30f   : > { %v1035_v5 = vpop.f32.mrb[10].mxu1  ;;  %v1230_v21 = vsel %vm1223_vm3, %v1221_v13, -inf }
 0x310   : > { %v1192_v6 = vmul.f32 0.25, %v1035_v5  ;;  %v5642_v8 = vpop.f32.mrb[11].mxu1  ;;  %v1224_v9 = vsel %vm1223_vm3, %v1219_v0, -inf  ;;  %v1634_v5 = vpack.c.bf16 %v5309_v60, %v5308_v59 }
 0x311   : > { %1225 = vmax.xlane.f32.xlu1 %v1224_v9  ;;  %v5316_v8 = vld [vmem:[%s7036_s5 + $0xa0] sm:$0xff]  ;;  %v5317_v9 = vld [vmem:[%s7036_s5 + $0xa8] sm:$0xff] }
 0x312   : > { %v1220_v15 = vadd.f32 %v6341_v1, %v1192_v6  ;;  %v5311_v6 = vld [vmem:[%s7036_s5 + $0x78] sm:$0xff] }
 0x313   : > { %v1187_v17 = vpop.f32.mrb[12].mxu1 }
 0x314   : > { %v1194_v19 = vmul.f32 0.25, %v1187_v17  ;;  %v5652_v20 = vpop.f32.mrb[13].mxu1  ;;  %v1227_v22 = vsel %vm1223_vm3, %v1220_v15, -inf }
 0x315   : > { %1231 = vmax.xlane.f32.xlu1 %v1230_v21  ;;  %1228 = vmax.xlane.f32.xlu0 %v1227_v22  ;;  %v5318_v20 = vld [vmem:[%s7036_s5 + $0xb0] sm:$0xff]  ;;  %v5319_v21 = vld [vmem:[%s7036_s5 + $0xb8] sm:$0xff] }
 0x316   : > { %v1222_v24 = vadd.f32 %v6346_v16, %v1194_v19  ;;  %v1698_v19 = vpack.c.bf16 %v5317_v9, %v5316_v8 }
 0x318   : > { %v1233_v25 = vsel %vm1223_vm3, %v1222_v24, -inf }
 0x319   : > { %1234 = vmax.xlane.f32.xlu0 %v1233_v25 }
 0x39e   : > { %v1226_v26 = vpop.xlane.xlu1 %1225 }
 0x39f   : > { %v1236_v27 = vsub.f32 %v1219_v0, %v1226_v26 }
 0x3a1   : > { %v1240_v28 = vmul.f32 1.442695, %v1236_v27 }
 0x3a2   : > { %v1232_v29 = vpop.xlane.xlu1 %1231  ;;  %v1229_v30 = vpop.xlane.xlu0 %1228 }
 0x3a3   : > { %5958 = vpow2.f32 %v1240_v28  ;;  %v1238_v31 = vsub.f32 %v1221_v13, %v1232_v29  ;;  %v1237_v32 = vsub.f32 %v1220_v15, %v1229_v30 }
 0x3a5   : > { %v1244_v33 = vmul.f32 1.442695, %v1238_v31  ;;  %v1242_v34 = vmul.f32 1.442695, %v1237_v32 }
 0x3a6   : > { %v1235_v35 = vpop.xlane.xlu0 %1234 }
 0x3a7   : > { %5960 = vpow2.f32 %v1244_v33  ;;  %v1239_v36 = vsub.f32 %v1222_v24, %v1235_v35  ;;  %v5313_v35 = vld [vmem:[%s7037_s6 + $0x3] ss:$0 sm:$0xff] }
 0x3a8   : > { %5962 = vpow2.f32 %v1242_v34 }
 0x3a9   : > { %v1246_v37 = vmul.f32 1.442695, %v1239_v36 }
 0x3ab   : > { %5964 = vpow2.f32 %v1246_v37  ;;  %v5305_v37 = vld [vmem:[%s7037_s6 + $0x1] ss:$0 sm:$0xff] }
 0x3ad   : > { %v5959_v38 = vpop.eup %5958 }
 0x3ae   : > { %v1248_v39 = vsel %vm1223_vm3, %v5959_v38, 0.0 }
 0x3af   : > { %1249 = vadd.xlane.f32.xlu1 %v1248_v39 }
 0x3b1   : > { %v5961_v40 = vpop.eup %5960 }
 0x3b2   : > { %v5963_v41 = vpop.eup %5962  ;;  %v1254_v42 = vsel %vm1223_vm3, %v5961_v40, 0.0 }
 0x3b3   : > { %1255 = vadd.xlane.f32.xlu1 %v1254_v42  ;;  %v1251_v43 = vsel %vm1223_vm3, %v5963_v41, 0.0 }
 0x3b4   : > { %1252 = vadd.xlane.f32.xlu0 %v1251_v43 }
 0x3b5   : > { %v5965_v44 = vpop.eup %5964 }
 0x3b6   : > { %v1257_v45 = vsel %vm1223_vm3, %v5965_v44, 0.0 }
 0x3b8   : > { %1258 = vadd.xlane.f32.xlu0 %v1257_v45 }
 0x43c   : > { %v1250_v46 = vpop.xlane.xlu1 %1249 }
 0x43d   : > { %5966 = vrcp.f32 %v1250_v46 }
 0x440   : > { %v1256_v47 = vpop.xlane.xlu1 %1255 }
 0x441   : > { %5968 = vrcp.f32 %v1256_v47  ;;  %v1253_v48 = vpop.xlane.xlu0 %1252 }
 0x442   : > { %5970 = vrcp.f32 %v1253_v48 }
 0x445   : > { %v1259_v49 = vpop.xlane.xlu0 %1258 }
 0x446   : > { %5972 = vrcp.f32 %v1259_v49 }
 0x447   : > { %v5967_v52 = vpop.eup %5966 }
 0x448   : > { %v1264_v53 = vmul.f32 %v5967_v52, %v5959_v38 }
 0x44a   : > { %5656 = vmatmul.mubr.msk.f32.vlgmr.msra.gmra.mrb[6].mxu0 %vm1223_vm3, %v1264_v53 }
 0x44b   : > { %v5969_v58 = vpop.eup %5968  ;;  %5664 = vmatpush3.msra.mxu0 %v6300_v18  ;;  %5665 = vmatprep.mubr.msk.f32.mxu0 %vm6095_vm1, %v6094_v14  ;;  %v5310_v18 = vld [vmem:[%s7036_s5 + $0x70] sm:$0xff] }
 0x44c   : > { %v5971_v61 = vpop.eup %5970  ;;  %v1266_v62 = vmul.f32 %v5969_v58, %v5961_v40  ;;  %5673 = vmatprep.subr.bf16.mxu0 %v1570_v54  ;;  %v1635_v17 = vpack.c.bf16 %v5311_v6, %v5310_v18  ;;  %v5321_v40 = vld [vmem:[%s7037_s6 + $0x5] ss:$0 sm:$0xff] }
 0x44d   : > { %v1265_v0 = vmul.f32 %v5971_v61, %v5963_v41 }
 0x44e   : > { %5666 = vmatmul.mubr.msk.f32.vlgmr.msra.gmra.mrb[8].mxu0 %vm1223_vm3, %v1266_v62 }
 0x44f   : > { %5661 = vmatmul.mubr.msk.f32.vlgmr.msra.gmra.mrb[14].mxu1 %vm1223_vm3, %v1265_v0  ;;  %5674 = vmatpush3.bf16.msra.mxu0 %v1570_v54 }
 0x450   : > { %v5973_v13 = vpop.eup %5972  ;;  %5669 = vmatpush3.msra.mxu1 %v6302_v23  ;;  %5677 = vmatprep.mubr.msk.bf16.mxu0 %vm598_vm0, %v6263_v7  ;;  %v1699_v23 = vpack.c.bf16 %v5319_v21, %v5318_v20 }
 0x451   : > { %v1267_v15 = vmul.f32 %v5973_v13, %v5965_v44  ;;  %5670 = vmatprep.mubr.msk.f32.mxu1 %vm6095_vm1, %v6094_v14  ;;  %5675 = vmatprep.subr.bf16.mxu0 %v1571_v4 }
 0x452   : > { %5681 = vmatprep.subr.bf16.mxu1 %v1634_v5 }
 0x453   : > { %5671 = vmatmul.mubr.msk.f32.vlgmr.msra.gmra.mrb[16].mxu1 %vm1223_vm3, %v1267_v15  ;;  %5676 = vmatpush3.bf16.msra.mxu0 %v1571_v4 }
 0x454   : > { %5682 = vmatpush3.bf16.msra.mxu1 %v1634_v5  ;;  %5685 = vmatprep.mubr.msk.bf16.mxu1 %vm598_vm0, %v6263_v7 }
 0x455   : > { %5683 = vmatprep.subr.bf16.mxu1 %v1635_v17  ;;  %5689 = vmatprep.subr.bf16.mxu0 %v1698_v19 }
 0x456   : > { %5678 = vmatmul.mubr.msk.bf16.vlgmr.msra.gmra.mrb[12].mxu0 %vm598_vm0, %v6281_v12 }
 0x457   : > { %5690 = vmatpush3.bf16.msra.mxu0 %v1698_v19  ;;  %5693 = vmatprep.mubr.msk.bf16.mxu0 %vm598_vm0, %v6263_v7 }
 0x458   : > { %5684 = vmatpush3.bf16.msra.mxu1 %v1635_v17  ;;  %5691 = vmatprep.subr.bf16.mxu0 %v1699_v23 }
 0x459   : > { %5697 = vmatprep.subr.mxu1 %v6094_v14 }
 0x45b   : > { %5686 = vmatmul.mubr.msk.bf16.vlgmr.msra.gmra.mrb[20].mxu1 %vm598_vm0, %v6281_v12  ;;  %5692 = vmatpush3.bf16.msra.mxu0 %v1699_v23 }
 0x45c   : > { %5707 = vmatprep.subr.mxu0 %v6094_v14  ;;  %5699 = vmatprep.mubr.msk.f32.mxu1 %vm6095_vm1, %v6094_v14 }
 0x45e   : > { %5694 = vmatmul.mubr.msk.bf16.vlgmr.msra.gmra.mrb[16].mxu0 %vm598_vm0, %v6281_v12 }
 0x45f   : > { %5709 = vmatprep.mubr.msk.f32.mxu0 %vm6095_vm1, %v6094_v14 }
 0x51d   : > { %v6420_v7 = vpop.f32.mrb[6].mxu0 }
 0x51e   : > { %v5657_v22 = vpop.f32.mrb[7].mxu0 }
 0x521   : > { %v6422_v24 = vpop.f32.mrb[8].mxu0 }
 0x522   : > { %v6424_v25 = vpop.f32.mrb[14].mxu1  ;;  %v5667_v26 = vpop.f32.mrb[9].mxu0 }
 0x523   : > { %v1562_v27 = vpack.c.bf16 %v6424_v25, %v6420_v7  ;;  %v5662_v28 = vpop.f32.mrb[15].mxu1 }
 0x526   : > { %v6428_v29 = vpop.f32.mrb[16].mxu1 }
 0x527   : > { %v1563_v12 = vpack.c.bf16 %v6428_v29, %v6422_v24  ;;  %v5672_v30 = vpop.f32.mrb[17].mxu1 }
 0x529   : > { %v5679_v31 = vpop.f32.mrb[12].mxu0 }
 0x52a   : > { %v1614_v32 = vpop.f32.mrb[13].mxu0  ;;  %v1623_v45 = vadd.f32 %v5679_v31, %v5305_v37 }
 0x52b   : > { %v5680_v33 = vpop.f32.mrb[14].mxu0  ;;  %v1615_v48 = vadd.f32 %v5305_v37, %v1614_v32 }
 0x52c   : > { %v1617_v34 = vpop.f32.mrb[15].mxu0  ;;  %v1626_v57 = vadd.f32 %v5680_v33, %v5305_v37 }
 0x52d   : > { %v1618_v54 = vadd.f32 %v5305_v37, %v1617_v34 }
 0x52e   : > { %v5687_v36 = vpop.f32.mrb[20].mxu1 }
 0x52f   : > { %v1687_v38 = vadd.f32 %v5687_v36, %v5313_v35  ;;  %v1678_v39 = vpop.f32.mrb[21].mxu1 }
 0x530   : > { %v1679_v41 = vadd.f32 %v5313_v35, %v1678_v39  ;;  %v5688_v42 = vpop.f32.mrb[22].mxu1 }
 0x531   : > { %v1681_v43 = vpop.f32.mrb[23].mxu1  ;;  %5708 = vmatpush3.xpose.msk.msra.mxu0 %vm886_vm2, %v1687_v38  ;;  %v5695_v44 = vpop.f32.mrb[16].mxu0  ;;  %v1690_v56 = vadd.f32 %v5688_v42, %v5313_v35 }
 0x532   : > { %v6442_v46 = vadd.f32 %v5695_v44, %v5321_v40  ;;  %5698 = vmatpush3.xpose.msk.msra.mxu1 %vm886_vm2, %v1679_v41  ;;  %v1742_v47 = vpop.f32.mrb[17].mxu0  ;;  %5717 = vmatprep.subr.mxu0 %v6094_v14  ;;  %v1682_v51 = vadd.f32 %v5313_v35, %v1681_v43 }
 0x533   : > { %v1743_v49 = vadd.f32 %v5321_v40, %v1742_v47  ;;  %v5696_v50 = vpop.f32.mrb[18].mxu0  ;;  %5702 = vmatprep.subr.mxu1 %v6094_v14 }
 0x534   : > { %v6447_v52 = vadd.f32 %v5696_v50, %v5321_v40  ;;  %5710 = vmatmul.mubr.msk.f32.vlgmr.msra.gmra.mrb[10].mxu0 %vm886_vm2, %v1623_v45  ;;  %v1745_v53 = vpop.f32.mrb[19].mxu0 }
 0x535   : > { %5700 = vmatmul.mubr.msk.f32.vlgmr.msra.gmra.mrb[18].mxu1 %vm886_vm2, %v1615_v48  ;;  %5718 = vmatpush3.msra.mxu0 %v1743_v49  ;;  %v1746_v58 = vadd.f32 %v5321_v40, %v1745_v53 }
 0x536   : > { %5703 = vmatpush3.xpose.msk.msra.mxu1 %vm886_vm2, %v1682_v51  ;;  %5704 = vmatprep.mubr.msk.f32.mxu1 %vm6095_vm1, %v6094_v14 }
 0x537   : > { %5712 = vmatprep.subr.mxu1 %v6094_v14  ;;  %5719 = vmatprep.mubr.msk.f32.mxu0 %vm6095_vm1, %v6094_v14 }
 0x538   : > { %5727 = vmatprep.subr.mxu0 %v6094_v14 }
 0x539   : > { %5705 = vmatmul.mubr.msk.f32.vlgmr.msra.gmra.mrb[24].mxu1 %vm886_vm2, %v1618_v54 }
 0x53a   : > { %5713 = vmatpush3.xpose.msk.msra.mxu1 %vm886_vm2, %v1690_v56  ;;  %5714 = vmatprep.mubr.msk.f32.mxu1 %vm6095_vm1, %v6094_v14 }
 0x53b   : > { %5722 = vmatprep.subr.mxu1 %v6094_v14 }
 0x53d   : > { %5715 = vmatmul.mubr.msk.f32.vlgmr.msra.gmra.mrb[26].mxu1 %vm886_vm2, %v1626_v57 }
 0x53e   : > { %5723 = vmatpush3.msra.mxu1 %v1746_v58  ;;  %5724 = vmatprep.mubr.msk.f32.mxu1 %vm6095_vm1, %v6094_v14 }
 0x53f   : > { %5732 = vmatprep.subr.mxu1 %v6094_v14 }
 0x607   : > { %v1981_v59 = vpop.f32.mrb[10].mxu0 }
 0x608   : > { %v1829_v60 = vpop.f32.mrb[18].mxu1  ;;  %v5711_v61 = vpop.f32.mrb[11].mxu0  ;;  %v2063_v62 = vmul.f32 0.25, %v1981_v59 }
 0x609   : > { %v2061_v0 = vmul.f32 0.25, %v1829_v60  ;;  %v5701_v4 = vpop.f32.mrb[19].mxu1 }
 0x60a   : > { %v2067_v13 = vadd.f32 %v2063_v62, %v6338_v63  ;;  %v5337_v4 = vld [vmem:[%s7038_s7 + $0x18] sm:$0xff] }
 0x60b   : > { %v2065_v18 = vadd.f32 %v2061_v0, %v6336_v55 }
 0x60c   : > { %v1905_v5 = vpop.f32.mrb[24].mxu1  ;;  %v2075_v21 = vsel %vm1223_vm3, %v2067_v13, -inf }
 0x60d   : > { %v2062_v6 = vmul.f32 0.25, %v1905_v5  ;;  %v5706_v8 = vpop.f32.mrb[25].mxu1  ;;  %v2069_v9 = vsel %vm1223_vm3, %v2065_v18, -inf  ;;  %v1561_v5 = vld [vmem:[%s7038_s7 + $0x8] sm:$0xff] }
 0x60e   : > { %2070 = vmax.xlane.f32.xlu0 %v2069_v9 }
 0x60f   : > { %v2066_v15 = vadd.f32 %v2062_v6, %v6341_v1 }
 0x610   : > { %v2057_v17 = vpop.f32.mrb[26].mxu1 }
 0x611   : > { %v2064_v19 = vmul.f32 0.25, %v2057_v17  ;;  %v5716_v20 = vpop.f32.mrb[27].mxu1  ;;  %v2072_v23 = vsel %vm1223_vm3, %v2066_v15, -inf }
 0x612   : > { %2076 = vmax.xlane.f32.xlu0 %v2075_v21  ;;  %2073 = vmax.xlane.f32.xlu1 %v2072_v23 }
 0x613   : > { %v2068_v22 = vadd.f32 %v2064_v19, %v6346_v16 }
 0x615   : > { %v2078_v26 = vsel %vm1223_vm3, %v2068_v22, -inf }
 0x616   : > { %2079 = vmax.xlane.f32.xlu1 %v2078_v26  ;;  %v5342_v26 = vld [vmem:[%s7039_s8] ss:$0 sm:$0xff] }
 0x69b   : > { %v2071_v28 = vpop.xlane.xlu0 %2070 }
 0x69c   : > { %v2081_v30 = vsub.f32 %v2065_v18, %v2071_v28 }
 0x69e   : > { %v2085_v31 = vmul.f32 1.442695, %v2081_v30 }
 0x69f   : > { %v2077_v32 = vpop.xlane.xlu0 %2076  ;;  %v2074_v33 = vpop.xlane.xlu1 %2073 }
 0x6a0   : > { %5974 = vpow2.f32 %v2085_v31  ;;  %v2083_v34 = vsub.f32 %v2067_v13, %v2077_v32  ;;  %v2082_v35 = vsub.f32 %v2066_v15, %v2074_v33 }
 0x6a2   : > { %v2089_v36 = vmul.f32 1.442695, %v2083_v34  ;;  %v2087_v37 = vmul.f32 1.442695, %v2082_v35 }
 0x6a3   : > { %v2080_v38 = vpop.xlane.xlu1 %2079 }
 0x6a4   : > { %5976 = vpow2.f32 %v2089_v36  ;;  %v2084_v39 = vsub.f32 %v2068_v22, %v2080_v38 }
 0x6a5   : > { %5978 = vpow2.f32 %v2087_v37 }
 0x6a6   : > { %v2091_v40 = vmul.f32 1.442695, %v2084_v39 }
 0x6a8   : > { %5980 = vpow2.f32 %v2091_v40 }
 0x6aa   : > { %v5975_v41 = vpop.eup %5974 }
 0x6ab   : > { %v2093_v42 = vsel %vm1223_vm3, %v5975_v41, 0.0 }
 0x6ac   : > { %2094 = vadd.xlane.f32.xlu0 %v2093_v42 }
 0x6ae   : > { %v5977_v43 = vpop.eup %5976 }
 0x6af   : > { %v5979_v44 = vpop.eup %5978  ;;  %v2099_v45 = vsel %vm1223_vm3, %v5977_v43, 0.0 }
 0x6b0   : > { %2100 = vadd.xlane.f32.xlu0 %v2099_v45  ;;  %v2096_v47 = vsel %vm1223_vm3, %v5979_v44, 0.0 }
 0x6b1   : > { %2097 = vadd.xlane.f32.xlu1 %v2096_v47 }
 0x6b2   : > { %v5981_v48 = vpop.eup %5980 }
 0x6b3   : > { %v2102_v49 = vsel %vm1223_vm3, %v5981_v48, 0.0 }
 0x6b5   : > { %2103 = vadd.xlane.f32.xlu1 %v2102_v49 }
 0x739   : > { %v2095_v50 = vpop.xlane.xlu0 %2094 }
 0x73a   : > { %5982 = vrcp.f32 %v2095_v50 }
 0x73d   : > { %v2101_v51 = vpop.xlane.xlu0 %2100 }
 0x73e   : > { %5984 = vrcp.f32 %v2101_v51  ;;  %v2098_v53 = vpop.xlane.xlu1 %2097 }
 0x73f   : > { %5986 = vrcp.f32 %v2098_v53 }
 0x742   : > { %v2104_v54 = vpop.xlane.xlu1 %2103 }
 0x743   : > { %5988 = vrcp.f32 %v2104_v54 }
 0x744   : > { %v5983_v56 = vpop.eup %5982 }
 0x745   : > { %v2109_v57 = vmul.f32 %v5983_v56, %v5975_v41 }
 0x747   : > { %5720 = vmatmul.mubr.msk.f32.vlgmr.msra.gmra.mrb[20].mxu0 %vm1223_vm3, %v2109_v57 }
 0x748   : > { %v5985_v58 = vpop.eup %5984  ;;  %5728 = vmatpush3.msra.mxu0 %v6442_v46  ;;  %5729 = vmatprep.mubr.msk.f32.mxu0 %vm6095_vm1, %v6094_v14  ;;  %v5336_v46 = vld [vmem:[%s7038_s7 + $0x10] sm:$0xff] }
 0x749   : > { %v5987_v59 = vpop.eup %5986  ;;  %v2111_v60 = vmul.f32 %v5985_v58, %v5977_v43  ;;  %v2410_v18 = vpack.c.bf16 %v5337_v4, %v5336_v46  ;;  %v2610_v58 = vld [vmem:[%s7040_s9] sm:$0xff] }
 0x74a   : > { %v2110_v61 = vmul.f32 %v5987_v59, %v5979_v44  ;;  %v2611_v59 = vld [vmem:[%s7040_s9 + $0x8] sm:$0xff] }
 0x74b   : > { %5730 = vmatmul.mubr.msk.f32.vlgmr.msra.gmra.mrb[22].mxu0 %vm1223_vm3, %v2111_v60  ;;  %5737 = vmatprep.subr.bf16.mxu0 %v2410_v18  ;;  %v2616_v60 = vpack.c.bf16 %v2611_v59, %v2610_v58 }
 0x74c   : > { %5725 = vmatmul.mubr.msk.f32.vlgmr.msra.gmra.mrb[28].mxu1 %vm1223_vm3, %v2110_v61  ;;  %5738 = vmatpush3.bf16.msra.mxu0 %v2410_v18  ;;  %v2612_v61 = vld [vmem:[%s7040_s9 + $0x10] sm:$0xff] }
 0x74d   : > { %v5989_v62 = vpop.eup %5988  ;;  %5733 = vmatpush3.msra.mxu1 %v6447_v52  ;;  %5734 = vmatprep.mubr.msk.f32.mxu1 %vm6095_vm1, %v6094_v14  ;;  %v1560_v52 = vld [vmem:[%s7038_s7] sm:$0xff] }
 0x74e   : > { %v2112_v0 = vmul.f32 %v5989_v62, %v5981_v48  ;;  %v1564_v6 = vpack.c.bf16 %v1561_v5, %v1560_v52  ;;  %5749 = vmatprep.subr.bf16.mxu1 %v2616_v60  ;;  %v2613_v62 = vld [vmem:[%s7040_s9 + $0x18] sm:$0xff] }
 0x750   : > { %5735 = vmatmul.mubr.msk.f32.vlgmr.msra.gmra.mrb[30].mxu1 %vm1223_vm3, %v2112_v0  ;;  %5743 = vmatprep.subr.bf16.mxu0 %v1564_v6  ;;  %v2617_v0 = vpack.c.bf16 %v2613_v62, %v2612_v61 }
 0x751   : > { %5750 = vmatpush3.bf16.msra.mxu1 %v2616_v60 }
 0x752   : > { %5751 = vmatprep.subr.bf16.mxu1 %v2617_v0 }
 0x755   : > { %5752 = vmatpush3.bf16.msra.mxu1 %v2617_v0 }
 0x81a   : > { %v2182_v8 = vpop.f32.mrb[20].mxu0 }
 0x81b   : > { %v5721_v9 = vpop.f32.mrb[21].mxu0 }
 0x81e   : > { %v2328_v13 = vpop.f32.mrb[22].mxu0 }
 0x81f   : > { %v2255_v15 = vpop.f32.mrb[28].mxu1  ;;  %v5731_v17 = vpop.f32.mrb[23].mxu0 }
 0x820   : > { %v2408_v19 = vpack.c.bf16 %v2255_v15, %v2182_v8  ;;  %v5726_v20 = vpop.f32.mrb[29].mxu1 }
 0x822   : > { %5739 = vmatprep.mubr.msk.bf16.mxu0 %vm886_vm2, %v2408_v19 }
 0x823   : > { %v2401_v21 = vpop.f32.mrb[30].mxu1 }
 0x824   : > { %v2409_v23 = vpack.c.bf16 %v2401_v21, %v2328_v13  ;;  %v5736_v22 = vpop.f32.mrb[31].mxu1  ;;  %v5343_v21 = vld [vmem:[%s7044_s13] ss:$0 sm:$0xff] }
 0x826   : > { %5740 = vmatmul.mubr.msk.bf16.vlgmr.msra.gmra.mrb[24].mxu0 %vm886_vm2, %v2409_v23 }
 0x827   : > { %5745 = vmatprep.mubr.msk.bf16.mxu0 %vm886_vm2, %v1562_v27  ;;  %5744 = vmatpush3.bf16.msra.mxu0 %v1564_v6 }
 0x832   : > { %5746 = vmatmul.mubr.msk.bf16.vlgmr.msra.gmra.mrb[24].mxu0 %vm886_vm2, %v1563_v12 }
 0x905   : > { %v5747_v28 = vpop.f32.mrb[24].mxu0 }
 0x906   : > { %v2506_v30 = vpop.f32.mrb[25].mxu0  ;;  %v2530_v31 = vadd.f32 %v5747_v28, %v5342_v26 }
 0x907   : > { %v2528_v32 = vadd.f32 %v5342_v26, %v2506_v30  ;;  %v5748_v33 = vpop.f32.mrb[26].mxu0 }
 0x908   : > { %v2509_v34 = vpop.f32.mrb[27].mxu0  ;;  %v2531_v35 = vadd.f32 %v5748_v33, %v5342_v26  ;;  %v2534_v29 = vadd.f32 %v2530_v31, %v6271_v10  ;;  %v5344_v31 = vld [vmem:[%s7045_s14] ss:$0 sm:$0xff] }
 0x909   : > { %v2529_v7 = vadd.f32 %v5342_v26, %v2509_v34  ;;  %v2532_v25 = vadd.f32 %v2528_v32, %v6256_v2 }
 0x90a   : > { %v2535_v36 = vadd.f32 %v2531_v35, %v6273_v11  ;;  %v2544_v37 = vsel %vm598_vm0, %v2534_v29, 0.0 }
 0x90b   : > { %v2538_v27 = vsel %vm598_vm0, %v2532_v25, 0.0  ;;  %v2533_v24 = vadd.f32 %v2529_v7, %v6258_v3 }
 0x90c   : > { %2539 = vadd.xlane.f32.xlu0 %v2538_v27  ;;  %v2547_v38 = vsel %vm598_vm0, %v2535_v36, 0.0 }
 0x90d   : > { %v2541_v12 = vsel %vm598_vm0, %v2533_v24, 0.0 }
 0x90e   : > { %2542 = vadd.xlane.f32.xlu1 %v2541_v12 }
 0x910   : > { %2545 = vadd.xlane.f32.xlu0 %v2544_v37 }
 0x912   : > { %2548 = vadd.xlane.f32.xlu1 %v2547_v38  ;;  %v2716_v38 = vld [vmem:[%s7042_s11] sm:$0xff] }
 0x999   : > { %v2540_v39 = vpop.xlane.xlu0 %2539 }
 0x99a   : > { %v2550_v2 = vmul.f32 0.03125, %v2540_v39  ;;  %v2717_v39 = vld [vmem:[%s7042_s11 + $0x8] sm:$0xff] }
 0x99b   : > { %v2543_v40 = vpop.xlane.xlu1 %2542 }
 0x99c   : > { %v2554_v41 = vsub.f32 %v2532_v25, %v2550_v2  ;;  %v2551_v42 = vmul.f32 0.03125, %v2543_v40  ;;  %v2726_v2 = vpack.c.bf16 %v2717_v39, %v2716_v38  ;;  %v2718_v40 = vld [vmem:[%s7042_s11 + $0x10] sm:$0xff] }
 0x99d   : > { %v2546_v3 = vpop.xlane.xlu0 %2545 }
 0x99e   : > { %v2555_v43 = vsub.f32 %v2533_v24, %v2551_v42  ;;  %v2552_v10 = vmul.f32 0.03125, %v2546_v3  ;;  %v2558_v44 = vmul.f32 %v2554_v41, %v2554_v41  ;;  %5757 = vmatprep.subr.bf16.mxu1 %v2726_v2  ;;  %v2720_v3 = vld [vmem:[%s7042_s11 + $0x20] sm:$0xff] }
 0x99f   : > { %v2549_v45 = vpop.xlane.xlu1 %2548 }
 0x9a0   : > { %v2556_v47 = vsub.f32 %v2534_v29, %v2552_v10  ;;  %v2553_v48 = vmul.f32 0.03125, %v2549_v45  ;;  %v2562_v11 = vsel %vm598_vm0, %v2558_v44, 0.0  ;;  %v2559_v49 = vmul.f32 %v2555_v43, %v2555_v43  ;;  %v2722_v44 = vld [vmem:[%s7042_s11 + $0x30] sm:$0xff]  ;;  %v2723_v45 = vld [vmem:[%s7042_s11 + $0x38] sm:$0xff] }
 0x9a1   : > { %2563 = vadd.xlane.f32.xlu0 %v2562_v11 }
 0x9a2   : > { %v2557_v50 = vsub.f32 %v2535_v36, %v2553_v48  ;;  %v2565_v51 = vsel %vm598_vm0, %v2559_v49, 0.0  ;;  %v2560_v53 = vmul.f32 %v2556_v47, %v2556_v47  ;;  %v5345_v48 = vld [vmem:[%s7041_s10] ss:$0 sm:$0xff] }
 0x9a3   : > { %2566 = vadd.xlane.f32.xlu1 %v2565_v51 }
 0x9a4   : > { %v2568_v54 = vsel %vm598_vm0, %v2560_v53, 0.0  ;;  %v2561_v56 = vmul.f32 %v2557_v50, %v2557_v50 }
 0x9a5   : > { %2569 = vadd.xlane.f32.xlu0 %v2568_v54 }
 0x9a6   : > { %v2571_v57 = vsel %vm598_vm0, %v2561_v56, 0.0 }
 0x9a7   : > { %2572 = vadd.xlane.f32.xlu1 %v2571_v57 }
 0xa2e   : > { %v2564_v46 = vpop.xlane.xlu0 %2563 }
 0xa2f   : > { %v2574_v4 = vmul.f32 0.03125, %v2564_v46 }
 0xa30   : > { %v2567_v18 = vpop.xlane.xlu1 %2566 }
 0xa31   : > { %v2578_v52 = vadd.f32 1e-12, %v2574_v4  ;;  %v2575_v5 = vmul.f32 0.03125, %v2567_v18 }
 0xa32   : > { %v2570_v6 = vpop.xlane.xlu0 %2569 }
 0xa33   : > { %5990 = vrsqrt.f32 %v2578_v52  ;;  %v2579_v8 = vadd.f32 1e-12, %v2575_v5  ;;  %v2576_v9 = vmul.f32 0.03125, %v2570_v6 }
 0xa34   : > { %v2573_v13 = vpop.xlane.xlu1 %2572 }
 0xa35   : > { %5992 = vrsqrt.f32 %v2579_v8  ;;  %v2580_v15 = vadd.f32 1e-12, %v2576_v9  ;;  %v2577_v17 = vmul.f32 0.03125, %v2573_v13 }
 0xa37   : > { %5994 = vrsqrt.f32 %v2580_v15  ;;  %v2581_v19 = vadd.f32 1e-12, %v2577_v17 }
 0xa39   : > { %5996 = vrsqrt.f32 %v2581_v19 }
 0xa3d   : > { %v5991_v20 = vpop.eup %5990 }
 0xa3e   : > { %v2586_v23 = vmul.f32 %v5991_v20, %v2554_v41  ;;  %v2719_v41 = vld [vmem:[%s7042_s11 + $0x18] sm:$0xff] }
 0xa3f   : > { %v5993_v22 = vpop.eup %5992  ;;  %v2727_v42 = vpack.c.bf16 %v2719_v41, %v2718_v40  ;;  %v5348_v41 = vld [vmem:[%s7043_s12] ss:$0 sm:$0xff] }
 0xa40   : > { %v2587_v26 = vmul.f32 %v5993_v22, %v2555_v43  ;;  %v2596_v28 = vmul.f32 %v5343_v21, %v2586_v23  ;;  %v2721_v43 = vld [vmem:[%s7042_s11 + $0x28] sm:$0xff] }
 0xa41   : > { %v5995_v30 = vpop.eup %5994  ;;  %v2728_v10 = vpack.c.bf16 %v2721_v43, %v2720_v3 }
 0xa42   : > { %v2588_v32 = vmul.f32 %v5995_v30, %v2556_v47  ;;  %v2597_v33 = vmul.f32 %v5343_v21, %v2587_v26  ;;  %v6544_v25 = vadd.f32 %v5344_v31, %v2596_v28  ;;  %v2729_v47 = vpack.c.bf16 %v2723_v45, %v2722_v44 }
 0xa43   : > { %v5997_v34 = vpop.eup %5996 }
 0xa44   : > { %v2598_v35 = vmul.f32 %v5343_v21, %v2588_v32  ;;  %v2589_v7 = vmul.f32 %v5997_v34, %v2557_v50  ;;  %v6546_v27 = vadd.f32 %v5344_v31, %v2597_v33 }
 0xa46   : > { %v2599_v24 = vmul.f32 %v5343_v21, %v2589_v7  ;;  %v2614_v29 = vpack.c.bf16 %v6546_v27, %v6544_v25  ;;  %v6551_v12 = vadd.f32 %v5344_v31, %v2598_v35 }
 0xa48   : > { %5753 = vmatprep.mubr.msk.bf16.mxu1 %vm598_vm0, %v2614_v29  ;;  %v6553_v36 = vadd.f32 %v5344_v31, %v2599_v24 }
 0xa4a   : > { %v2615_v37 = vpack.c.bf16 %v6553_v36, %v6551_v12 }
 0xa4c   : > { %5754 = vmatmul.mubr.msk.bf16.vlgmr.msra.gmra.mrb[32].mxu1 %vm598_vm0, %v2615_v37 }
 0xa4d   : > { %5758 = vmatpush3.bf16.msra.mxu1 %v2726_v2 }
 0xa4e   : > { %5759 = vmatprep.subr.bf16.mxu1 %v2727_v42 }
 0xa51   : > { %5760 = vmatpush3.bf16.msra.mxu1 %v2727_v42 }
 0xa52   : > { %5761 = vmatprep.subr.bf16.mxu1 %v2728_v10 }
 0xa55   : > { %5762 = vmatpush3.bf16.msra.mxu1 %v2728_v10 }
 0xa56   : > { %5763 = vmatprep.subr.bf16.mxu1 %v2729_v47 }
 0xa59   : > { %5764 = vmatpush3.bf16.msra.mxu1 %v2729_v47 }
 0xb1f   : > { %v5755_v11 = vpop.f32.mrb[32].mxu1 }
 0xb20   : > { %v2674_v49 = vadd.f32 %v5755_v11, %v5345_v48  ;;  %v2665_v50 = vpop.f32.mrb[33].mxu1 }
 0xb21   : > { %v2666_v51 = vadd.f32 %v5345_v48, %v2665_v50  ;;  %v5756_v53 = vpop.f32.mrb[34].mxu1 }
 0xb22   : > { %v2682_v54 = vmul.f32 %v2674_v49, %v2674_v49  ;;  %v2677_v56 = vadd.f32 %v5756_v53, %v5345_v48  ;;  %v2668_v57 = vpop.f32.mrb[35].mxu1 }
 0xb23   : > { %v2680_v58 = vmul.f32 %v2666_v51, %v2666_v51  ;;  %v2669_v59 = vadd.f32 %v5345_v48, %v2668_v57 }
 0xb24   : > { %v2686_v60 = vmul.f32 %v2682_v54, %v2674_v49  ;;  %v2683_v61 = vmul.f32 %v2677_v56, %v2677_v56 }
 0xb25   : > { %v2684_v62 = vmul.f32 %v2680_v58, %v2666_v51  ;;  %v2681_v0 = vmul.f32 %v2669_v59, %v2669_v59 }
 0xb26   : > { %v2690_v46 = vmul.f32 0.044715, %v2686_v60  ;;  %v2687_v4 = vmul.f32 %v2683_v61, %v2677_v56 }
 0xb27   : > { %v2688_v18 = vmul.f32 0.044715, %v2684_v62  ;;  %v2685_v52 = vmul.f32 %v2681_v0, %v2669_v59 }
 0xb28   : > { %v2694_v5 = vadd.f32 %v2690_v46, %v2674_v49  ;;  %v2691_v6 = vmul.f32 0.044715, %v2687_v4 }
 0xb29   : > { %v2692_v8 = vadd.f32 %v2688_v18, %v2666_v51  ;;  %v2689_v9 = vmul.f32 0.044715, %v2685_v52 }
 0xb2a   : > { %v2698_v13 = vmul.f32 0.7978846, %v2694_v5  ;;  %v2695_v15 = vadd.f32 %v2691_v6, %v2677_v56 }
 0xb2b   : > { %v2696_v17 = vmul.f32 0.7978846, %v2692_v8  ;;  %v2693_v19 = vadd.f32 %v2689_v9, %v2669_v59 }
 0xb2c   : > { %5998 = vtanh.f32 %v2698_v13  ;;  %v2699_v20 = vmul.f32 0.7978846, %v2695_v15 }
 0xb2d   : > { %6000 = vtanh.f32 %v2696_v17  ;;  %v2697_v21 = vmul.f32 0.7978846, %v2693_v19  ;;  %v5353_v17 = vld [vmem:[%s7036_s5 + $0xc0] sm:$0xff]  ;;  %v5354_v19 = vld [vmem:[%s7036_s5 + $0xc8] sm:$0xff] }
 0xb2e   : > { %6002 = vtanh.f32 %v2699_v20  ;;  %v5369_v20 = vld [vmem:[%s7036_s5 + $0x140] sm:$0xff] }
 0xb2f   : > { %6004 = vtanh.f32 %v2697_v21  ;;  %v2878_v21 = vpack.c.bf16 %v5354_v19, %v5353_v17 }
 0xb31   : > { %5769 = vmatprep.subr.bf16.mxu0 %v2878_v21 }
 0xb32   : > { %5770 = vmatpush3.bf16.msra.mxu0 %v2878_v21 }
 0xb36   : > { %v5999_v23 = vpop.eup %5998 }
 0xb37   : > { %v6001_v22 = vpop.eup %6000  ;;  %v2706_v26 = vadd.f32 1.0, %v5999_v23  ;;  %v5370_v23 = vld [vmem:[%s7036_s5 + $0x148] sm:$0xff] }
 0xb38   : > { %v6003_v28 = vpop.eup %6002  ;;  %v2704_v30 = vadd.f32 1.0, %v6001_v22  ;;  %v3012_v22 = vpack.c.bf16 %v5370_v23, %v5369_v20  ;;  %v5366_v20 = vld [vmem:[%s7037_s6 + $0x8] ss:$0 sm:$0xff]  ;;  %v5358_v23 = vld [vmem:[%s7037_s6 + $0x6] ss:$0 sm:$0xff] }
 0xb39   : > { %v6005_v31 = vpop.eup %6004  ;;  %v2710_v32 = vmul.f32 0.5, %v2706_v26  ;;  %v2707_v33 = vadd.f32 1.0, %v6003_v28  ;;  %v5355_v26 = vld [vmem:[%s7036_s5 + $0xd0] sm:$0xff]  ;;  %v5356_v28 = vld [vmem:[%s7036_s5 + $0xd8] sm:$0xff] }
 0xb3a   : > { %v2708_v34 = vmul.f32 0.5, %v2704_v30  ;;  %v2705_v35 = vadd.f32 1.0, %v6005_v31  ;;  %5785 = vmatprep.subr.bf16.mxu1 %v3012_v22  ;;  %v5371_v30 = vld [vmem:[%s7036_s5 + $0x150] sm:$0xff]  ;;  %v2879_v31 = vpack.c.bf16 %v5356_v28, %v5355_v26 }
 0xb3b   : > { %v2711_v7 = vmul.f32 0.5, %v2707_v33  ;;  %v2714_v29 = vmul.f32 %v2710_v32, %v2674_v49  ;;  %v5372_v32 = vld [vmem:[%s7036_s5 + $0x158] sm:$0xff] }
 0xb3c   : > { %v2709_v24 = vmul.f32 0.5, %v2705_v35  ;;  %v2712_v38 = vmul.f32 %v2708_v34, %v2666_v51  ;;  %v3013_v33 = vpack.c.bf16 %v5372_v32, %v5371_v30  ;;  %5771 = vmatprep.subr.bf16.mxu0 %v2879_v31  ;;  %v5361_v34 = vld [vmem:[%s7036_s5 + $0x100] sm:$0xff]  ;;  %v5362_v35 = vld [vmem:[%s7036_s5 + $0x108] sm:$0xff] }
 0xb3d   : > { %v2715_v37 = vmul.f32 %v2711_v7, %v2677_v56  ;;  %5772 = vmatpush3.bf16.msra.mxu0 %v2879_v31  ;;  %v2948_v7 = vpack.c.bf16 %v5362_v35, %v5361_v34 }
 0xb3e   : > { %v2713_v39 = vmul.f32 %v2709_v24, %v2669_v59 }
 0xb3f   : > { %v2725_v2 = vpack.c.bf16 %v2715_v37, %v2714_v29  ;;  %5777 = vmatprep.subr.bf16.mxu0 %v2948_v7 }
 0xb40   : > { %v2724_v40 = vpack.c.bf16 %v2713_v39, %v2712_v38 }
 0xb42   : > { %5765 = vmatprep.mubr.msk.bf16.mxu1 %vm2737_vm4, %v2724_v40 }
 0xb43   : > { %5766 = vmatmul.mubr.msk.bf16.vlgmr.msra.gmra.mrb[36].mxu1 %vm2737_vm4, %v2725_v2 }
 0xb44   : > { %5786 = vmatpush3.bf16.msra.mxu1 %v3012_v22 }
 0xb45   : > { %5787 = vmatprep.subr.bf16.mxu1 %v3013_v33 }
 0xb48   : > { %5788 = vmatpush3.bf16.msra.mxu1 %v3013_v33 }
 0xb49   : > { %5803 = vmatprep.subr.mxu1 %v6094_v14 }
 0xc16   : > { %v5767_v42 = vpop.f32.mrb[36].mxu1 }
 0xc17   : > { %v2778_v3 = vpop.f32.mrb[37].mxu1  ;;  %v2787_v43 = vadd.f32 %v5767_v42, %v5348_v41 }
 0xc18   : > { %v2779_v10 = vadd.f32 %v5348_v41, %v2778_v3  ;;  %v5768_v44 = vpop.f32.mrb[38].mxu1 }
 0xc19   : > { %v2781_v45 = vpop.f32.mrb[39].mxu1  ;;  %v2790_v47 = vadd.f32 %v5768_v44, %v5348_v41  ;;  %v2795_v51 = vadd.f32 %v2787_v43, %v6551_v12 }
 0xc1a   : > { %v2782_v48 = vadd.f32 %v5348_v41, %v2781_v45  ;;  %v2793_v11 = vadd.f32 %v2779_v10, %v6544_v25  ;;  %v5351_v45 = vld [vmem:[%s7046_s15] ss:$0 sm:$0xff] }
 0xc1b   : > { %v2796_v54 = vadd.f32 %v2790_v47, %v6553_v36  ;;  %v2805_v56 = vsel %vm598_vm0, %v2795_v51, 0.0 }
 0xc1c   : > { %v2799_v49 = vsel %vm598_vm0, %v2793_v11, 0.0  ;;  %v2794_v50 = vadd.f32 %v2782_v48, %v6546_v27 }
 0xc1d   : > { %2800 = vadd.xlane.f32.xlu0 %v2799_v49  ;;  %v2808_v57 = vsel %vm598_vm0, %v2796_v54, 0.0 }
 0xc1e   : > { %v2802_v53 = vsel %vm598_vm0, %v2794_v50, 0.0 }
 0xc1f   : > { %2803 = vadd.xlane.f32.xlu1 %v2802_v53 }
 0xc21   : > { %2806 = vadd.xlane.f32.xlu0 %v2805_v56 }
 0xc23   : > { %2809 = vadd.xlane.f32.xlu1 %v2808_v57 }
 0xcaa   : > { %v2801_v58 = vpop.xlane.xlu0 %2800 }
 0xcab   : > { %v2811_v25 = vmul.f32 0.03125, %v2801_v58 }
 0xcac   : > { %v2804_v59 = vpop.xlane.xlu1 %2803 }
 0xcad   : > { %v6598_v60 = vsub.f32 %v2793_v11, %v2811_v25  ;;  %v2812_v27 = vmul.f32 0.03125, %v2804_v59 }
 0xcae   : > { %v2807_v61 = vpop.xlane.xlu0 %2806 }
 0xcaf   : > { %v6600_v12 = vsub.f32 %v2794_v50, %v2812_v27  ;;  %v2813_v62 = vmul.f32 0.03125, %v2807_v61  ;;  %v2819_v36 = vmul.f32 %v6598_v60, %v6598_v60  ;;  %v5363_v61 = vld [vmem:[%s7036_s5 + $0x110] sm:$0xff] }
 0xcb0   : > { %v2810_v0 = vpop.xlane.xlu1 %2809 }
 0xcb1   : > { %v6604_v46 = vsub.f32 %v2795_v51, %v2813_v62  ;;  %v2814_v4 = vmul.f32 0.03125, %v2810_v0  ;;  %v2823_v18 = vsel %vm598_vm0, %v2819_v36, 0.0  ;;  %v2820_v52 = vmul.f32 %v6600_v12, %v6600_v12  ;;  %v5352_v51 = vld [vmem:[%s7047_s16] ss:$0 sm:$0xff] }
 0xcb2   : > { %2824 = vadd.xlane.f32.xlu0 %v2823_v18 }
 0xcb3   : > { %v6609_v5 = vsub.f32 %v2796_v54, %v2814_v4  ;;  %v2826_v6 = vsel %vm598_vm0, %v2820_v52, 0.0  ;;  %v2821_v8 = vmul.f32 %v6604_v46, %v6604_v46  ;;  %v5374_v4 = vld [vmem:[%s7037_s6 + $0xa] ss:$0 sm:$0xff] }
 0xcb4   : > { %2827 = vadd.xlane.f32.xlu1 %v2826_v6 }
 0xcb5   : > { %v2829_v9 = vsel %vm598_vm0, %v2821_v8, 0.0  ;;  %v2822_v13 = vmul.f32 %v6609_v5, %v6609_v5 }
 0xcb6   : > { %2830 = vadd.xlane.f32.xlu0 %v2829_v9 }
 0xcb7   : > { %v2832_v15 = vsel %vm598_vm0, %v2822_v13, 0.0 }
 0xcb8   : > { %2833 = vadd.xlane.f32.xlu1 %v2832_v15 }
 0xd3f   : > { %v2825_v24 = vpop.xlane.xlu0 %2824 }
 0xd40   : > { %v2835_v29 = vmul.f32 0.03125, %v2825_v24 }
 0xd41   : > { %v2828_v37 = vpop.xlane.xlu1 %2827 }
 0xd42   : > { %v2839_v38 = vadd.f32 1e-12, %v2835_v29  ;;  %v2836_v39 = vmul.f32 0.03125, %v2828_v37 }
 0xd43   : > { %v2831_v2 = vpop.xlane.xlu0 %2830 }
 0xd44   : > { %6006 = vrsqrt.f32 %v2839_v38  ;;  %v2840_v40 = vadd.f32 1e-12, %v2836_v39  ;;  %v2837_v41 = vmul.f32 0.03125, %v2831_v2 }
 0xd45   : > { %v2834_v42 = vpop.xlane.xlu1 %2833 }
 0xd46   : > { %6008 = vrsqrt.f32 %v2840_v40  ;;  %v2841_v3 = vadd.f32 1e-12, %v2837_v41  ;;  %v2838_v43 = vmul.f32 0.03125, %v2834_v42 }
 0xd48   : > { %6010 = vrsqrt.f32 %v2841_v3  ;;  %v2842_v10 = vadd.f32 1e-12, %v2838_v43 }
 0xd4a   : > { %6012 = vrsqrt.f32 %v2842_v10 }
 0xd4e   : > { %v6007_v44 = vpop.eup %6006 }
 0xd4f   : > { %v2847_v47 = vmul.f32 %v6007_v44, %v6598_v60 }
 0xd50   : > { %v6009_v48 = vpop.eup %6008 }
 0xd51   : > { %v2857_v11 = vmul.f32 %v5351_v45, %v2847_v47  ;;  %v2848_v49 = vmul.f32 %v6009_v48, %v6600_v12  ;;  %v5364_v12 = vld [vmem:[%s7036_s5 + $0x118] sm:$0xff] }
 0xd52   : > { %v6011_v50 = vpop.eup %6010 }
 0xd53   : > { %v2858_v53 = vmul.f32 %v5351_v45, %v2848_v49  ;;  %v2849_v54 = vmul.f32 %v6011_v50, %v6604_v46  ;;  %v6658_v57 = vadd.f32 %v5352_v51, %v2857_v11  ;;  %v2949_v46 = vpack.c.bf16 %v5364_v12, %v5363_v61 }
 0xd54   : > { %v6013_v56 = vpop.eup %6012 }
 0xd55   : > { %v6660_v58 = vadd.f32 %v5352_v51, %v2858_v53  ;;  %v2859_v25 = vmul.f32 %v5351_v45, %v2849_v54  ;;  %v2850_v59 = vmul.f32 %v6013_v56, %v6609_v5 }
 0xd57   : > { %v2860_v60 = vmul.f32 %v5351_v45, %v2850_v59  ;;  %v6665_v27 = vpack.c.bf16 %v6660_v58, %v6658_v57  ;;  %v6673_v62 = vadd.f32 %v5352_v51, %v2859_v25 }
 0xd59   : > { %v6675_v36 = vadd.f32 %v5352_v51, %v2860_v60  ;;  %5773 = vmatprep.mubr.msk.bf16.mxu0 %vm598_vm0, %v6665_v27  ;;  %5789 = vmatprep.mubr.msk.bf16.mxu1 %vm598_vm0, %v6665_v27 }
 0xd5b   : > { %v6683_v0 = vpack.c.bf16 %v6675_v36, %v6673_v62 }
 0xd5d   : > { %5774 = vmatmul.mubr.msk.bf16.vlgmr.msra.gmra.mrb[28].mxu0 %vm598_vm0, %v6683_v0  ;;  %5790 = vmatmul.mubr.msk.bf16.vlgmr.msra.gmra.mrb[40].mxu1 %vm598_vm0, %v6683_v0 }
 0xd5e   : > { %5778 = vmatpush3.bf16.msra.mxu0 %v2948_v7  ;;  %5781 = vmatprep.mubr.msk.bf16.mxu0 %vm598_vm0, %v6665_v27 }
 0xd5f   : > { %5779 = vmatprep.subr.bf16.mxu0 %v2949_v46  ;;  %5805 = vmatprep.mubr.msk.f32.mxu1 %vm6095_vm1, %v6094_v14 }
 0xd62   : > { %5780 = vmatpush3.bf16.msra.mxu0 %v2949_v46 }
 0xd63   : > { %5793 = vmatprep.subr.mxu0 %v6094_v14 }
 0xd65   : > { %5782 = vmatmul.mubr.msk.bf16.vlgmr.msra.gmra.mrb[32].mxu0 %vm598_vm0, %v6683_v0 }
 0xd66   : > { %5795 = vmatprep.mubr.msk.f32.mxu0 %vm6095_vm1, %v6094_v14 }
 0xe30   : > { %v5775_v18 = vpop.f32.mrb[28].mxu0  ;;  %v5791_v52 = vpop.f32.mrb[40].mxu1 }
 0xe31   : > { %v6701_v5 = vadd.f32 %v5791_v52, %v5374_v4  ;;  %v2928_v6 = vpop.f32.mrb[29].mxu0  ;;  %v3056_v8 = vpop.f32.mrb[41].mxu1  ;;  %v2937_v32 = vadd.f32 %v5775_v18, %v5358_v23 }
 0xe32   : > { %v5776_v9 = vpop.f32.mrb[30].mxu0  ;;  %v5792_v13 = vpop.f32.mrb[42].mxu1  ;;  %v2929_v33 = vadd.f32 %v5358_v23, %v2928_v6  ;;  %v3057_v34 = vadd.f32 %v5374_v4, %v3056_v8 }
 0xe33   : > { %v6703_v15 = vadd.f32 %v5792_v13, %v5374_v4  ;;  %v2931_v17 = vpop.f32.mrb[31].mxu0  ;;  %v3059_v19 = vpop.f32.mrb[43].mxu1  ;;  %v2940_v29 = vadd.f32 %v5776_v9, %v5358_v23 }
 0xe34   : > { %v2932_v7 = vadd.f32 %v5358_v23, %v2931_v17  ;;  %v3060_v37 = vadd.f32 %v5374_v4, %v3059_v19 }
 0xe38   : > { %v5783_v21 = vpop.f32.mrb[32].mxu0 }
 0xe39   : > { %v3001_v22 = vadd.f32 %v5783_v21, %v5366_v20  ;;  %v2992_v26 = vpop.f32.mrb[33].mxu0 }
 0xe3a   : > { %v2993_v28 = vadd.f32 %v5366_v20, %v2992_v26  ;;  %v5784_v30 = vpop.f32.mrb[34].mxu0 }
 0xe3b   : > { %v2995_v31 = vpop.f32.mrb[35].mxu0  ;;  %5804 = vmatpush3.xpose.msk.msra.mxu1 %vm886_vm2, %v3001_v22  ;;  %v3004_v24 = vadd.f32 %v5784_v30, %v5366_v20 }
 0xe3c   : > { %5794 = vmatpush3.xpose.msk.msra.mxu0 %vm886_vm2, %v2993_v28  ;;  %5813 = vmatprep.subr.mxu1 %v6094_v14  ;;  %v2996_v35 = vadd.f32 %v5366_v20, %v2995_v31 }
 0xe3d   : > { %5798 = vmatprep.subr.mxu0 %v6094_v14 }
 0xe3e   : > { %5806 = vmatmul.mubr.msk.f32.vlgmr.msra.gmra.mrb[44].mxu1 %vm886_vm2, %v2937_v32 }
 0xe3f   : > { %5796 = vmatmul.mubr.msk.f32.vlgmr.msra.gmra.mrb[36].mxu0 %vm886_vm2, %v2929_v33  ;;  %5814 = vmatpush3.msra.mxu1 %v3057_v34  ;;  %v5391_v33 = vld [vmem:[%s7036_s5 + $0xe0] sm:$0xff]  ;;  %v5392_v34 = vld [vmem:[%s7036_s5 + $0xe8] sm:$0xff] }
 0xe40   : > { %5799 = vmatpush3.xpose.msk.msra.mxu0 %vm886_vm2, %v2996_v35  ;;  %5800 = vmatprep.mubr.msk.f32.mxu0 %vm6095_vm1, %v6094_v14 }
 0xe41   : > { %5808 = vmatprep.subr.mxu0 %v6094_v14  ;;  %5815 = vmatprep.mubr.msk.f32.mxu1 %vm6095_vm1, %v6094_v14 }
 0xe42   : > { %5823 = vmatprep.subr.mxu1 %v6094_v14 }
 0xe43   : > { %5801 = vmatmul.mubr.msk.f32.vlgmr.msra.gmra.mrb[38].mxu0 %vm886_vm2, %v2932_v7 }
 0xe44   : > { %5809 = vmatpush3.xpose.msk.msra.mxu0 %vm886_vm2, %v3004_v24  ;;  %5810 = vmatprep.mubr.msk.f32.mxu0 %vm6095_vm1, %v6094_v14  ;;  %v3730_v24 = vpack.c.bf16 %v5392_v34, %v5391_v33 }
 0xe45   : > { %5818 = vmatprep.subr.mxu0 %v6094_v14 }
 0xe47   : > { %5811 = vmatmul.mubr.msk.f32.vlgmr.msra.gmra.mrb[40].mxu0 %vm886_vm2, %v2940_v29  ;;  %v5393_v29 = vld [vmem:[%s7036_s5 + $0xf0] sm:$0xff] }
 0xe48   : > { %5819 = vmatpush3.msra.mxu0 %v3060_v37  ;;  %5820 = vmatprep.mubr.msk.f32.mxu0 %vm6095_vm1, %v6094_v14  ;;  %v5394_v37 = vld [vmem:[%s7036_s5 + $0xf8] sm:$0xff] }
 0xe49   : > { %5828 = vmatprep.subr.mxu0 %v6094_v14 }
 0xf11   : > { %v3295_v38 = vpop.f32.mrb[44].mxu1 }
 0xf12   : > { %v3143_v39 = vpop.f32.mrb[36].mxu0  ;;  %v5807_v2 = vpop.f32.mrb[45].mxu1  ;;  %v3377_v40 = vmul.f32 0.25, %v3295_v38 }
 0xf13   : > { %v3375_v41 = vmul.f32 0.25, %v3143_v39  ;;  %v5797_v42 = vpop.f32.mrb[37].mxu0  ;;  %v5399_v39 = vld [vmem:[%s7036_s5 + $0x120] sm:$0xff]  ;;  %v5400_v2 = vld [vmem:[%s7036_s5 + $0x128] sm:$0xff] }
 0xf14   : > { %v3381_v47 = vadd.f32 %v3377_v40, %v6338_v63 }
 0xf15   : > { %v3379_v3 = vadd.f32 %v3375_v41, %v6336_v55 }
 0xf16   : > { %v3219_v43 = vpop.f32.mrb[38].mxu0  ;;  %v3389_v51 = vsel %vm1223_vm3, %v3381_v47, -inf }
 0xf17   : > { %v3376_v10 = vmul.f32 0.25, %v3219_v43  ;;  %v5802_v44 = vpop.f32.mrb[39].mxu0  ;;  %v3383_v45 = vsel %vm1223_vm3, %v3379_v3, -inf  ;;  %v3794_v43 = vpack.c.bf16 %v5400_v2, %v5399_v39 }
 0xf18   : > { %3384 = vmax.xlane.f32.xlu1 %v3383_v45  ;;  %v5407_v44 = vld [vmem:[%s7036_s5 + $0x160] sm:$0xff]  ;;  %v5408_v45 = vld [vmem:[%s7036_s5 + $0x168] sm:$0xff] }
 0xf19   : > { %v3380_v48 = vadd.f32 %v3376_v10, %v6341_v1  ;;  %v5402_v10 = vld [vmem:[%s7036_s5 + $0x138] sm:$0xff] }
 0xf1a   : > { %v3371_v11 = vpop.f32.mrb[40].mxu0 }
 0xf1b   : > { %v3378_v49 = vmul.f32 0.25, %v3371_v11  ;;  %v5812_v50 = vpop.f32.mrb[41].mxu0  ;;  %v3386_v53 = vsel %vm1223_vm3, %v3380_v48, -inf }
 0xf1c   : > { %3390 = vmax.xlane.f32.xlu1 %v3389_v51  ;;  %3387 = vmax.xlane.f32.xlu0 %v3386_v53  ;;  %v5409_v50 = vld [vmem:[%s7036_s5 + $0x170] sm:$0xff]  ;;  %v5410_v51 = vld [vmem:[%s7036_s5 + $0x178] sm:$0xff] }
 0xf1d   : > { %v3382_v54 = vadd.f32 %v3378_v49, %v6346_v16  ;;  %v3858_v49 = vpack.c.bf16 %v5408_v45, %v5407_v44 }
 0xf1f   : > { %v3392_v56 = vsel %vm1223_vm3, %v3382_v54, -inf }
 0xf20   : > { %3393 = vmax.xlane.f32.xlu0 %v3392_v56 }
 0xfa5   : > { %v3385_v25 = vpop.xlane.xlu1 %3384 }
 0xfa6   : > { %v3395_v59 = vsub.f32 %v3379_v3, %v3385_v25  ;;  %v3731_v3 = vpack.c.bf16 %v5394_v37, %v5393_v29 }
 0xfa8   : > { %v3399_v60 = vmul.f32 1.442695, %v3395_v59 }
 0xfa9   : > { %v3391_v61 = vpop.xlane.xlu1 %3390  ;;  %v3388_v12 = vpop.xlane.xlu0 %3387 }
 0xfaa   : > { %6014 = vpow2.f32 %v3399_v60  ;;  %v3397_v46 = vsub.f32 %v3381_v47, %v3391_v61  ;;  %v3396_v4 = vsub.f32 %v3380_v48, %v3388_v12 }
 0xfac   : > { %v3403_v18 = vmul.f32 1.442695, %v3397_v46  ;;  %v3401_v52 = vmul.f32 1.442695, %v3396_v4 }
 0xfad   : > { %v3394_v6 = vpop.xlane.xlu0 %3393 }
 0xfae   : > { %6016 = vpow2.f32 %v3403_v18  ;;  %v3398_v8 = vsub.f32 %v3382_v54, %v3394_v6  ;;  %v5404_v6 = vld [vmem:[%s7037_s6 + $0x9] ss:$0 sm:$0xff] }
 0xfaf   : > { %6018 = vpow2.f32 %v3401_v52 }
 0xfb0   : > { %v3405_v9 = vmul.f32 1.442695, %v3398_v8 }
 0xfb2   : > { %6020 = vpow2.f32 %v3405_v9  ;;  %v5396_v9 = vld [vmem:[%s7037_s6 + $0x7] ss:$0 sm:$0xff] }
 0xfb4   : > { %v6015_v13 = vpop.eup %6014 }
 0xfb5   : > { %v3407_v17 = vsel %vm1223_vm3, %v6015_v13, 0.0 }
 0xfb6   : > { %3408 = vadd.xlane.f32.xlu1 %v3407_v17 }
 0xfb8   : > { %v6017_v19 = vpop.eup %6016 }
 0xfb9   : > { %v6019_v20 = vpop.eup %6018  ;;  %v3413_v21 = vsel %vm1223_vm3, %v6017_v19, 0.0 }
 0xfba   : > { %3414 = vadd.xlane.f32.xlu1 %v3413_v21  ;;  %v3410_v23 = vsel %vm1223_vm3, %v6019_v20, 0.0 }
 0xfbb   : > { %3411 = vadd.xlane.f32.xlu0 %v3410_v23 }
 0xfbc   : > { %v6021_v22 = vpop.eup %6020 }
 0xfbd   : > { %v3416_v26 = vsel %vm1223_vm3, %v6021_v22, 0.0 }
 0xfbf   : > { %3417 = vadd.xlane.f32.xlu0 %v3416_v26 }
0x1043   : > { %v3409_v28 = vpop.xlane.xlu1 %3408 }
0x1044   : > { %6022 = vrcp.f32 %v3409_v28 }
0x1047   : > { %v3415_v30 = vpop.xlane.xlu1 %3414 }
0x1048   : > { %6024 = vrcp.f32 %v3415_v30  ;;  %v3412_v31 = vpop.xlane.xlu0 %3411 }
0x1049   : > { %6026 = vrcp.f32 %v3412_v31 }
0x104c   : > { %v3418_v32 = vpop.xlane.xlu0 %3417 }
0x104d   : > { %6028 = vrcp.f32 %v3418_v32 }
0x104e   : > { %v6023_v35 = vpop.eup %6022 }
0x104f   : > { %v3423_v7 = vmul.f32 %v6023_v35, %v6015_v13 }
0x1051   : > { %5816 = vmatmul.mubr.msk.f32.vlgmr.msra.gmra.mrb[46].mxu1 %vm1223_vm3, %v3423_v7 }
0x1052   : > { %v6025_v38 = vpop.eup %6024  ;;  %5824 = vmatpush3.msra.mxu1 %v6701_v5  ;;  %5825 = vmatprep.mubr.msk.f32.mxu1 %vm6095_vm1, %v6094_v14  ;;  %v5401_v5 = vld [vmem:[%s7036_s5 + $0x130] sm:$0xff] }
0x1053   : > { %v6027_v40 = vpop.eup %6026  ;;  %v3425_v41 = vmul.f32 %v6025_v38, %v6017_v19  ;;  %5833 = vmatprep.subr.bf16.mxu1 %v3730_v24  ;;  %v3795_v11 = vpack.c.bf16 %v5402_v10, %v5401_v5  ;;  %v5412_v19 = vld [vmem:[%s7037_s6 + $0xb] ss:$0 sm:$0xff] }
0x1054   : > { %v3424_v42 = vmul.f32 %v6027_v40, %v6019_v20 }
0x1055   : > { %5826 = vmatmul.mubr.msk.f32.vlgmr.msra.gmra.mrb[48].mxu1 %vm1223_vm3, %v3425_v41 }
0x1056   : > { %5821 = vmatmul.mubr.msk.f32.vlgmr.msra.gmra.mrb[42].mxu0 %vm1223_vm3, %v3424_v42  ;;  %5834 = vmatpush3.bf16.msra.mxu1 %v3730_v24 }
0x1057   : > { %v6029_v47 = vpop.eup %6028  ;;  %5829 = vmatpush3.msra.mxu0 %v6703_v15  ;;  %5837 = vmatprep.mubr.msk.bf16.mxu1 %vm598_vm0, %v6665_v27  ;;  %v3859_v15 = vpack.c.bf16 %v5410_v51, %v5409_v50 }
0x1058   : > { %v3426_v48 = vmul.f32 %v6029_v47, %v6021_v22  ;;  %5830 = vmatprep.mubr.msk.f32.mxu0 %vm6095_vm1, %v6094_v14  ;;  %5835 = vmatprep.subr.bf16.mxu1 %v3731_v3 }
0x1059   : > { %5841 = vmatprep.subr.bf16.mxu0 %v3794_v43 }
0x105a   : > { %5831 = vmatmul.mubr.msk.f32.vlgmr.msra.gmra.mrb[44].mxu0 %vm1223_vm3, %v3426_v48  ;;  %5836 = vmatpush3.bf16.msra.mxu1 %v3731_v3 }
0x105b   : > { %5842 = vmatpush3.bf16.msra.mxu0 %v3794_v43  ;;  %5845 = vmatprep.mubr.msk.bf16.mxu0 %vm598_vm0, %v6665_v27 }
0x105c   : > { %5843 = vmatprep.subr.bf16.mxu0 %v3795_v11  ;;  %5849 = vmatprep.subr.bf16.mxu1 %v3858_v49 }
0x105d   : > { %5838 = vmatmul.mubr.msk.bf16.vlgmr.msra.gmra.mrb[52].mxu1 %vm598_vm0, %v6683_v0 }
0x105e   : > { %5850 = vmatpush3.bf16.msra.mxu1 %v3858_v49  ;;  %5853 = vmatprep.mubr.msk.bf16.mxu1 %vm598_vm0, %v6665_v27 }
0x105f   : > { %5844 = vmatpush3.bf16.msra.mxu0 %v3795_v11  ;;  %5851 = vmatprep.subr.bf16.mxu1 %v3859_v15 }
0x1060   : > { %5857 = vmatprep.subr.mxu0 %v6094_v14 }
0x1062   : > { %5846 = vmatmul.mubr.msk.bf16.vlgmr.msra.gmra.mrb[48].mxu0 %vm598_vm0, %v6683_v0  ;;  %5852 = vmatpush3.bf16.msra.mxu1 %v3859_v15 }
0x1063   : > { %5867 = vmatprep.subr.mxu1 %v6094_v14  ;;  %5859 = vmatprep.mubr.msk.f32.mxu0 %vm6095_vm1, %v6094_v14 }
0x1065   : > { %5854 = vmatmul.mubr.msk.bf16.vlgmr.msra.gmra.mrb[56].mxu1 %vm598_vm0, %v6683_v0 }
0x1066   : > { %5869 = vmatprep.mubr.msk.f32.mxu1 %vm6095_vm1, %v6094_v14 }
0x1124   : > { %v6809_v27 = vpop.f32.mrb[46].mxu1 }
0x1125   : > { %v5817_v53 = vpop.f32.mrb[47].mxu1 }
0x1128   : > { %v6811_v54 = vpop.f32.mrb[48].mxu1 }
0x1129   : > { %v6813_v56 = vpop.f32.mrb[42].mxu0  ;;  %v5827_v25 = vpop.f32.mrb[49].mxu1 }
0x112a   : > { %v3722_v59 = vpack.c.bf16 %v6813_v56, %v6809_v27  ;;  %v5822_v60 = vpop.f32.mrb[43].mxu0 }
0x112d   : > { %v6817_v61 = vpop.f32.mrb[44].mxu0 }
0x112e   : > { %v3723_v0 = vpack.c.bf16 %v6817_v61, %v6811_v54  ;;  %v5832_v12 = vpop.f32.mrb[45].mxu0 }
0x1130   : > { %v5839_v46 = vpop.f32.mrb[52].mxu1 }
0x1131   : > { %v3774_v4 = vpop.f32.mrb[53].mxu1  ;;  %v3783_v26 = vadd.f32 %v5839_v46, %v5396_v9 }
0x1132   : > { %v5840_v18 = vpop.f32.mrb[54].mxu1  ;;  %v3775_v31 = vadd.f32 %v5396_v9, %v3774_v4 }
0x1133   : > { %v3777_v52 = vpop.f32.mrb[55].mxu1  ;;  %v3786_v37 = vadd.f32 %v5840_v18, %v5396_v9 }
0x1134   : > { %v3778_v24 = vadd.f32 %v5396_v9, %v3777_v52 }
0x1135   : > { %v5847_v8 = vpop.f32.mrb[48].mxu0 }
0x1136   : > { %v3847_v13 = vadd.f32 %v5847_v8, %v5404_v6  ;;  %v3838_v17 = vpop.f32.mrb[49].mxu0 }
0x1137   : > { %v3839_v20 = vadd.f32 %v5404_v6, %v3838_v17  ;;  %v5848_v21 = vpop.f32.mrb[50].mxu0 }
0x1138   : > { %v3841_v23 = vpop.f32.mrb[51].mxu0  ;;  %5868 = vmatpush3.xpose.msk.msra.mxu1 %vm886_vm2, %v3847_v13  ;;  %v5855_v22 = vpop.f32.mrb[56].mxu1  ;;  %v3850_v29 = vadd.f32 %v5848_v21, %v5404_v6 }
0x1139   : > { %v6831_v28 = vadd.f32 %v5855_v22, %v5412_v19  ;;  %5858 = vmatpush3.xpose.msk.msra.mxu0 %vm886_vm2, %v3839_v20  ;;  %v3902_v30 = vpop.f32.mrb[57].mxu1  ;;  %5877 = vmatprep.subr.mxu1 %v6094_v14  ;;  %v3842_v34 = vadd.f32 %v5404_v6, %v3841_v23 }
0x113a   : > { %v3903_v32 = vadd.f32 %v5412_v19, %v3902_v30  ;;  %v5856_v33 = vpop.f32.mrb[58].mxu1  ;;  %5862 = vmatprep.subr.mxu0 %v6094_v14 }
0x113b   : > { %v6836_v35 = vadd.f32 %v5856_v33, %v5412_v19  ;;  %5870 = vmatmul.mubr.msk.f32.vlgmr.msra.gmra.mrb[50].mxu1 %vm886_vm2, %v3783_v26  ;;  %v3905_v7 = vpop.f32.mrb[59].mxu1 }
0x113c   : > { %5860 = vmatmul.mubr.msk.f32.vlgmr.msra.gmra.mrb[46].mxu0 %vm886_vm2, %v3775_v31  ;;  %5878 = vmatpush3.msra.mxu1 %v3903_v32  ;;  %v3906_v38 = vadd.f32 %v5412_v19, %v3905_v7 }
0x113d   : > { %5863 = vmatpush3.xpose.msk.msra.mxu0 %vm886_vm2, %v3842_v34  ;;  %5864 = vmatprep.mubr.msk.f32.mxu0 %vm6095_vm1, %v6094_v14 }
0x113e   : > { %5872 = vmatprep.subr.mxu0 %v6094_v14  ;;  %5879 = vmatprep.mubr.msk.f32.mxu1 %vm6095_vm1, %v6094_v14 }
0x113f   : > { %5887 = vmatprep.subr.mxu1 %v6094_v14 }
0x1140   : > { %5865 = vmatmul.mubr.msk.f32.vlgmr.msra.gmra.mrb[52].mxu0 %vm886_vm2, %v3778_v24 }
0x1141   : > { %5873 = vmatpush3.xpose.msk.msra.mxu0 %vm886_vm2, %v3850_v29  ;;  %5874 = vmatprep.mubr.msk.f32.mxu0 %vm6095_vm1, %v6094_v14 }
0x1142   : > { %5882 = vmatprep.subr.mxu0 %v6094_v14 }
0x1144   : > { %5875 = vmatmul.mubr.msk.f32.vlgmr.msra.gmra.mrb[54].mxu0 %vm886_vm2, %v3786_v37 }
0x1145   : > { %5883 = vmatpush3.msra.mxu0 %v3906_v38  ;;  %5884 = vmatprep.mubr.msk.f32.mxu0 %vm6095_vm1, %v6094_v14 }
0x1146   : > { %5892 = vmatprep.subr.mxu0 %v6094_v14 }
0x120e   : > { %v4141_v39 = vpop.f32.mrb[50].mxu1 }
0x120f   : > { %v3989_v2 = vpop.f32.mrb[46].mxu0  ;;  %v5871_v40 = vpop.f32.mrb[51].mxu1  ;;  %v4223_v41 = vmul.f32 0.25, %v4141_v39 }
0x1210   : > { %v4221_v42 = vmul.f32 0.25, %v3989_v2  ;;  %v5861_v3 = vpop.f32.mrb[47].mxu0  ;;  %v5428_v2 = vld [vmem:[%s7038_s7 + $0x38] sm:$0xff] }
0x1211   : > { %v4227_v47 = vadd.f32 %v4223_v41, %v6338_v63 }
0x1212   : > { %v4225_v5 = vadd.f32 %v4221_v42, %v6336_v55 }
0x1213   : > { %v4065_v43 = vpop.f32.mrb[52].mxu0  ;;  %v4235_v51 = vsel %vm1223_vm3, %v4227_v47, -inf }
0x1214   : > { %v4222_v10 = vmul.f32 0.25, %v4065_v43  ;;  %v5866_v44 = vpop.f32.mrb[53].mxu0  ;;  %v4229_v45 = vsel %vm1223_vm3, %v4225_v5, -inf }
0x1215   : > { %4230 = vmax.xlane.f32.xlu0 %v4229_v45 }
0x1216   : > { %v4226_v48 = vadd.f32 %v4222_v10, %v6341_v1 }
0x1217   : > { %v4217_v11 = vpop.f32.mrb[54].mxu0 }
0x1218   : > { %v4224_v49 = vmul.f32 0.25, %v4217_v11  ;;  %v5876_v50 = vpop.f32.mrb[55].mxu0  ;;  %v4232_v15 = vsel %vm1223_vm3, %v4226_v48, -inf }
0x1219   : > { %4236 = vmax.xlane.f32.xlu0 %v4235_v51  ;;  %4233 = vmax.xlane.f32.xlu1 %v4232_v15 }
0x121a   : > { %v4228_v55 = vadd.f32 %v4224_v49, %v6346_v16  ;;  %v5434_v49 = vld [vmem:[%s7039_s8 + $0x1] ss:$0 sm:$0xff] }
0x121c   : > { %v4238_v53 = vsel %vm1223_vm3, %v4228_v55, -inf }
0x121d   : > { %4239 = vmax.xlane.f32.xlu1 %v4238_v53 }
0x12a2   : > { %v4231_v25 = vpop.xlane.xlu0 %4230 }
0x12a3   : > { %v4241_v60 = vsub.f32 %v4225_v5, %v4231_v25 }
0x12a5   : > { %v4245_v63 = vmul.f32 1.442695, %v4241_v60 }
0x12a6   : > { %v4237_v12 = vpop.xlane.xlu0 %4236  ;;  %v4234_v46 = vpop.xlane.xlu1 %4233 }
0x12a7   : > { %6030 = vpow2.f32 %v4245_v63  ;;  %v4243_v1 = vsub.f32 %v4227_v47, %v4237_v12  ;;  %v4242_v4 = vsub.f32 %v4226_v48, %v4234_v46 }
0x12a9   : > { %v4249_v18 = vmul.f32 1.442695, %v4243_v1  ;;  %v4247_v52 = vmul.f32 1.442695, %v4242_v4 }
0x12aa   : > { %v4240_v6 = vpop.xlane.xlu1 %4239 }
0x12ab   : > { %6032 = vpow2.f32 %v4249_v18  ;;  %v4244_v8 = vsub.f32 %v4228_v55, %v4240_v6 }
0x12ac   : > { %6034 = vpow2.f32 %v4247_v52 }
0x12ad   : > { %v4251_v9 = vmul.f32 1.442695, %v4244_v8 }
0x12af   : > { %6036 = vpow2.f32 %v4251_v9 }
0x12b1   : > { %v6031_v16 = vpop.eup %6030 }
0x12b2   : > { %v4253_v13 = vsel %vm1223_vm3, %v6031_v16, 0.0 }
0x12b3   : > { %4254 = vadd.xlane.f32.xlu0 %v4253_v13 }
0x12b5   : > { %v6033_v17 = vpop.eup %6032 }
0x12b6   : > { %v6035_v19 = vpop.eup %6034  ;;  %v4259_v20 = vsel %vm1223_vm3, %v6033_v17, 0.0 }
0x12b7   : > { %4260 = vadd.xlane.f32.xlu0 %v4259_v20  ;;  %v4256_v21 = vsel %vm1223_vm3, %v6035_v19, 0.0 }
0x12b8   : > { %4257 = vadd.xlane.f32.xlu1 %v4256_v21 }
0x12b9   : > { %v6037_v23 = vpop.eup %6036 }
0x12ba   : > { %v4262_v22 = vsel %vm1223_vm3, %v6037_v23, 0.0 }
0x12bc   : > { %4263 = vadd.xlane.f32.xlu1 %v4262_v22 }
0x1340   : > { %v4255_v26 = vpop.xlane.xlu0 %4254 }
0x1341   : > { %6038 = vrcp.f32 %v4255_v26 }
0x1344   : > { %v4261_v30 = vpop.xlane.xlu0 %4260 }
0x1345   : > { %6040 = vrcp.f32 %v4261_v30  ;;  %v4258_v31 = vpop.xlane.xlu1 %4257  ;;  %v5439_v30 = vld [vmem:[%s7040_s9 + $0x20] sm:$0xff] }
0x1346   : > { %6042 = vrcp.f32 %v4258_v31  ;;  %v5440_v31 = vld [vmem:[%s7040_s9 + $0x28] sm:$0xff] }
0x1349   : > { %v4264_v32 = vpop.xlane.xlu1 %4263 }
0x134a   : > { %6044 = vrcp.f32 %v4264_v32  ;;  %v4780_v32 = vpack.c.bf16 %v5440_v31, %v5439_v30 }
0x134b   : > { %v6039_v33 = vpop.eup %6038 }
0x134c   : > { %v4269_v34 = vmul.f32 %v6039_v33, %v6031_v16  ;;  %v5441_v33 = vld [vmem:[%s7040_s9 + $0x30] sm:$0xff] }
0x134e   : > { %5880 = vmatmul.mubr.msk.f32.vlgmr.msra.gmra.mrb[60].mxu1 %vm1223_vm3, %v4269_v34  ;;  %v5442_v34 = vld [vmem:[%s7040_s9 + $0x38] sm:$0xff] }
0x134f   : > { %v6041_v7 = vpop.eup %6040  ;;  %5888 = vmatpush3.msra.mxu1 %v6831_v28  ;;  %5889 = vmatprep.mubr.msk.f32.mxu1 %vm6095_vm1, %v6094_v14  ;;  %v5427_v28 = vld [vmem:[%s7038_s7 + $0x30] sm:$0xff] }
0x1350   : > { %v6043_v24 = vpop.eup %6042  ;;  %v4271_v29 = vmul.f32 %v6041_v7, %v6033_v17  ;;  %v4570_v40 = vpack.c.bf16 %v5428_v2, %v5427_v28  ;;  %v4781_v7 = vpack.c.bf16 %v5442_v34, %v5441_v33 }
0x1351   : > { %v4270_v37 = vmul.f32 %v6043_v24, %v6035_v19 }
0x1352   : > { %5890 = vmatmul.mubr.msk.f32.vlgmr.msra.gmra.mrb[62].mxu1 %vm1223_vm3, %v4271_v29  ;;  %5897 = vmatprep.subr.bf16.mxu1 %v4570_v40 }
0x1353   : > { %5885 = vmatmul.mubr.msk.f32.vlgmr.msra.gmra.mrb[56].mxu0 %vm1223_vm3, %v4270_v37  ;;  %5898 = vmatpush3.bf16.msra.mxu1 %v4570_v40 }
0x1354   : > { %v6045_v38 = vpop.eup %6044  ;;  %5893 = vmatpush3.msra.mxu0 %v6836_v35  ;;  %5894 = vmatprep.mubr.msk.f32.mxu0 %vm6095_vm1, %v6094_v14  ;;  %v5389_v35 = vld [vmem:[%s7038_s7 + $0x20] sm:$0xff]  ;;  %v5390_v14 = vld [vmem:[%s7038_s7 + $0x28] sm:$0xff] }
0x1355   : > { %v4272_v39 = vmul.f32 %v6045_v38, %v6037_v23  ;;  %v3724_v41 = vpack.c.bf16 %v5390_v14, %v5389_v35  ;;  %5909 = vmatprep.subr.bf16.mxu0 %v4780_v32 }
0x1357   : > { %5895 = vmatmul.mubr.msk.f32.vlgmr.msra.gmra.mrb[58].mxu0 %vm1223_vm3, %v4272_v39  ;;  %5903 = vmatprep.subr.bf16.mxu1 %v3724_v41 }
0x1358   : > { %5910 = vmatpush3.bf16.msra.mxu0 %v4780_v32 }
0x1359   : > { %5911 = vmatprep.subr.bf16.mxu0 %v4781_v7 }
0x135c   : > { %5912 = vmatpush3.bf16.msra.mxu0 %v4781_v7 }
0x1421   : > { %v4342_v42 = vpop.f32.mrb[60].mxu1 }
0x1422   : > { %v5881_v3 = vpop.f32.mrb[61].mxu1 }
0x1425   : > { %v4488_v5 = vpop.f32.mrb[62].mxu1 }
0x1426   : > { %v4415_v43 = vpop.f32.mrb[56].mxu0  ;;  %v5891_v10 = vpop.f32.mrb[63].mxu1 }
0x1427   : > { %v4568_v44 = vpack.c.bf16 %v4415_v43, %v4342_v42  ;;  %v5886_v45 = vpop.f32.mrb[57].mxu0 }
0x1429   : > { %5899 = vmatprep.mubr.msk.bf16.mxu1 %vm886_vm2, %v4568_v44 }
0x142a   : > { %v4561_v47 = vpop.f32.mrb[58].mxu0 }
0x142b   : > { %v4569_v48 = vpack.c.bf16 %v4561_v47, %v4488_v5  ;;  %v5896_v11 = vpop.f32.mrb[59].mxu0  ;;  %v5437_v5 = vld [vmem:[%s7044_s13 + $0x1] ss:$0 sm:$0xff] }
0x142d   : > { %5900 = vmatmul.mubr.msk.bf16.vlgmr.msra.gmra.mrb[64].mxu1 %vm886_vm2, %v4569_v48  ;;  %v5438_v48 = vld [vmem:[%s7045_s14 + $0x1] ss:$0 sm:$0xff] }
0x142e   : > { %5905 = vmatprep.mubr.msk.bf16.mxu1 %vm886_vm2, %v3722_v59  ;;  %5904 = vmatpush3.bf16.msra.mxu1 %v3724_v41 }
0x1439   : > { %5906 = vmatmul.mubr.msk.bf16.vlgmr.msra.gmra.mrb[64].mxu1 %vm886_vm2, %v3723_v0 }
0x150c   : > { %v5907_v50 = vpop.f32.mrb[64].mxu1 }
0x150d   : > { %v4666_v51 = vpop.f32.mrb[65].mxu1  ;;  %v4691_v15 = vadd.f32 %v5907_v50, %v5434_v49 }
0x150e   : > { %v4689_v55 = vadd.f32 %v5434_v49, %v4666_v51  ;;  %v5908_v53 = vpop.f32.mrb[66].mxu1 }
0x150f   : > { %v4669_v25 = vpop.f32.mrb[67].mxu1  ;;  %v4692_v60 = vadd.f32 %v5908_v53, %v5434_v49  ;;  %v4695_v61 = vadd.f32 %v4691_v15, %v6673_v62 }
0x1510   : > { %v4690_v27 = vadd.f32 %v5434_v49, %v4669_v25  ;;  %v4693_v56 = vadd.f32 %v4689_v55, %v6658_v57 }
0x1511   : > { %v4696_v63 = vadd.f32 %v4692_v60, %v6675_v36  ;;  %v4707_v12 = vsel %vm598_vm0, %v4695_v61, 0.0 }
0x1512   : > { %v4701_v59 = vsel %vm598_vm0, %v4693_v56, 0.0  ;;  %v4694_v54 = vadd.f32 %v4690_v27, %v6660_v58 }
0x1513   : > { %4702 = vadd.xlane.f32.xlu0 %v4701_v59  ;;  %v4710_v46 = vsel %vm598_vm0, %v4696_v63, 0.0 }
0x1514   : > { %v4704_v0 = vsel %vm598_vm0, %v4694_v54, 0.0 }
0x1515   : > { %4705 = vadd.xlane.f32.xlu1 %v4704_v0 }
0x1517   : > { %4708 = vadd.xlane.f32.xlu0 %v4707_v12  ;;  %v5450_v12 = vld [vmem:[%s7042_s11 + $0x58] sm:$0xff] }
0x1519   : > { %4711 = vadd.xlane.f32.xlu1 %v4710_v46 }
0x15a0   : > { %v4703_v1 = vpop.xlane.xlu0 %4702 }
0x15a1   : > { %v4713_v57 = vmul.f32 0.03125, %v4703_v1  ;;  %v5451_v1 = vld [vmem:[%s7042_s11 + $0x60] sm:$0xff] }
0x15a2   : > { %v4706_v4 = vpop.xlane.xlu1 %4705 }
0x15a3   : > { %v4717_v18 = vsub.f32 %v4693_v56, %v4713_v57  ;;  %v4714_v52 = vmul.f32 0.03125, %v4706_v4  ;;  %v5452_v57 = vld [vmem:[%s7042_s11 + $0x68] sm:$0xff] }
0x15a4   : > { %v4709_v58 = vpop.xlane.xlu0 %4708  ;;  %v4894_v4 = vpack.c.bf16 %v5452_v57, %v5451_v1 }
0x15a5   : > { %v4718_v6 = vsub.f32 %v4694_v54, %v4714_v52  ;;  %v4715_v62 = vmul.f32 0.03125, %v4709_v58  ;;  %v4721_v8 = vmul.f32 %v4717_v18, %v4717_v18  ;;  %v5447_v54 = vld [vmem:[%s7042_s11 + $0x40] sm:$0xff]  ;;  %v5454_v52 = vld [vmem:[%s7042_s11 + $0x78] sm:$0xff] }
0x15a6   : > { %v4712_v9 = vpop.xlane.xlu1 %4711 }
0x15a7   : > { %v4719_v16 = vsub.f32 %v4695_v61, %v4715_v62  ;;  %v4716_v13 = vmul.f32 0.03125, %v4712_v9  ;;  %v4725_v36 = vsel %vm598_vm0, %v4721_v8, 0.0  ;;  %v4722_v17 = vmul.f32 %v4718_v6, %v4718_v6  ;;  %v5448_v61 = vld [vmem:[%s7042_s11 + $0x48] sm:$0xff] }
0x15a8   : > { %4726 = vadd.xlane.f32.xlu0 %v4725_v36  ;;  %v4892_v0 = vpack.c.bf16 %v5448_v61, %v5447_v54  ;;  %v5456_v54 = vld [vmem:[%s7043_s12 + $0x1] ss:$0 sm:$0xff] }
0x15a9   : > { %v4720_v19 = vsub.f32 %v4696_v63, %v4716_v13  ;;  %v4728_v20 = vsel %vm598_vm0, %v4722_v17, 0.0  ;;  %v4723_v21 = vmul.f32 %v4719_v16, %v4719_v16  ;;  %v5449_v63 = vld [vmem:[%s7042_s11 + $0x50] sm:$0xff] }
0x15aa   : > { %4729 = vadd.xlane.f32.xlu1 %v4728_v20  ;;  %5917 = vmatprep.subr.bf16.mxu0 %v4892_v0  ;;  %v4893_v46 = vpack.c.bf16 %v5450_v12, %v5449_v63 }
0x15ab   : > { %v4731_v23 = vsel %vm598_vm0, %v4723_v21, 0.0  ;;  %v4724_v22 = vmul.f32 %v4720_v19, %v4720_v19 }
0x15ac   : > { %4732 = vadd.xlane.f32.xlu0 %v4731_v23 }
0x15ad   : > { %v4734_v26 = vsel %vm598_vm0, %v4724_v22, 0.0 }
0x15ae   : > { %4735 = vadd.xlane.f32.xlu1 %v4734_v26 }
0x1635   : > { %v4727_v24 = vpop.xlane.xlu0 %4726 }
0x1636   : > { %v4737_v29 = vmul.f32 0.03125, %v4727_v24 }
0x1637   : > { %v4730_v37 = vpop.xlane.xlu1 %4729 }
0x1638   : > { %v4741_v38 = vadd.f32 1e-12, %v4737_v29  ;;  %v4738_v39 = vmul.f32 0.03125, %v4730_v37 }
0x1639   : > { %v4733_v28 = vpop.xlane.xlu0 %4732 }
0x163a   : > { %6046 = vrsqrt.f32 %v4741_v38  ;;  %v4742_v2 = vadd.f32 1e-12, %v4738_v39  ;;  %v4739_v40 = vmul.f32 0.03125, %v4733_v28 }
0x163b   : > { %v4736_v35 = vpop.xlane.xlu1 %4735 }
0x163c   : > { %6048 = vrsqrt.f32 %v4742_v2  ;;  %v4743_v14 = vadd.f32 1e-12, %v4739_v40  ;;  %v4740_v41 = vmul.f32 0.03125, %v4736_v35 }
0x163e   : > { %6050 = vrsqrt.f32 %v4743_v14  ;;  %v4744_v42 = vadd.f32 1e-12, %v4740_v41 }
0x1640   : > { %6052 = vrsqrt.f32 %v4744_v42 }
0x1644   : > { %v6047_v3 = vpop.eup %6046 }
0x1645   : > { %v4749_v43 = vmul.f32 %v6047_v3, %v4717_v18  ;;  %v5453_v18 = vld [vmem:[%s7042_s11 + $0x70] sm:$0xff] }
0x1646   : > { %v6049_v10 = vpop.eup %6048  ;;  %v4895_v58 = vpack.c.bf16 %v5454_v52, %v5453_v18 }
0x1647   : > { %v4750_v44 = vmul.f32 %v6049_v10, %v4718_v6  ;;  %v4759_v45 = vmul.f32 %v5437_v5, %v4749_v43  ;;  %v5444_v6 = vld [vmem:[%s7041_s10 + $0x1] ss:$0 sm:$0xff] }
0x1648   : > { %v6051_v47 = vpop.eup %6050 }
0x1649   : > { %v4751_v11 = vmul.f32 %v6051_v47, %v4719_v16  ;;  %v4760_v49 = vmul.f32 %v5437_v5, %v4750_v44  ;;  %v6933_v55 = vadd.f32 %v5438_v48, %v4759_v45 }
0x164a   : > { %v6053_v50 = vpop.eup %6052 }
0x164b   : > { %v4761_v51 = vmul.f32 %v5437_v5, %v4751_v11  ;;  %v4752_v15 = vmul.f32 %v6053_v50, %v4720_v19  ;;  %v6935_v53 = vadd.f32 %v5438_v48, %v4760_v49 }
0x164d   : > { %v4762_v25 = vmul.f32 %v5437_v5, %v4752_v15  ;;  %v4778_v60 = vpack.c.bf16 %v6935_v53, %v6933_v55  ;;  %v6940_v27 = vadd.f32 %v5438_v48, %v4761_v51 }
0x164f   : > { %5913 = vmatprep.mubr.msk.bf16.mxu0 %vm598_vm0, %v4778_v60  ;;  %v6942_v56 = vadd.f32 %v5438_v48, %v4762_v25 }
0x1651   : > { %v4779_v59 = vpack.c.bf16 %v6942_v56, %v6940_v27 }
0x1653   : > { %5914 = vmatmul.mubr.msk.bf16.vlgmr.msra.gmra.mrb[60].mxu0 %vm598_vm0, %v4779_v59  ;;  %v6096_v59 = vmov 0  }
0x1654   : > { %5918 = vmatpush3.bf16.msra.mxu0 %v4892_v0  ;;  %5949 = vset.pattern.permute.xlu1 %v6096_v59 }
0x1655   : > { %5919 = vmatprep.subr.bf16.mxu0 %v4893_v46  ;;  %5948 = vset.pattern.permute.xlu0 %v6096_v59 }
0x1658   : > { %5920 = vmatpush3.bf16.msra.mxu0 %v4893_v46 }
0x1659   : > { %5921 = vmatprep.subr.bf16.mxu0 %v4894_v4 }
0x165c   : > { %5922 = vmatpush3.bf16.msra.mxu0 %v4894_v4 }
0x165d   : > { %5923 = vmatprep.subr.bf16.mxu0 %v4895_v58 }
0x1660   : > { %5924 = vmatpush3.bf16.msra.mxu0 %v4895_v58 }
0x1726   : > { %v5915_v62 = vpop.f32.mrb[60].mxu0 }
0x1727   : > { %v4839_v8 = vadd.f32 %v5915_v62, %v5444_v6  ;;  %v4830_v9 = vpop.f32.mrb[61].mxu0 }
0x1728   : > { %v4831_v16 = vadd.f32 %v5444_v6, %v4830_v9  ;;  %v5916_v13 = vpop.f32.mrb[62].mxu0 }
0x1729   : > { %v4847_v36 = vmul.f32 %v4839_v8, %v4839_v8  ;;  %v4842_v17 = vadd.f32 %v5916_v13, %v5444_v6  ;;  %v4833_v19 = vpop.f32.mrb[63].mxu0  ;;  %v677_v13 = vld [vmem:[%s6985_s1 + $0x8] sm:$0xff] }
0x172a   : > { %v4845_v20 = vmul.f32 %v4831_v16, %v4831_v16  ;;  %v4834_v21 = vadd.f32 %v5444_v6, %v4833_v19 }
0x172b   : > { %v4851_v23 = vmul.f32 %v4847_v36, %v4839_v8  ;;  %v4848_v22 = vmul.f32 %v4842_v17, %v4842_v17  ;;  %v5099_v36 = vsel %vm5091_vm5, %v677_v13, 0.0 }
0x172c   : > { %v4849_v26 = vmul.f32 %v4845_v20, %v4831_v16  ;;  %v4846_v30 = vmul.f32 %v4834_v21, %v4834_v21  ;;  %v5100_v19 = vrot.slane %v5099_v36, 4 }
0x172d   : > { %v4855_v31 = vmul.f32 0.044715, %v4851_v23  ;;  %v4852_v32 = vmul.f32 %v4848_v22, %v4842_v17 }
0x172e   : > { %v4853_v33 = vmul.f32 0.044715, %v4849_v26  ;;  %v4850_v34 = vmul.f32 %v4846_v30, %v4834_v21 }
0x172f   : > { %v4859_v7 = vadd.f32 %v4855_v31, %v4839_v8  ;;  %v4856_v24 = vmul.f32 0.044715, %v4852_v32 }
0x1730   : > { %v4857_v29 = vadd.f32 %v4853_v33, %v4831_v16  ;;  %v4854_v37 = vmul.f32 0.044715, %v4850_v34 }
0x1731   : > { %v4863_v38 = vmul.f32 0.7978846, %v4859_v7  ;;  %v4860_v39 = vadd.f32 %v4856_v24, %v4842_v17 }
0x1732   : > { %v4861_v28 = vmul.f32 0.7978846, %v4857_v29  ;;  %v4858_v2 = vadd.f32 %v4854_v37, %v4834_v21  ;;  %v679_v37 = vld [vmem:[%s6985_s1 + $0x18] sm:$0xff] }
0x1733   : > { %6054 = vtanh.f32 %v4863_v38  ;;  %v4864_v40 = vmul.f32 0.7978846, %v4860_v39 }
0x1734   : > { %6056 = vtanh.f32 %v4861_v28  ;;  %v4862_v35 = vmul.f32 0.7978846, %v4858_v2 }
0x1735   : > { %6058 = vtanh.f32 %v4864_v40 }
0x1736   : > { %6060 = vtanh.f32 %v4862_v35 }
0x173d   : > { %v6055_v14 = vpop.eup %6054 }
0x173e   : > { %v6057_v41 = vpop.eup %6056  ;;  %v4871_v42 = vadd.f32 1.0, %v6055_v14  ;;  %v5113_v14 = vsel %vm5091_vm5, %v679_v37, 0.0 }
0x173f   : > { %v6059_v3 = vpop.eup %6058  ;;  %v4869_v5 = vadd.f32 1.0, %v6057_v41 }
0x1740   : > { %v6061_v43 = vpop.eup %6060  ;;  %v4875_v10 = vmul.f32 0.5, %v4871_v42  ;;  %v4872_v44 = vadd.f32 1.0, %v6059_v3  ;;  %v5114_v3 = vrot.slane %v5113_v14, 4 }
0x1741   : > { %v4873_v45 = vmul.f32 0.5, %v4869_v5  ;;  %v4870_v47 = vadd.f32 1.0, %v6061_v43 }
0x1742   : > { %v4876_v48 = vmul.f32 0.5, %v4872_v44  ;;  %v4879_v49 = vmul.f32 %v4875_v10, %v4839_v8  ;;  %v6993_v8 = vld [vmem:[%s6985_s1] sm:$0xff] }
0x1743   : > { %v4874_v11 = vmul.f32 0.5, %v4870_v47  ;;  %v4877_v51 = vmul.f32 %v4873_v45, %v4831_v16  ;;  %v5092_v16 = vsel %vm5091_vm5, %v6993_v8, 0.0 }
0x1744   : > { %v4880_v50 = vmul.f32 %v4876_v48, %v4842_v17  ;;  %v678_v17 = vld [vmem:[%s6985_s1 + $0x10] sm:$0xff]  ;;  %v5115_v48 = vadd.f32 %v5114_v3, %v5113_v14 }
0x1745   : > { %v4878_v15 = vmul.f32 %v4874_v11, %v4834_v21  ;;  %v5106_v20 = vsel %vm5091_vm5, %v678_v17, 0.0  ;;  %v5101_v21 = vadd.f32 %v5100_v19, %v5099_v36 }
0x1746   : > { %v4891_v25 = vpack.c.bf16 %v4880_v50, %v4879_v49  ;;  %v5107_v23 = vrot.slane %v5106_v20, 4  ;;  %v5116_v59 = vrot.slane %v5115_v48, 2 }
0x1747   : > { %v4890_v60 = vpack.c.bf16 %v4878_v15, %v4877_v51  ;;  %v5102_v26 = vrot.slane %v5101_v21, 2 }
0x1748   : > { %v5108_v30 = vadd.f32 %v5107_v23, %v5106_v20 }
0x1749   : > { %5925 = vmatprep.mubr.msk.bf16.mxu0 %vm2737_vm4, %v4890_v60  ;;  %v5103_v32 = vadd.f32 %v5102_v26, %v5101_v21 }
0x174a   : > { %5926 = vmatmul.mubr.msk.bf16.vlgmr.msra.gmra.mrb[64].mxu0 %vm2737_vm4, %v4891_v25  ;;  %v5109_v33 = vrot.slane %v5108_v30, 2 }
0x174b   : > { %v5104_v29 = vrot.slane %v5103_v32, 1 }
0x174c   : > { %v5110_v7 = vadd.f32 %v5109_v33, %v5108_v30  ;;  %v5462_v30 = vld [vmem:[%s7047_s16 + $0x1] ss:$0 sm:$0xff] }
0x174d   : > { %v5105_v39 = vadd.f32 %v5104_v29, %v5103_v32 }
0x174e   : > { %v5111_v28 = vrot.slane %v5110_v7, 1 }
0x174f   : > { %v5121_v2 = vmax.f32 %v5105_v39, 1e-09 }
0x1750   : > { %v5112_v40 = vadd.f32 %v5111_v28, %v5110_v7 }
0x1752   : > { %v5122_v35 = vmax.f32 %v5112_v40, 1e-09 }
0x181d   : > { %v5927_v61 = vpop.f32.mrb[64].mxu0 }
0x181e   : > { %v4944_v0 = vpop.f32.mrb[65].mxu0  ;;  %v4953_v63 = vadd.f32 %v5927_v61, %v5456_v54 }
0x181f   : > { %v4945_v12 = vadd.f32 %v5456_v54, %v4944_v0  ;;  %v5928_v46 = vpop.f32.mrb[66].mxu0 }
0x1820   : > { %v4956_v1 = vadd.f32 %v5928_v46, %v5456_v54  ;;  %v4947_v57 = vpop.f32.mrb[67].mxu0  ;;  %v4961_v6 = vadd.f32 %v4953_v63, %v6940_v27  ;;  %v5093_v27 = vrot.slane %v5092_v16, 4 }
0x1821   : > { %v4948_v4 = vadd.f32 %v5456_v54, %v4947_v57  ;;  %v4959_v18 = vadd.f32 %v4945_v12, %v6933_v55  ;;  %v5117_v12 = vadd.f32 %v5116_v59, %v5115_v48 }
0x1822   : > { %v4962_v52 = vadd.f32 %v4956_v1, %v6942_v56  ;;  %v4973_v9 = vsel %vm598_vm0, %v4961_v6, 0.0 }
0x1823   : > { %v4967_v58 = vsel %vm598_vm0, %v4959_v18, 0.0  ;;  %v4960_v55 = vadd.f32 %v4948_v4, %v6935_v53  ;;  %v5094_v53 = vadd.f32 %v5093_v27, %v5092_v16  ;;  %v5118_v1 = vrot.slane %v5117_v12, 1 }
0x1824   : > { %4968 = vadd.xlane.f32.xlu0 %v4967_v58  ;;  %v4976_v62 = vsel %vm598_vm0, %v4962_v52, 0.0 }
0x1825   : > { %4977 = vadd.xlane.f32.xlu1 %v4976_v62  ;;  %v4970_v56 = vsel %vm598_vm0, %v4960_v55, 0.0  ;;  %v5095_v22 = vrot.slane %v5094_v53, 2  ;;  %v5119_v57 = vadd.f32 %v5118_v1, %v5117_v12 }
0x1827   : > { %v5096_v31 = vadd.f32 %v5095_v22, %v5094_v53  ;;  %v5123_v4 = vmax.f32 %v5119_v57, 1e-09  ;;  %v5461_v22 = vld [vmem:[%s7046_s15 + $0x1] ss:$0 sm:$0xff] }
0x1828   : > { %4974 = vadd.xlane.f32.xlu0 %v4973_v9 }
0x1829   : > { %4971 = vadd.xlane.f32.xlu1 %v4970_v56  ;;  %v5097_v34 = vrot.slane %v5096_v31, 1 }
0x182b   : > { %v5098_v24 = vadd.f32 %v5097_v34, %v5096_v31 }
0x182d   : > { %v5120_v38 = vmax.f32 %v5098_v24, 1e-09 }
0x183a   : > { %5046 = vperm.xlu1 %5949, %v677_v13  }
0x183e   : > { %5051 = vperm.xlu1 %5949, %v678_v17  }
0x1842   : > { %5056 = vperm.xlu1 %5949, %v679_v37  }
0x1846   : > { %5126 = vperm.xlu1 %5949, %v5120_v38  }
0x184a   : > { %5131 = vperm.xlu1 %5949, %v5121_v2  }
0x184e   : > { %5136 = vperm.xlu1 %5949, %v5122_v35  }
0x18b1   : > { %v4969_v41 = vpop.xlane.xlu0 %4968 }
0x18b2   : > { %v4978_v42 = vpop.xlane.xlu1 %4977  ;;  %v4979_v43 = vmul.f32 0.03125, %v4969_v41 }
0x18b3   : > { %v4982_v5 = vmul.f32 0.03125, %v4978_v42 }
0x18b4   : > { %v4983_v50 = vsub.f32 %v4959_v18, %v4979_v43 }
0x18b5   : > { %v4986_v10 = vsub.f32 %v4962_v52, %v4982_v5  ;;  %v4975_v44 = vpop.xlane.xlu0 %4974 }
0x18b6   : > { %v4981_v45 = vmul.f32 0.03125, %v4975_v44  ;;  %v4972_v47 = vpop.xlane.xlu1 %4971  ;;  %v4987_v0 = vmul.f32 %v4983_v50, %v4983_v50 }
0x18b7   : > { %v4980_v11 = vmul.f32 0.03125, %v4972_v47  ;;  %v4990_v49 = vmul.f32 %v4986_v10, %v4986_v10 }
0x18b8   : > { %v4985_v51 = vsub.f32 %v4961_v6, %v4981_v45  ;;  %v4991_v46 = vsel %vm598_vm0, %v4987_v0, 0.0 }
0x18b9   : > { %v4984_v15 = vsub.f32 %v4960_v55, %v4980_v11  ;;  %v5000_v25 = vsel %vm598_vm0, %v4990_v49, 0.0 }
0x18ba   : > { %5001 = vadd.xlane.f32.xlu1 %v5000_v25  ;;  %v4989_v60 = vmul.f32 %v4985_v51, %v4985_v51  ;;  %v5047_v18 = vpop.permute.xlu1 %5046 }
0x18bb   : > { %v4988_v54 = vmul.f32 %v4984_v15, %v4984_v15 }
0x18bc   : > { %v4997_v61 = vsel %vm598_vm0, %v4989_v60, 0.0 }
0x18bd   : > { %4998 = vadd.xlane.f32.xlu0 %v4997_v61  ;;  %v4994_v63 = vsel %vm598_vm0, %v4988_v54, 0.0 }
0x18be   : > { %4995 = vadd.xlane.f32.xlu1 %v4994_v63  ;;  %v5052_v52 = vpop.permute.xlu1 %5051 }
0x18c1   : > { %4992 = vadd.xlane.f32.xlu0 %v4991_v46 }
0x18c2   : > { %v5057_v58 = vpop.permute.xlu1 %5056 }
0x18c6   : > { %v5127_v6 = vpop.permute.xlu1 %5126 }
0x18ca   : > { %v5132_v62 = vpop.permute.xlu1 %5131 }
0x18ce   : > { %v5137_v55 = vpop.permute.xlu1 %5136 }
0x18cf   : > { %5141 = vperm.xlu1 %5949, %v5123_v4  }
0x18d7   : > { %5041 = vperm.xlu0 %5948, %v6993_v8  }
0x1947   : > { %v5002_v9 = vpop.xlane.xlu1 %5001 }
0x1948   : > { %v5006_v16 = vmul.f32 0.03125, %v5002_v9 }
0x194a   : > { %v5010_v56 = vadd.f32 1e-12, %v5006_v16  ;;  %v4999_v13 = vpop.xlane.xlu0 %4998 }
0x194b   : > { %v5005_v27 = vmul.f32 0.03125, %v4999_v13  ;;  %v4996_v36 = vpop.xlane.xlu1 %4995 }
0x194c   : > { %6062 = vrsqrt.f32 %v5010_v56  ;;  %v5004_v17 = vmul.f32 0.03125, %v4996_v36 }
0x194d   : > { %v5009_v19 = vadd.f32 1e-12, %v5005_v27 }
0x194e   : > { %v5008_v53 = vadd.f32 1e-12, %v5004_v17  ;;  %v4993_v20 = vpop.xlane.xlu0 %4992 }
0x194f   : > { %6064 = vrsqrt.f32 %v5009_v19  ;;  %v5003_v21 = vmul.f32 0.03125, %v4993_v20 }
0x1950   : > { %6066 = vrsqrt.f32 %v5008_v53 }
0x1951   : > { %v5007_v8 = vadd.f32 1e-12, %v5003_v21 }
0x1953   : > { %6068 = vrsqrt.f32 %v5007_v8 }
0x1954   : > { %6070 = vrcp.f32 %v5132_v62 }
0x1955   : > { %6072 = vrcp.f32 %v5137_v55 }
0x1956   : > { %v6063_v23 = vpop.eup %6062  ;;  %v5042_v5 = vpop.permute.xlu0 %5041  ;;  %6074 = vrcp.f32 %v5127_v6 }
0x1957   : > { %v5018_v26 = vmul.f32 %v6063_v23, %v4986_v10 }
0x1959   : > { %v6065_v31 = vpop.eup %6064  ;;  %v5028_v32 = vmul.f32 %v5461_v22, %v5018_v26 }
0x195a   : > { %v6067_v33 = vpop.eup %6066  ;;  %v5017_v34 = vmul.f32 %v6065_v31, %v4985_v51 }
0x195b   : > { %v5016_v7 = vmul.f32 %v6067_v33, %v4984_v15  ;;  %v5038_v24 = vadd.f32 %v5462_v30, %v5028_v32 }
0x195c   : > { %v5027_v29 = vmul.f32 %v5461_v22, %v5017_v34 }
0x195d   : > { %v6069_v37 = vpop.eup %6068  ;;  %v5026_v38 = vmul.f32 %v5461_v22, %v5016_v7  ;;  %v5062_v39 = vmul.f32 %v5057_v58, %v5038_v24 }
0x195e   : > { %v5015_v28 = vmul.f32 %v6069_v37, %v4983_v50  ;;  %v5037_v2 = vadd.f32 %v5462_v30, %v5027_v29  ;;  %v5142_v50 = vpop.permute.xlu1 %5141  ;;  %v6071_v58 = vpop.eup %6070 }
0x195f   : > { %v5036_v40 = vadd.f32 %v5462_v30, %v5026_v38  ;;  %v5084_v35 = vsel %vm598_vm0, %v5062_v39, 0.0  ;;  %6076 = vrcp.f32 %v5142_v50  ;;  %v6073_v55 = vpop.eup %6072 }
0x1960   : > { %v5025_v14 = vmul.f32 %v5461_v22, %v5015_v28  ;;  %v5061_v41 = vmul.f32 %v5052_v52, %v5037_v2  ;;  %v5085_v42 = vrot.slane %v5084_v35, 4  ;;  %v6075_v13 = vpop.eup %6074 }
0x1961   : > { %v5060_v3 = vmul.f32 %v5047_v18, %v5036_v40 }
0x1962   : > { %v5035_v43 = vadd.f32 %v5462_v30, %v5025_v14  ;;  %v5077_v10 = vsel %vm598_vm0, %v5061_v41, 0.0  ;;  %v5086_v44 = vadd.f32 %v5085_v42, %v5084_v35 }
0x1963   : > { %v5070_v45 = vsel %vm598_vm0, %v5060_v3, 0.0  ;;  %v5078_v47 = vrot.slane %v5077_v10, 4 }
0x1964   : > { %v5059_v48 = vmul.f32 %v5042_v5, %v5035_v43  ;;  %v5071_v11 = vrot.slane %v5070_v45, 4  ;;  %v5087_v49 = vrot.slane %v5086_v44, 2 }
0x1965   : > { %v5079_v51 = vadd.f32 %v5078_v47, %v5077_v10 }
0x1966   : > { %v5063_v15 = vsel %vm598_vm0, %v5059_v48, 0.0  ;;  %v5072_v25 = vadd.f32 %v5071_v11, %v5070_v45  ;;  %v5088_v54 = vadd.f32 %v5087_v49, %v5086_v44 }
0x1967   : > { %v5064_v60 = vrot.slane %v5063_v15, 4  ;;  %v5080_v59 = vrot.slane %v5079_v51, 2 }
0x1968   : > { %v5073_v61 = vrot.slane %v5072_v25, 2  ;;  %v5089_v57 = vrot.slane %v5088_v54, 1 }
0x1969   : > { %v5065_v0 = vadd.f32 %v5064_v60, %v5063_v15  ;;  %v5081_v63 = vadd.f32 %v5080_v59, %v5079_v51  ;;  %v6077_v36 = vpop.eup %6076 }
0x196a   : > { %v5074_v12 = vadd.f32 %v5073_v61, %v5072_v25  ;;  %v5090_v16 = vadd.f32 %v5089_v57, %v5088_v54 }
0x196b   : > { %v5066_v46 = vrot.slane %v5065_v0, 2  ;;  %v5082_v1 = vrot.slane %v5081_v63, 1 }
0x196c   : > { %v5075_v4 = vrot.slane %v5074_v12, 1  ;;  %v5151_v53 = vmul.f32 %v6077_v36, %v5090_v16 }
0x196d   : > { %v5067_v18 = vadd.f32 %v5066_v46, %v5065_v0  ;;  %v5083_v52 = vadd.f32 %v5082_v1, %v5081_v63 }
0x196e   : > { %v5076_v62 = vadd.f32 %v5075_v4, %v5074_v12  ;;  %v5155_v22 = vmul.f32 %v5151_v53, %v5151_v53 }
0x196f   : > { %v5068_v9 = vrot.slane %v5067_v18, 1  ;;  %v5149_v56 = vmul.f32 %v6073_v55, %v5083_v52 }
0x1970   : > { %v5147_v6 = vmul.f32 %v6071_v58, %v5076_v62  ;;  %v5165_v30 = vsel %vm598_vm0, %v5155_v22, 0.0 }
0x1971   : > { %v5069_v27 = vadd.f32 %v5068_v9, %v5067_v18  ;;  %v5154_v21 = vmul.f32 %v5149_v56, %v5149_v56 }
0x1972   : > { %v5153_v17 = vmul.f32 %v5147_v6, %v5147_v6 }
0x1973   : > { %v5145_v19 = vmul.f32 %v6075_v13, %v5069_v27  ;;  %v5162_v26 = vsel %vm598_vm0, %v5154_v21, 0.0 }
0x1974   : > { %v5159_v20 = vsel %vm598_vm0, %v5153_v17, 0.0 }
0x1975   : > { %5160 = vadd.xlane.f32.xlu0 %v5159_v20  ;;  %v5152_v8 = vmul.f32 %v5145_v19, %v5145_v19 }
0x1977   : > { %v5156_v23 = vsel %vm598_vm0, %v5152_v8, 0.0 }
0x1978   : > { %5157 = vadd.xlane.f32.xlu1 %v5156_v23 }
0x1979   : > { %5163 = vadd.xlane.f32.xlu0 %v5162_v26 }
0x197c   : > { %5166 = vadd.xlane.f32.xlu1 %v5165_v30 }
0x1a02   : > { %v5161_v31 = vpop.xlane.xlu0 %5160 }
0x1a03   : > { %v5169_v32 = vmax.f32 %v5161_v31, 1e-24 }
0x1a05   : > { %v5158_v33 = vpop.xlane.xlu1 %5157  ;;  %6078 = vrsqrt.f32 %v5169_v32 }
0x1a06   : > { %v5168_v34 = vmax.f32 %v5158_v33, 1e-24  ;;  %v5164_v7 = vpop.xlane.xlu0 %5163 }
0x1a07   : > { %v5170_v24 = vmax.f32 %v5164_v7, 1e-24 }
0x1a08   : > { %6080 = vrsqrt.f32 %v5168_v34 }
0x1a09   : > { %6082 = vrsqrt.f32 %v5170_v24  ;;  %v5167_v29 = vpop.xlane.xlu1 %5166 }
0x1a0a   : > { %v5171_v37 = vmax.f32 %v5167_v29, 1e-24 }
0x1a0c   : > { %6084 = vrsqrt.f32 %v5171_v37 }
0x1a0f   : > { %v6079_v38 = vpop.eup %6078 }
0x1a10   : > { %v5177_v40 = vmul.f32 %v6079_v38, %v5147_v6 }
0x1a12   : > { %v6081_v39 = vpop.eup %6080  ;;  %5182 = vst.msk [vmem:[%s589_s28 + $0x1] sm:$0x1] %vm5180_vm6, %v5177_v40 }
0x1a13   : > { %v6083_v28 = vpop.eup %6082  ;;  %v5176_v2 = vmul.f32 %v6081_v39, %v5145_v19 }
0x1a14   : > { %v5178_v35 = vmul.f32 %v6083_v28, %v5149_v56 }
0x1a15   : > { %5181 = vst.msk [vmem:[%s589_s28] sm:$0x1] %vm5180_vm6, %v5176_v2 }
0x1a16   : > { %v6085_v14 = vpop.eup %6084  ;;  %5183 = vst.msk [vmem:[%s589_s28 + $0x2] sm:$0x1] %vm5180_vm6, %v5178_v35 }
0x1a17   : > { %v5179_v41 = vmul.f32 %v6085_v14, %v5151_v53 }
0x1a19   : > { %5184 = vst.msk [vmem:[%s589_s28 + $0x3] sm:$0x1] %vm5180_vm6, %v5179_v41 }
0x1a1a PF: > { %s27_s24 = sadd.s32 1, %s6092_s24  }
0x1a1b   : > { %p24_p4 = scmp.ge.s32.totalorder %s27_s24, 4  }
0x1a1d   :  { %26 = sbr.rel (!%p24_p4) target bundleno = 3 (0x3), region = 158 }

</bundles_post_ra>
